<compile_context>
chip_gen: v6e
topology: v6e:2x2x1
jax: 0.10.0
libtpu: 0.0.40
codegen_flags: <defaults>
</compile_context>

<pallas_src>
import functools

import jax
import jax.numpy as jnp
from jax.experimental import pallas as pl
from jax.experimental.pallas import tpu as pltpu

H = 128          # LSTM hidden size (fixed by the module)
Z2_PAD = 128     # head layer-2 output (48) padded to 128 lanes
OUT_PAD = 128    # final output padded to 128 lanes (sliced in the wrapper)


# ----------------------------------------------------------------------------
# Fused kernel: wavefront-skewed 2-layer LSTM + MLP head with weak-label skip.
# ----------------------------------------------------------------------------
def fused_kernel(x_ref, wl_ref,
                 wih0_ref, bbig_ref, wbig_ref,
                 w1x_ref, w1w_ref, bh1_ref,
                 w2x_ref, w2w_ref, bh2_ref,
                 w3x_ref, w3w_ref, bh3_ref,
                 out_ref, pre0_ref, *, seq_len, batch):
    f32 = jnp.float32
    bf16 = jnp.bfloat16

    # ---- Prologue 1: layer-0 input projection + both LSTM biases, all T steps.
    # x_ref is time-major flattened bf16: row t*B + b. wih0_big has layer-1 gate
    # columns zeroed; b_big holds b0 in layer-0 columns and b1 in layer-1 columns.
    pre0_ref[...] = (
        jnp.dot(x_ref[...], wih0_ref[...], preferred_element_type=f32)
        + bbig_ref[...])                                      # (T*B, 8H) f32

    # Skew boundary (t=0): the layer-1 half would process "time -1". Force its
    # i-gate pre-activation to -1e9 so sigmoid(i)=0 => c1=0, h1=o*tanh(0)=0,
    # i.e. exactly the zero initial state regardless of the f/o/g biases.
    pre0_ref[0:batch, H:2 * H] = jnp.full((batch, H), -1e9, f32)

    # ---- Prologue 2 (hoisted, loop-invariant): weak-label partials of the head.
    # Issued before the latency-bound recurrence so their MXU latency is hidden.
    wl = wl_ref[...].astype(bf16)
    wl1 = jnp.dot(wl, w1w_ref[...], preferred_element_type=f32) + bh1_ref[...]
    wl2 = jnp.dot(wl, w2w_ref[...], preferred_element_type=f32) + bh2_ref[...]
    wl3 = jnp.dot(wl, w3w_ref[...], preferred_element_type=f32) + bh3_ref[...]

    def fused_step(add_slab, h, c):
        # ONE MXU push per step: (B,2H) bf16 x (2H,8H) bf16 -> (B,8H) f32.
        g = add_slab + jnp.dot(h.astype(bf16), wbig_ref[...],
                               preferred_element_type=f32)
        # Gate-major packing over both layers: [i0 i1 f0 f1 o0 o1 | g0 g1].
        # sigmoid(x) = 0.5*tanh(0.5*x)+0.5 -> one EUP op per vreg (vs exp+recip).
        s = 0.5 * jnp.tanh(0.5 * g[:, :6 * H]) + 0.5          # (B, 6H): i|f|o
        gg = jnp.tanh(g[:, 6 * H:])                           # (B, 2H): g
        c_new = s[:, 2 * H:4 * H] * c + s[:, :2 * H] * gg     # f*c + i*g
        h_new = s[:, 4 * H:6 * H] * jnp.tanh(c_new)           # o*tanh(c')
        return h_new, c_new                                   # [layer0 | layer1]

    def loop_body(t, carry):
        h, c = carry
        row = pl.multiple_of(t * batch, batch)
        return fused_step(pre0_ref[pl.ds(row, batch), :], h, c)

    zero = jnp.zeros((batch, 2 * H), f32)
    unroll = True if seq_len <= 16 else 8
    h, c = jax.lax.fori_loop(0, seq_len, loop_body, (zero, zero), unroll=unroll)

    # Carry after T iterations (wavefront lag): h = [h0(T-1) | h1(T-2)].
    # One peeled trailing step advances layer 1 to time T-1; its layer-0 half is
    # discarded. The additive slab only needs the biases (b_big), never patched.
    h_tail, _ = fused_step(bbig_ref[...], h, c)
    h_cat = jnp.concatenate([h[:, :H], h_tail[:, H:]], axis=1)   # (B, 2H) f32

    # ---- Fused MLP head (eval mode); cat([x, wl]) @ W == x@Wx + wl@Wwl.
    z1 = jnp.maximum(
        jnp.dot(h_cat.astype(bf16), w1x_ref[...], preferred_element_type=f32)
        + wl1, 0.0)                                            # (B, 128)
    # TODO(synk): Dropout(0.3) is train-only; identity in eval forward.
    z2 = jnp.maximum(
        jnp.dot(z1.astype(bf16), w2x_ref[...], preferred_element_type=f32)
        + wl2, 0.0)                                            # (B, Z2_PAD), cols>=48 are 0
    # TODO(synk): Dropout(0.2) is train-only; identity in eval forward.
    out_ref[...] = (
        jnp.dot(z2.astype(bf16), w3x_ref[...], preferred_element_type=f32)
        + wl3)                                                 # (B, OUT_PAD)


def fused_forward(features, weak_labels, params, *, out_dim):
    B, T, D = features.shape
    # Time-major flatten (+ bf16 cast) as one tiny fused XLA copy; kept in the
    # wrapper on purpose (see header note).
    x2d = jnp.transpose(features, (1, 0, 2)).reshape(T * B, D).astype(jnp.bfloat16)

    kernel = functools.partial(fused_kernel, seq_len=T, batch=B)
    vmem = pltpu.MemorySpace.VMEM
    out_pad = pl.pallas_call(
        kernel,
        out_shape=jax.ShapeDtypeStruct((B, OUT_PAD), jnp.float32),
        in_specs=[pl.BlockSpec(memory_space=vmem)] * 14,
        out_specs=pl.BlockSpec(memory_space=vmem),
        scratch_shapes=[pltpu.VMEM((T * B, 8 * H), jnp.float32)],
    )(x2d, weak_labels,
      params["wih0_big"], params["b_big"], params["w_big"],
      params["w1x"], params["w1w"], params["bh1"],
      params["w2x"], params["w2w"], params["bh2"],
      params["w3x"], params["w3w"], params["bh3"])
    return out_pad[:, :out_dim]


@functools.partial(jax.jit, static_argnames=("out_dim",))
def lstm_classifier_skip(features, weak_labels, params, *, out_dim):
    # features: (B, T, in_dim) batch_first; weak_labels: (B, wl_dim)
    return fused_forward(features, weak_labels, params, out_dim=out_dim)


# ----------------------------------------------------------------------------
# Parameter construction (deterministic, PyTorch-style uniform init).
# Raw LSTM weights are (in_features, 4H) with gate columns in PyTorch (i,f,g,o)
# order; `to_big` scatters them into the fused gate-major 8H layout
# [i0 i1 f0 f1 o0 o1 g0 g1]. Head weights are pre-split (x-part / wl-part),
# zero-padded to 128 output lanes and stored bf16.
# ----------------------------------------------------------------------------
def init_params(key, in_dim, wl_dim, out_dim):
    def unif(k, shape, bound):
        return jax.random.uniform(k, shape, jnp.float32, -bound, bound)

    ks = jax.random.split(key, 14)
    kb = 1.0 / jnp.sqrt(float(H))

    raw = {}
    raw["wih0"] = unif(ks[0], (in_dim, 4 * H), kb)
    raw["whh0"] = unif(ks[1], (H, 4 * H), kb)
    raw["b0"] = unif(ks[2], (1, 4 * H), kb) + unif(ks[3], (1, 4 * H), kb)  # b_ih+b_hh
    raw["wih1"] = unif(ks[4], (H, 4 * H), kb)
    raw["whh1"] = unif(ks[5], (H, 4 * H), kb)
    raw["b1"] = unif(ks[6], (1, 4 * H), kb) + unif(ks[7], (1, 4 * H), kb)

    def to_big(w_ifgo, layer):
        """Scatter (in, 4H) columns (PyTorch gate order i,f,g,o) into the fused
        8H layout [i0 i1 f0 f1 o0 o1 g0 g1]; other layer's columns stay zero."""
        i = w_ifgo[:, 0 * H:1 * H]
        f = w_ifgo[:, 1 * H:2 * H]
        g = w_ifgo[:, 2 * H:3 * H]
        o = w_ifgo[:, 3 * H:4 * H]
        out = jnp.zeros((w_ifgo.shape[0], 8 * H), jnp.float32)
        out = out.at[:, 0 * H + layer * H:0 * H + (layer + 1) * H].set(i)
        out = out.at[:, 2 * H + layer * H:2 * H + (layer + 1) * H].set(f)
        out = out.at[:, 4 * H + layer * H:4 * H + (layer + 1) * H].set(o)
        out = out.at[:, 6 * H + layer * H:6 * H + (layer + 1) * H].set(g)
        return out

    p = {}
    p["wih0_big"] = to_big(raw["wih0"], 0).astype(jnp.bfloat16)          # (in, 8H)
    p["b_big"] = to_big(raw["b0"], 0) + to_big(raw["b1"], 1)             # (1, 8H) f32
    p["w_big"] = jnp.concatenate(                                         # (2H, 8H)
        [to_big(raw["whh0"], 0) + to_big(raw["wih1"], 1),                # rows from h0
         to_big(raw["whh1"], 1)],                                        # rows from h1
        axis=0).astype(jnp.bfloat16)

    def linear(kw, kbias, n_x, n_out, pad_out):
        fan_in = n_x + wl_dim
        b = 1.0 / jnp.sqrt(float(fan_in))
        w = unif(kw, (fan_in, n_out), b)          # (in_features, out_features)
        bias = unif(kbias, (1, n_out), b)
        wx, ww = w[:n_x], w[n_x:]                 # torch cat order: [x, weak_labels]
        pad = pad_out - n_out
        if pad:
            wx = jnp.pad(wx, ((0, 0), (0, pad)))
            ww = jnp.pad(ww, ((0, 0), (0, pad)))
            bias_p = jnp.pad(bias, ((0, 0), (0, pad)))
        else:
            bias_p = bias
        return (w, bias), wx.astype(jnp.bfloat16), ww.astype(jnp.bfloat16), bias_p

    raw["head"] = []
    r, p["w1x"], p["w1w"], p["bh1"] = linear(ks[8], ks[9], 2 * H, 128, 128)
    raw["head"].append(r)
    r, p["w2x"], p["w2w"], p["bh2"] = linear(ks[10], ks[11], 128, 48, Z2_PAD)
    raw["head"].append(r)
    r, w3x, p["w3w"], p["bh3"] = linear(ks[12], ks[13], 48, out_dim, OUT_PAD)
    raw["head"].append(r)
    # Pad w3x rows 48 -> Z2_PAD with zeros (padded z2 columns are zero anyway).
    p["w3x"] = jnp.pad(w3x, ((0, Z2_PAD - 48), (0, 0)))
    return p, raw


# ----------------------------------------------------------------------------
# Pure-JAX reference (un-skewed, un-fused) for a correctness sanity check.
# ----------------------------------------------------------------------------
def reference_forward(features, weak_labels, raw):
    B, T, _ = features.shape

    def cell(x, h, c, wih, whh, b):
        g = x @ wih + h @ whh + b                       # cols (i, f, g, o)
        i = jax.nn.sigmoid(g[:, 0 * H:1 * H])
        f = jax.nn.sigmoid(g[:, 1 * H:2 * H])
        gg = jnp.tanh(g[:, 2 * H:3 * H])
        o = jax.nn.sigmoid(g[:, 3 * H:4 * H])
        c = f * c + i * gg
        return o * jnp.tanh(c), c

    h0 = c0 = h1 = c1 = jnp.zeros((B, H), jnp.float32)
    for t in range(T):
        h0, c0 = cell(features[:, t, :], h0, c0, raw["wih0"], raw["whh0"], raw["b0"])
        h1, c1 = cell(h0, h1, c1, raw["wih1"], raw["whh1"], raw["b1"])
    x = jnp.concatenate([h0, h1], axis=1)
    for i, (w, b) in enumerate(raw["head"]):
        x = jnp.concatenate([x, weak_labels], axis=1) @ w + b
        if i < len(raw["head"]) - 1:
            x = jnp.maximum(x, 0.0)
    return x


if __name__ == "__main__":
    B, T, IN_DIM, WL_DIM, OUT_DIM = 8, 8, 16, 4, 8

    key = jax.random.PRNGKey(0)
    k_feat, k_wl, k_param = jax.random.split(key, 3)

    features = jax.random.normal(k_feat, (B, T, IN_DIM), jnp.float32)
    weak_labels = jax.random.normal(k_wl, (B, WL_DIM), jnp.float32)
    params, raw = init_params(k_param, IN_DIM, WL_DIM, OUT_DIM)

    out = lstm_classifier_skip(features, weak_labels, params, out_dim=OUT_DIM)
    jax.block_until_ready(out)
    assert out.shape == (B, OUT_DIM)

    ref = reference_forward(features, weak_labels, raw)
    assert float(jnp.max(jnp.abs(out - ref))) < 0.1, "kernel/reference mismatch"

    print("KERNEL_OK")
</pallas_src>

<mosaic_0001>
module attributes {stable_mosaic.version = 11 : i64} {
  func.func @fused_kernel(%arg0: memref<64x16xbf16, #tpu.memory_space<vmem>>, %arg1: memref<8x4xf32, #tpu.memory_space<vmem>>, %arg2: memref<16x1024xbf16, #tpu.memory_space<vmem>>, %arg3: memref<1x1024xf32, #tpu.memory_space<vmem>>, %arg4: memref<256x1024xbf16, #tpu.memory_space<vmem>>, %arg5: memref<256x128xbf16, #tpu.memory_space<vmem>>, %arg6: memref<4x128xbf16, #tpu.memory_space<vmem>>, %arg7: memref<1x128xf32, #tpu.memory_space<vmem>>, %arg8: memref<128x128xbf16, #tpu.memory_space<vmem>>, %arg9: memref<4x128xbf16, #tpu.memory_space<vmem>>, %arg10: memref<1x128xf32, #tpu.memory_space<vmem>>, %arg11: memref<128x128xbf16, #tpu.memory_space<vmem>>, %arg12: memref<4x128xbf16, #tpu.memory_space<vmem>>, %arg13: memref<1x128xf32, #tpu.memory_space<vmem>>, %arg14: memref<8x128xf32, #tpu.memory_space<vmem>>, %arg15: memref<64x1024xf32, #tpu.memory_space<vmem>>) attributes {dimension_semantics = [], scalar_prefetch = 0 : i64, scratch_operands = 1 : i64, tpu.core_type = #tpu.core_type<tc>} {
    %c0 = arith.constant 0 : index
    %c0_0 = arith.constant 0 : index
    %0 = vector.load %arg0[%c0, %c0_0] : memref<64x16xbf16, #tpu.memory_space<vmem>>, vector<64x16xbf16>
    %c0_1 = arith.constant 0 : index
    %c0_2 = arith.constant 0 : index
    %1 = vector.load %arg2[%c0_1, %c0_2] : memref<16x1024xbf16, #tpu.memory_space<vmem>>, vector<16x1024xbf16>
    %cst = arith.constant dense<0.000000e+00> : vector<64x1024xf32>
    %2 = tpu.matmul %0, %1, %cst {dimension_numbers = #tpu.dot_dimension_numbers<[1], [0], [0], [1], [0, 0, 1, 1], [], []>} : vector<64x16xbf16>, vector<16x1024xbf16>, vector<64x1024xf32> -> vector<64x1024xf32>
    %c0_3 = arith.constant 0 : index
    %c0_4 = arith.constant 0 : index
    %3 = vector.load %arg3[%c0_3, %c0_4] : memref<1x1024xf32, #tpu.memory_space<vmem>>, vector<1x1024xf32>
    %4 = vector.broadcast %3 : vector<1x1024xf32> to vector<64x1024xf32>
    %5 = arith.addf %2, %4 : vector<64x1024xf32>
    %c0_5 = arith.constant 0 : index
    %c0_6 = arith.constant 0 : index
    %6 = vector.load %arg15[%c0_5, %c0_6] : memref<64x1024xf32, #tpu.memory_space<vmem>>, vector<64x1024xf32>
    tpu.vector_store %arg15[%c0_5, %c0_6], %5 {strides = array<i32>} : memref<64x1024xf32, #tpu.memory_space<vmem>>, vector<64x1024xf32>,
    %cst_7 = arith.constant -1.000000e+09 : f32
    %7 = vector.broadcast %cst_7 : f32 to vector<8x128xf32>
    %c0_8 = arith.constant 0 : index
    %c128 = arith.constant 128 : index
    %8 = vector.load %arg15[%c0_8, %c128] : memref<64x1024xf32, #tpu.memory_space<vmem>>, vector<8x128xf32>
    tpu.vector_store %arg15[%c0_8, %c128], %7 {strides = array<i32>} : memref<64x1024xf32, #tpu.memory_space<vmem>>, vector<8x128xf32>,
    %c0_9 = arith.constant 0 : index
    %c0_10 = arith.constant 0 : index
    %9 = vector.load %arg1[%c0_9, %c0_10] : memref<8x4xf32, #tpu.memory_space<vmem>>, vector<8x4xf32>
    %10 = arith.truncf %9 : vector<8x4xf32> to vector<8x4xbf16>
    %c0_11 = arith.constant 0 : index
    %c0_12 = arith.constant 0 : index
    %11 = vector.load %arg6[%c0_11, %c0_12] : memref<4x128xbf16, #tpu.memory_space<vmem>>, vector<4x128xbf16>
    %cst_13 = arith.constant dense<0.000000e+00> : vector<8x128xf32>
    %12 = tpu.matmul %10, %11, %cst_13 {dimension_numbers = #tpu.dot_dimension_numbers<[1], [0], [0], [1], [0, 0, 1, 1], [], []>} : vector<8x4xbf16>, vector<4x128xbf16>, vector<8x128xf32> -> vector<8x128xf32>
    %c0_14 = arith.constant 0 : index
    %c0_15 = arith.constant 0 : index
    %13 = vector.load %arg7[%c0_14, %c0_15] : memref<1x128xf32, #tpu.memory_space<vmem>>, vector<1x128xf32>
    %14 = vector.broadcast %13 : vector<1x128xf32> to vector<8x128xf32>
    %15 = arith.addf %12, %14 : vector<8x128xf32>
    %c0_16 = arith.constant 0 : index
    %c0_17 = arith.constant 0 : index
    %16 = vector.load %arg9[%c0_16, %c0_17] : memref<4x128xbf16, #tpu.memory_space<vmem>>, vector<4x128xbf16>
    %cst_18 = arith.constant dense<0.000000e+00> : vector<8x128xf32>
    %17 = tpu.matmul %10, %16, %cst_18 {dimension_numbers = #tpu.dot_dimension_numbers<[1], [0], [0], [1], [0, 0, 1, 1], [], []>} : vector<8x4xbf16>, vector<4x128xbf16>, vector<8x128xf32> -> vector<8x128xf32>
    %c0_19 = arith.constant 0 : index
    %c0_20 = arith.constant 0 : index
    %18 = vector.load %arg10[%c0_19, %c0_20] : memref<1x128xf32, #tpu.memory_space<vmem>>, vector<1x128xf32>
    %19 = vector.broadcast %18 : vector<1x128xf32> to vector<8x128xf32>
    %20 = arith.addf %17, %19 : vector<8x128xf32>
    %c0_21 = arith.constant 0 : index
    %c0_22 = arith.constant 0 : index
    %21 = vector.load %arg12[%c0_21, %c0_22] : memref<4x128xbf16, #tpu.memory_space<vmem>>, vector<4x128xbf16>
    %cst_23 = arith.constant dense<0.000000e+00> : vector<8x128xf32>
    %22 = tpu.matmul %10, %21, %cst_23 {dimension_numbers = #tpu.dot_dimension_numbers<[1], [0], [0], [1], [0, 0, 1, 1], [], []>} : vector<8x4xbf16>, vector<4x128xbf16>, vector<8x128xf32> -> vector<8x128xf32>
    %c0_24 = arith.constant 0 : index
    %c0_25 = arith.constant 0 : index
    %23 = vector.load %arg13[%c0_24, %c0_25] : memref<1x128xf32, #tpu.memory_space<vmem>>, vector<1x128xf32>
    %24 = vector.broadcast %23 : vector<1x128xf32> to vector<8x128xf32>
    %25 = arith.addf %22, %24 : vector<8x128xf32>
    %cst_26 = arith.constant 0.000000e+00 : f32
    %26 = vector.broadcast %cst_26 : f32 to vector<8x256xf32>
    %c0_i32 = arith.constant 0 : i32
    %c8_i32 = arith.constant 8 : i32
    %27 = arith.muli %c0_i32, %c8_i32 : i32
    %28 = tpu.assume_multiple %27, 8 : i32
    %29 = arith.index_cast %28 : i32 to index
    %c0_27 = arith.constant 0 : index
    %30 = vector.load %arg15[%29, %c0_27] : memref<64x1024xf32, #tpu.memory_space<vmem>>, vector<8x1024xf32>
    %31 = arith.truncf %26 : vector<8x256xf32> to vector<8x256xbf16>
    %c0_28 = arith.constant 0 : index
    %c0_29 = arith.constant 0 : index
    %32 = vector.load %arg4[%c0_28, %c0_29] : memref<256x1024xbf16, #tpu.memory_space<vmem>>, vector<256x1024xbf16>
    %cst_30 = arith.constant dense<0.000000e+00> : vector<8x1024xf32>
    %33 = tpu.matmul %31, %32, %cst_30 {dimension_numbers = #tpu.dot_dimension_numbers<[1], [0], [0], [1], [0, 0, 1, 1], [], []>} : vector<8x256xbf16>, vector<256x1024xbf16>, vector<8x1024xf32> -> vector<8x1024xf32>
    %34 = arith.addf %30, %33 : vector<8x1024xf32>
    %35 = vector.extract_strided_slice %34 {offsets = [0, 0], sizes = [8, 768], strides = [1, 1]} : vector<8x1024xf32> to vector<8x768xf32>
    %cst_31 = arith.constant 5.000000e-01 : f32
    %36 = vector.broadcast %cst_31 : f32 to vector<8x768xf32>
    %37 = arith.mulf %36, %35 : vector<8x768xf32>
    %38 = math.tanh %37 : vector<8x768xf32>
    %cst_32 = arith.constant 5.000000e-01 : f32
    %39 = vector.broadcast %cst_32 : f32 to vector<8x768xf32>
    %40 = arith.mulf %39, %38 : vector<8x768xf32>
    %cst_33 = arith.constant 5.000000e-01 : f32
    %41 = vector.broadcast %cst_33 : f32 to vector<8x768xf32>
    %42 = arith.addf %40, %41 : vector<8x768xf32>
    %43 = vector.extract_strided_slice %34 {offsets = [0, 768], sizes = [8, 256], strides = [1, 1]} : vector<8x1024xf32> to vector<8x256xf32>
    %44 = math.tanh %43 : vector<8x256xf32>
    %45 = vector.extract_strided_slice %42 {offsets = [0, 256], sizes = [8, 256], strides = [1, 1]} : vector<8x768xf32> to vector<8x256xf32>
    %46 = arith.mulf %45, %26 : vector<8x256xf32>
    %47 = vector.extract_strided_slice %42 {offsets = [0, 0], sizes = [8, 256], strides = [1, 1]} : vector<8x768xf32> to vector<8x256xf32>
    %48 = arith.mulf %47, %44 : vector<8x256xf32>
    %49 = arith.addf %46, %48 : vector<8x256xf32>
    %50 = vector.extract_strided_slice %42 {offsets = [0, 512], sizes = [8, 256], strides = [1, 1]} : vector<8x768xf32> to vector<8x256xf32>
    %51 = math.tanh %49 : vector<8x256xf32>
    %52 = arith.mulf %50, %51 : vector<8x256xf32>
    %c1_i32 = arith.constant 1 : i32
    %c8_i32_34 = arith.constant 8 : i32
    %53 = arith.muli %c1_i32, %c8_i32_34 : i32
    %54 = tpu.assume_multiple %53, 8 : i32
    %55 = arith.index_cast %54 : i32 to index
    %c0_35 = arith.constant 0 : index
    %56 = vector.load %arg15[%55, %c0_35] : memref<64x1024xf32, #tpu.memory_space<vmem>>, vector<8x1024xf32>
    %57 = arith.truncf %52 : vector<8x256xf32> to vector<8x256xbf16>
    %c0_36 = arith.constant 0 : index
    %c0_37 = arith.constant 0 : index
    %58 = vector.load %arg4[%c0_36, %c0_37] : memref<256x1024xbf16, #tpu.memory_space<vmem>>, vector<256x1024xbf16>
    %cst_38 = arith.constant dense<0.000000e+00> : vector<8x1024xf32>
    %59 = tpu.matmul %57, %58, %cst_38 {dimension_numbers = #tpu.dot_dimension_numbers<[1], [0], [0], [1], [0, 0, 1, 1], [], []>} : vector<8x256xbf16>, vector<256x1024xbf16>, vector<8x1024xf32> -> vector<8x1024xf32>
    %60 = arith.addf %56, %59 : vector<8x1024xf32>
    %61 = vector.extract_strided_slice %60 {offsets = [0, 0], sizes = [8, 768], strides = [1, 1]} : vector<8x1024xf32> to vector<8x768xf32>
    %cst_39 = arith.constant 5.000000e-01 : f32
    %62 = vector.broadcast %cst_39 : f32 to vector<8x768xf32>
    %63 = arith.mulf %62, %61 : vector<8x768xf32>
    %64 = math.tanh %63 : vector<8x768xf32>
    %cst_40 = arith.constant 5.000000e-01 : f32
    %65 = vector.broadcast %cst_40 : f32 to vector<8x768xf32>
    %66 = arith.mulf %65, %64 : vector<8x768xf32>
    %cst_41 = arith.constant 5.000000e-01 : f32
    %67 = vector.broadcast %cst_41 : f32 to vector<8x768xf32>
    %68 = arith.addf %66, %67 : vector<8x768xf32>
    %69 = vector.extract_strided_slice %60 {offsets = [0, 768], sizes = [8, 256], strides = [1, 1]} : vector<8x1024xf32> to vector<8x256xf32>
    %70 = math.tanh %69 : vector<8x256xf32>
    %71 = vector.extract_strided_slice %68 {offsets = [0, 256], sizes = [8, 256], strides = [1, 1]} : vector<8x768xf32> to vector<8x256xf32>
    %72 = arith.mulf %71, %49 : vector<8x256xf32>
    %73 = vector.extract_strided_slice %68 {offsets = [0, 0], sizes = [8, 256], strides = [1, 1]} : vector<8x768xf32> to vector<8x256xf32>
    %74 = arith.mulf %73, %70 : vector<8x256xf32>
    %75 = arith.addf %72, %74 : vector<8x256xf32>
    %76 = vector.extract_strided_slice %68 {offsets = [0, 512], sizes = [8, 256], strides = [1, 1]} : vector<8x768xf32> to vector<8x256xf32>
    %77 = math.tanh %75 : vector<8x256xf32>
    %78 = arith.mulf %76, %77 : vector<8x256xf32>
    %c2_i32 = arith.constant 2 : i32
    %c8_i32_42 = arith.constant 8 : i32
    %79 = arith.muli %c2_i32, %c8_i32_42 : i32
    %80 = tpu.assume_multiple %79, 8 : i32
    %81 = arith.index_cast %80 : i32 to index
    %c0_43 = arith.constant 0 : index
    %82 = vector.load %arg15[%81, %c0_43] : memref<64x1024xf32, #tpu.memory_space<vmem>>, vector<8x1024xf32>
    %83 = arith.truncf %78 : vector<8x256xf32> to vector<8x256xbf16>
    %c0_44 = arith.constant 0 : index
    %c0_45 = arith.constant 0 : index
    %84 = vector.load %arg4[%c0_44, %c0_45] : memref<256x1024xbf16, #tpu.memory_space<vmem>>, vector<256x1024xbf16>
    %cst_46 = arith.constant dense<0.000000e+00> : vector<8x1024xf32>
    %85 = tpu.matmul %83, %84, %cst_46 {dimension_numbers = #tpu.dot_dimension_numbers<[1], [0], [0], [1], [0, 0, 1, 1], [], []>} : vector<8x256xbf16>, vector<256x1024xbf16>, vector<8x1024xf32> -> vector<8x1024xf32>
    %86 = arith.addf %82, %85 : vector<8x1024xf32>
    %87 = vector.extract_strided_slice %86 {offsets = [0, 0], sizes = [8, 768], strides = [1, 1]} : vector<8x1024xf32> to vector<8x768xf32>
    %cst_47 = arith.constant 5.000000e-01 : f32
    %88 = vector.broadcast %cst_47 : f32 to vector<8x768xf32>
    %89 = arith.mulf %88, %87 : vector<8x768xf32>
    %90 = math.tanh %89 : vector<8x768xf32>
    %cst_48 = arith.constant 5.000000e-01 : f32
    %91 = vector.broadcast %cst_48 : f32 to vector<8x768xf32>
    %92 = arith.mulf %91, %90 : vector<8x768xf32>
    %cst_49 = arith.constant 5.000000e-01 : f32
    %93 = vector.broadcast %cst_49 : f32 to vector<8x768xf32>
    %94 = arith.addf %92, %93 : vector<8x768xf32>
    %95 = vector.extract_strided_slice %86 {offsets = [0, 768], sizes = [8, 256], strides = [1, 1]} : vector<8x1024xf32> to vector<8x256xf32>
    %96 = math.tanh %95 : vector<8x256xf32>
    %97 = vector.extract_strided_slice %94 {offsets = [0, 256], sizes = [8, 256], strides = [1, 1]} : vector<8x768xf32> to vector<8x256xf32>
    %98 = arith.mulf %97, %75 : vector<8x256xf32>
    %99 = vector.extract_strided_slice %94 {offsets = [0, 0], sizes = [8, 256], strides = [1, 1]} : vector<8x768xf32> to vector<8x256xf32>
    %100 = arith.mulf %99, %96 : vector<8x256xf32>
    %101 = arith.addf %98, %100 : vector<8x256xf32>
    %102 = vector.extract_strided_slice %94 {offsets = [0, 512], sizes = [8, 256], strides = [1, 1]} : vector<8x768xf32> to vector<8x256xf32>
    %103 = math.tanh %101 : vector<8x256xf32>
    %104 = arith.mulf %102, %103 : vector<8x256xf32>
    %c3_i32 = arith.constant 3 : i32
    %c8_i32_50 = arith.constant 8 : i32
    %105 = arith.muli %c3_i32, %c8_i32_50 : i32
    %106 = tpu.assume_multiple %105, 8 : i32
    %107 = arith.index_cast %106 : i32 to index
    %c0_51 = arith.constant 0 : index
    %108 = vector.load %arg15[%107, %c0_51] : memref<64x1024xf32, #tpu.memory_space<vmem>>, vector<8x1024xf32>
    %109 = arith.truncf %104 : vector<8x256xf32> to vector<8x256xbf16>
    %c0_52 = arith.constant 0 : index
    %c0_53 = arith.constant 0 : index
    %110 = vector.load %arg4[%c0_52, %c0_53] : memref<256x1024xbf16, #tpu.memory_space<vmem>>, vector<256x1024xbf16>
    %cst_54 = arith.constant dense<0.000000e+00> : vector<8x1024xf32>
    %111 = tpu.matmul %109, %110, %cst_54 {dimension_numbers = #tpu.dot_dimension_numbers<[1], [0], [0], [1], [0, 0, 1, 1], [], []>} : vector<8x256xbf16>, vector<256x1024xbf16>, vector<8x1024xf32> -> vector<8x1024xf32>
    %112 = arith.addf %108, %111 : vector<8x1024xf32>
    %113 = vector.extract_strided_slice %112 {offsets = [0, 0], sizes = [8, 768], strides = [1, 1]} : vector<8x1024xf32> to vector<8x768xf32>
    %cst_55 = arith.constant 5.000000e-01 : f32
    %114 = vector.broadcast %cst_55 : f32 to vector<8x768xf32>
    %115 = arith.mulf %114, %113 : vector<8x768xf32>
    %116 = math.tanh %115 : vector<8x768xf32>
    %cst_56 = arith.constant 5.000000e-01 : f32
    %117 = vector.broadcast %cst_56 : f32 to vector<8x768xf32>
    %118 = arith.mulf %117, %116 : vector<8x768xf32>
    %cst_57 = arith.constant 5.000000e-01 : f32
    %119 = vector.broadcast %cst_57 : f32 to vector<8x768xf32>
    %120 = arith.addf %118, %119 : vector<8x768xf32>
    %121 = vector.extract_strided_slice %112 {offsets = [0, 768], sizes = [8, 256], strides = [1, 1]} : vector<8x1024xf32> to vector<8x256xf32>
    %122 = math.tanh %121 : vector<8x256xf32>
    %123 = vector.extract_strided_slice %120 {offsets = [0, 256], sizes = [8, 256], strides = [1, 1]} : vector<8x768xf32> to vector<8x256xf32>
    %124 = arith.mulf %123, %101 : vector<8x256xf32>
    %125 = vector.extract_strided_slice %120 {offsets = [0, 0], sizes = [8, 256], strides = [1, 1]} : vector<8x768xf32> to vector<8x256xf32>
    %126 = arith.mulf %125, %122 : vector<8x256xf32>
    %127 = arith.addf %124, %126 : vector<8x256xf32>
    %128 = vector.extract_strided_slice %120 {offsets = [0, 512], sizes = [8, 256], strides = [1, 1]} : vector<8x768xf32> to vector<8x256xf32>
    %129 = math.tanh %127 : vector<8x256xf32>
    %130 = arith.mulf %128, %129 : vector<8x256xf32>
    %c4_i32 = arith.constant 4 : i32
    %c8_i32_58 = arith.constant 8 : i32
    %131 = arith.muli %c4_i32, %c8_i32_58 : i32
    %132 = tpu.assume_multiple %131, 8 : i32
    %133 = arith.index_cast %132 : i32 to index
    %c0_59 = arith.constant 0 : index
    %134 = vector.load %arg15[%133, %c0_59] : memref<64x1024xf32, #tpu.memory_space<vmem>>, vector<8x1024xf32>
    %135 = arith.truncf %130 : vector<8x256xf32> to vector<8x256xbf16>
    %c0_60 = arith.constant 0 : index
    %c0_61 = arith.constant 0 : index
    %136 = vector.load %arg4[%c0_60, %c0_61] : memref<256x1024xbf16, #tpu.memory_space<vmem>>, vector<256x1024xbf16>
    %cst_62 = arith.constant dense<0.000000e+00> : vector<8x1024xf32>
    %137 = tpu.matmul %135, %136, %cst_62 {dimension_numbers = #tpu.dot_dimension_numbers<[1], [0], [0], [1], [0, 0, 1, 1], [], []>} : vector<8x256xbf16>, vector<256x1024xbf16>, vector<8x1024xf32> -> vector<8x1024xf32>
    %138 = arith.addf %134, %137 : vector<8x1024xf32>
    %139 = vector.extract_strided_slice %138 {offsets = [0, 0], sizes = [8, 768], strides = [1, 1]} : vector<8x1024xf32> to vector<8x768xf32>
    %cst_63 = arith.constant 5.000000e-01 : f32
    %140 = vector.broadcast %cst_63 : f32 to vector<8x768xf32>
    %141 = arith.mulf %140, %139 : vector<8x768xf32>
    %142 = math.tanh %141 : vector<8x768xf32>
    %cst_64 = arith.constant 5.000000e-01 : f32
    %143 = vector.broadcast %cst_64 : f32 to vector<8x768xf32>
    %144 = arith.mulf %143, %142 : vector<8x768xf32>
    %cst_65 = arith.constant 5.000000e-01 : f32
    %145 = vector.broadcast %cst_65 : f32 to vector<8x768xf32>
    %146 = arith.addf %144, %145 : vector<8x768xf32>
    %147 = vector.extract_strided_slice %138 {offsets = [0, 768], sizes = [8, 256], strides = [1, 1]} : vector<8x1024xf32> to vector<8x256xf32>
    %148 = math.tanh %147 : vector<8x256xf32>
    %149 = vector.extract_strided_slice %146 {offsets = [0, 256], sizes = [8, 256], strides = [1, 1]} : vector<8x768xf32> to vector<8x256xf32>
    %150 = arith.mulf %149, %127 : vector<8x256xf32>
    %151 = vector.extract_strided_slice %146 {offsets = [0, 0], sizes = [8, 256], strides = [1, 1]} : vector<8x768xf32> to vector<8x256xf32>
    %152 = arith.mulf %151, %148 : vector<8x256xf32>
    %153 = arith.addf %150, %152 : vector<8x256xf32>
    %154 = vector.extract_strided_slice %146 {offsets = [0, 512], sizes = [8, 256], strides = [1, 1]} : vector<8x768xf32> to vector<8x256xf32>
    %155 = math.tanh %153 : vector<8x256xf32>
    %156 = arith.mulf %154, %155 : vector<8x256xf32>
    %c5_i32 = arith.constant 5 : i32
    %c8_i32_66 = arith.constant 8 : i32
    %157 = arith.muli %c5_i32, %c8_i32_66 : i32
    %158 = tpu.assume_multiple %157, 8 : i32
    %159 = arith.index_cast %158 : i32 to index
    %c0_67 = arith.constant 0 : index
    %160 = vector.load %arg15[%159, %c0_67] : memref<64x1024xf32, #tpu.memory_space<vmem>>, vector<8x1024xf32>
    %161 = arith.truncf %156 : vector<8x256xf32> to vector<8x256xbf16>
    %c0_68 = arith.constant 0 : index
    %c0_69 = arith.constant 0 : index
    %162 = vector.load %arg4[%c0_68, %c0_69] : memref<256x1024xbf16, #tpu.memory_space<vmem>>, vector<256x1024xbf16>
    %cst_70 = arith.constant dense<0.000000e+00> : vector<8x1024xf32>
    %163 = tpu.matmul %161, %162, %cst_70 {dimension_numbers = #tpu.dot_dimension_numbers<[1], [0], [0], [1], [0, 0, 1, 1], [], []>} : vector<8x256xbf16>, vector<256x1024xbf16>, vector<8x1024xf32> -> vector<8x1024xf32>
    %164 = arith.addf %160, %163 : vector<8x1024xf32>
    %165 = vector.extract_strided_slice %164 {offsets = [0, 0], sizes = [8, 768], strides = [1, 1]} : vector<8x1024xf32> to vector<8x768xf32>
    %cst_71 = arith.constant 5.000000e-01 : f32
    %166 = vector.broadcast %cst_71 : f32 to vector<8x768xf32>
    %167 = arith.mulf %166, %165 : vector<8x768xf32>
    %168 = math.tanh %167 : vector<8x768xf32>
    %cst_72 = arith.constant 5.000000e-01 : f32
    %169 = vector.broadcast %cst_72 : f32 to vector<8x768xf32>
    %170 = arith.mulf %169, %168 : vector<8x768xf32>
    %cst_73 = arith.constant 5.000000e-01 : f32
    %171 = vector.broadcast %cst_73 : f32 to vector<8x768xf32>
    %172 = arith.addf %170, %171 : vector<8x768xf32>
    %173 = vector.extract_strided_slice %164 {offsets = [0, 768], sizes = [8, 256], strides = [1, 1]} : vector<8x1024xf32> to vector<8x256xf32>
    %174 = math.tanh %173 : vector<8x256xf32>
    %175 = vector.extract_strided_slice %172 {offsets = [0, 256], sizes = [8, 256], strides = [1, 1]} : vector<8x768xf32> to vector<8x256xf32>
    %176 = arith.mulf %175, %153 : vector<8x256xf32>
    %177 = vector.extract_strided_slice %172 {offsets = [0, 0], sizes = [8, 256], strides = [1, 1]} : vector<8x768xf32> to vector<8x256xf32>
    %178 = arith.mulf %177, %174 : vector<8x256xf32>
    %179 = arith.addf %176, %178 : vector<8x256xf32>
    %180 = vector.extract_strided_slice %172 {offsets = [0, 512], sizes = [8, 256], strides = [1, 1]} : vector<8x768xf32> to vector<8x256xf32>
    %181 = math.tanh %179 : vector<8x256xf32>
    %182 = arith.mulf %180, %181 : vector<8x256xf32>
    %c6_i32 = arith.constant 6 : i32
    %c8_i32_74 = arith.constant 8 : i32
    %183 = arith.muli %c6_i32, %c8_i32_74 : i32
    %184 = tpu.assume_multiple %183, 8 : i32
    %185 = arith.index_cast %184 : i32 to index
    %c0_75 = arith.constant 0 : index
    %186 = vector.load %arg15[%185, %c0_75] : memref<64x1024xf32, #tpu.memory_space<vmem>>, vector<8x1024xf32>
    %187 = arith.truncf %182 : vector<8x256xf32> to vector<8x256xbf16>
    %c0_76 = arith.constant 0 : index
    %c0_77 = arith.constant 0 : index
    %188 = vector.load %arg4[%c0_76, %c0_77] : memref<256x1024xbf16, #tpu.memory_space<vmem>>, vector<256x1024xbf16>
    %cst_78 = arith.constant dense<0.000000e+00> : vector<8x1024xf32>
    %189 = tpu.matmul %187, %188, %cst_78 {dimension_numbers = #tpu.dot_dimension_numbers<[1], [0], [0], [1], [0, 0, 1, 1], [], []>} : vector<8x256xbf16>, vector<256x1024xbf16>, vector<8x1024xf32> -> vector<8x1024xf32>
    %190 = arith.addf %186, %189 : vector<8x1024xf32>
    %191 = vector.extract_strided_slice %190 {offsets = [0, 0], sizes = [8, 768], strides = [1, 1]} : vector<8x1024xf32> to vector<8x768xf32>
    %cst_79 = arith.constant 5.000000e-01 : f32
    %192 = vector.broadcast %cst_79 : f32 to vector<8x768xf32>
    %193 = arith.mulf %192, %191 : vector<8x768xf32>
    %194 = math.tanh %193 : vector<8x768xf32>
    %cst_80 = arith.constant 5.000000e-01 : f32
    %195 = vector.broadcast %cst_80 : f32 to vector<8x768xf32>
    %196 = arith.mulf %195, %194 : vector<8x768xf32>
    %cst_81 = arith.constant 5.000000e-01 : f32
    %197 = vector.broadcast %cst_81 : f32 to vector<8x768xf32>
    %198 = arith.addf %196, %197 : vector<8x768xf32>
    %199 = vector.extract_strided_slice %190 {offsets = [0, 768], sizes = [8, 256], strides = [1, 1]} : vector<8x1024xf32> to vector<8x256xf32>
    %200 = math.tanh %199 : vector<8x256xf32>
    %201 = vector.extract_strided_slice %198 {offsets = [0, 256], sizes = [8, 256], strides = [1, 1]} : vector<8x768xf32> to vector<8x256xf32>
    %202 = arith.mulf %201, %179 : vector<8x256xf32>
    %203 = vector.extract_strided_slice %198 {offsets = [0, 0], sizes = [8, 256], strides = [1, 1]} : vector<8x768xf32> to vector<8x256xf32>
    %204 = arith.mulf %203, %200 : vector<8x256xf32>
    %205 = arith.addf %202, %204 : vector<8x256xf32>
    %206 = vector.extract_strided_slice %198 {offsets = [0, 512], sizes = [8, 256], strides = [1, 1]} : vector<8x768xf32> to vector<8x256xf32>
    %207 = math.tanh %205 : vector<8x256xf32>
    %208 = arith.mulf %206, %207 : vector<8x256xf32>
    %c7_i32 = arith.constant 7 : i32
    %c8_i32_82 = arith.constant 8 : i32
    %209 = arith.muli %c7_i32, %c8_i32_82 : i32
    %210 = tpu.assume_multiple %209, 8 : i32
    %211 = arith.index_cast %210 : i32 to index
    %c0_83 = arith.constant 0 : index
    %212 = vector.load %arg15[%211, %c0_83] : memref<64x1024xf32, #tpu.memory_space<vmem>>, vector<8x1024xf32>
    %213 = arith.truncf %208 : vector<8x256xf32> to vector<8x256xbf16>
    %c0_84 = arith.constant 0 : index
    %c0_85 = arith.constant 0 : index
    %214 = vector.load %arg4[%c0_84, %c0_85] : memref<256x1024xbf16, #tpu.memory_space<vmem>>, vector<256x1024xbf16>
    %cst_86 = arith.constant dense<0.000000e+00> : vector<8x1024xf32>
    %215 = tpu.matmul %213, %214, %cst_86 {dimension_numbers = #tpu.dot_dimension_numbers<[1], [0], [0], [1], [0, 0, 1, 1], [], []>} : vector<8x256xbf16>, vector<256x1024xbf16>, vector<8x1024xf32> -> vector<8x1024xf32>
    %216 = arith.addf %212, %215 : vector<8x1024xf32>
    %217 = vector.extract_strided_slice %216 {offsets = [0, 0], sizes = [8, 768], strides = [1, 1]} : vector<8x1024xf32> to vector<8x768xf32>
    %cst_87 = arith.constant 5.000000e-01 : f32
    %218 = vector.broadcast %cst_87 : f32 to vector<8x768xf32>
    %219 = arith.mulf %218, %217 : vector<8x768xf32>
    %220 = math.tanh %219 : vector<8x768xf32>
    %cst_88 = arith.constant 5.000000e-01 : f32
    %221 = vector.broadcast %cst_88 : f32 to vector<8x768xf32>
    %222 = arith.mulf %221, %220 : vector<8x768xf32>
    %cst_89 = arith.constant 5.000000e-01 : f32
    %223 = vector.broadcast %cst_89 : f32 to vector<8x768xf32>
    %224 = arith.addf %222, %223 : vector<8x768xf32>
    %225 = vector.extract_strided_slice %216 {offsets = [0, 768], sizes = [8, 256], strides = [1, 1]} : vector<8x1024xf32> to vector<8x256xf32>
    %226 = math.tanh %225 : vector<8x256xf32>
    %227 = vector.extract_strided_slice %224 {offsets = [0, 256], sizes = [8, 256], strides = [1, 1]} : vector<8x768xf32> to vector<8x256xf32>
    %228 = arith.mulf %227, %205 : vector<8x256xf32>
    %229 = vector.extract_strided_slice %224 {offsets = [0, 0], sizes = [8, 256], strides = [1, 1]} : vector<8x768xf32> to vector<8x256xf32>
    %230 = arith.mulf %229, %226 : vector<8x256xf32>
    %231 = arith.addf %228, %230 : vector<8x256xf32>
    %232 = vector.extract_strided_slice %224 {offsets = [0, 512], sizes = [8, 256], strides = [1, 1]} : vector<8x768xf32> to vector<8x256xf32>
    %233 = math.tanh %231 : vector<8x256xf32>
    %234 = arith.mulf %232, %233 : vector<8x256xf32>
    %c8_i32_90 = arith.constant 8 : i32
    %c0_91 = arith.constant 0 : index
    %c0_92 = arith.constant 0 : index
    %235 = vector.load %arg3[%c0_91, %c0_92] : memref<1x1024xf32, #tpu.memory_space<vmem>>, vector<1x1024xf32>
    %236 = arith.truncf %234 : vector<8x256xf32> to vector<8x256xbf16>
    %c0_93 = arith.constant 0 : index
    %c0_94 = arith.constant 0 : index
    %237 = vector.load %arg4[%c0_93, %c0_94] : memref<256x1024xbf16, #tpu.memory_space<vmem>>, vector<256x1024xbf16>
    %cst_95 = arith.constant dense<0.000000e+00> : vector<8x1024xf32>
    %238 = tpu.matmul %236, %237, %cst_95 {dimension_numbers = #tpu.dot_dimension_numbers<[1], [0], [0], [1], [0, 0, 1, 1], [], []>} : vector<8x256xbf16>, vector<256x1024xbf16>, vector<8x1024xf32> -> vector<8x1024xf32>
    %239 = vector.broadcast %235 : vector<1x1024xf32> to vector<8x1024xf32>
    %240 = arith.addf %239, %238 : vector<8x1024xf32>
    %241 = vector.extract_strided_slice %240 {offsets = [0, 0], sizes = [8, 768], strides = [1, 1]} : vector<8x1024xf32> to vector<8x768xf32>
    %cst_96 = arith.constant 5.000000e-01 : f32
    %242 = vector.broadcast %cst_96 : f32 to vector<8x768xf32>
    %243 = arith.mulf %242, %241 : vector<8x768xf32>
    %244 = math.tanh %243 : vector<8x768xf32>
    %cst_97 = arith.constant 5.000000e-01 : f32
    %245 = vector.broadcast %cst_97 : f32 to vector<8x768xf32>
    %246 = arith.mulf %245, %244 : vector<8x768xf32>
    %cst_98 = arith.constant 5.000000e-01 : f32
    %247 = vector.broadcast %cst_98 : f32 to vector<8x768xf32>
    %248 = arith.addf %246, %247 : vector<8x768xf32>
    %249 = vector.extract_strided_slice %240 {offsets = [0, 768], sizes = [8, 256], strides = [1, 1]} : vector<8x1024xf32> to vector<8x256xf32>
    %250 = math.tanh %249 : vector<8x256xf32>
    %251 = vector.extract_strided_slice %248 {offsets = [0, 256], sizes = [8, 256], strides = [1, 1]} : vector<8x768xf32> to vector<8x256xf32>
    %252 = arith.mulf %251, %231 : vector<8x256xf32>
    %253 = vector.extract_strided_slice %248 {offsets = [0, 0], sizes = [8, 256], strides = [1, 1]} : vector<8x768xf32> to vector<8x256xf32>
    %254 = arith.mulf %253, %250 : vector<8x256xf32>
    %255 = arith.addf %252, %254 : vector<8x256xf32>
    %256 = vector.extract_strided_slice %248 {offsets = [0, 512], sizes = [8, 256], strides = [1, 1]} : vector<8x768xf32> to vector<8x256xf32>
    %257 = math.tanh %255 : vector<8x256xf32>
    %258 = arith.mulf %256, %257 : vector<8x256xf32>
    %259 = vector.extract_strided_slice %234 {offsets = [0, 0], sizes = [8, 128], strides = [1, 1]} : vector<8x256xf32> to vector<8x128xf32>
    %260 = vector.extract_strided_slice %258 {offsets = [0, 128], sizes = [8, 128], strides = [1, 1]} : vector<8x256xf32> to vector<8x128xf32>
    %261 = tpu.concatenate %259, %260 in 1 : vector<8x128xf32>, vector<8x128xf32> -> vector<8x256xf32>
    %262 = arith.truncf %261 : vector<8x256xf32> to vector<8x256xbf16>
    %c0_99 = arith.constant 0 : index
    %c0_100 = arith.constant 0 : index
    %263 = vector.load %arg5[%c0_99, %c0_100] : memref<256x128xbf16, #tpu.memory_space<vmem>>, vector<256x128xbf16>
    %cst_101 = arith.constant dense<0.000000e+00> : vector<8x128xf32>
    %264 = tpu.matmul %262, %263, %cst_101 {dimension_numbers = #tpu.dot_dimension_numbers<[1], [0], [0], [1], [0, 0, 1, 1], [], []>} : vector<8x256xbf16>, vector<256x128xbf16>, vector<8x128xf32> -> vector<8x128xf32>
    %265 = arith.addf %264, %15 : vector<8x128xf32>
    %cst_102 = arith.constant 0.000000e+00 : f32
    %266 = vector.broadcast %cst_102 : f32 to vector<8x128xf32>
    %267 = arith.maximumf %265, %266 : vector<8x128xf32>
    %268 = arith.truncf %267 : vector<8x128xf32> to vector<8x128xbf16>
    %c0_103 = arith.constant 0 : index
    %c0_104 = arith.constant 0 : index
    %269 = vector.load %arg8[%c0_103, %c0_104] : memref<128x128xbf16, #tpu.memory_space<vmem>>, vector<128x128xbf16>
    %cst_105 = arith.constant dense<0.000000e+00> : vector<8x128xf32>
    %270 = tpu.matmul %268, %269, %cst_105 {dimension_numbers = #tpu.dot_dimension_numbers<[1], [0], [0], [1], [0, 0, 1, 1], [], []>} : vector<8x128xbf16>, vector<128x128xbf16>, vector<8x128xf32> -> vector<8x128xf32>
    %271 = arith.addf %270, %20 : vector<8x128xf32>
    %cst_106 = arith.constant 0.000000e+00 : f32
    %272 = vector.broadcast %cst_106 : f32 to vector<8x128xf32>
    %273 = arith.maximumf %271, %272 : vector<8x128xf32>
    %274 = arith.truncf %273 : vector<8x128xf32> to vector<8x128xbf16>
    %c0_107 = arith.constant 0 : index
    %c0_108 = arith.constant 0 : index
    %275 = vector.load %arg11[%c0_107, %c0_108] : memref<128x128xbf16, #tpu.memory_space<vmem>>, vector<128x128xbf16>
    %cst_109 = arith.constant dense<0.000000e+00> : vector<8x128xf32>
    %276 = tpu.matmul %274, %275, %cst_109 {dimension_numbers = #tpu.dot_dimension_numbers<[1], [0], [0], [1], [0, 0, 1, 1], [], []>} : vector<8x128xbf16>, vector<128x128xbf16>, vector<8x128xf32> -> vector<8x128xf32>
    %277 = arith.addf %276, %25 : vector<8x128xf32>
    %c0_110 = arith.constant 0 : index
    %c0_111 = arith.constant 0 : index
    %278 = vector.load %arg14[%c0_110, %c0_111] : memref<8x128xf32, #tpu.memory_space<vmem>>, vector<8x128xf32>
    tpu.vector_store %arg14[%c0_110, %c0_111], %277 {strides = array<i32>} : memref<8x128xf32, #tpu.memory_space<vmem>>, vector<8x128xf32>,
    return
  }
}

</mosaic_0001>

<bundles_post_ra>
// kernel: lstm_classifier_skip.1
= control target key start
LH: loop header
LB: loop body
LE: loop exit
PB: predicated region body
PF: predicated region fallthrough
CT: control target
= control target key end

     0   :  { %19 = vsyncpa [#allocation4], 0  ;;  %s6636_s0 = inlined_call_operand.vmem [shape: bf16[64,16], index: 0, kind: input, shape index: {}]   ;;  %s6637_s1 = inlined_call_operand.vmem [shape: f32[8,4], index: 1, kind: input, shape index: {}]   ;;  %s6638_s2 = inlined_call_operand.hbm [shape: bf16[16,1024], index: 2, kind: input, shape index: {}]   ;;  %s6639_s3 = inlined_call_operand.vmem [shape: f32[1,1024], index: 3, kind: input, shape index: {}]   ;;  %s6640_s4 = inlined_call_operand.hbm [shape: bf16[256,1024], index: 4, kind: input, shape index: {}]   ;;  %s6641_s5 = inlined_call_operand.vmem [shape: bf16[256,128], index: 5, kind: input, shape index: {}]   ;;  %s6642_s6 = inlined_call_operand.vmem [shape: bf16[4,128], index: 6, kind: input, shape index: {}]   ;;  %s6643_s7 = inlined_call_operand.vmem [shape: f32[1,128], index: 7, kind: input, shape index: {}]   ;;  %s6644_s8 = inlined_call_operand.hbm [shape: bf16[128,128], index: 8, kind: input, shape index: {}]   ;;  %s6645_s9 = inlined_call_operand.vmem [shape: bf16[4,128], index: 9, kind: input, shape index: {}]   ;;  %s6646_s10 = inlined_call_operand.vmem [shape: f32[1,128], index: 10, kind: input, shape index: {}]   ;;  %s6647_s11 = inlined_call_operand.hbm [shape: bf16[128,128], index: 11, kind: input, shape index: {}]   ;;  %s6648_s12 = inlined_call_operand.vmem [shape: bf16[4,128], index: 12, kind: input, shape index: {}]   ;;  %s6649_s13 = inlined_call_operand.vmem [shape: f32[1,128], index: 13, kind: input, shape index: {}]   ;;  %s6650_s14 = inlined_call_operand.hbm [shape: f32[8,128], index: 14, kind: output, shape index: {}]  }
   0x1   :  { %20 = vsyncpa [#allocation7], 0 }
   0x2   :  { %21 = vsyncpa [#allocation10], 0 }
   0x3   :  { %22 = vsyncpa [#allocation5], 0  ;;  %s4524_s29 = smov [#allocation6]   ;;  %s4525_s15 = smov [#allocation3]  }
   0x4   :  { %s46_s30 = sshll.u32 %s4524_s29, 4  ;;  %s32_s16 = sshll.u32 %s4525_s15, 4  ;;  %s47_s30 = int_to_ptr.vmem [resolvable:$true] %s46_s30  ;;  %s33_s16 = int_to_ptr.vmem [resolvable:$true] %s32_s16 }
   0x5   :  { %s4424_s17 = scalar_lea.vmem %s47_s30, 16384  ;;  %p4429_p1 = scmp.lt.s32.totalorder %s47_s30, %s47_s30 }
   0x6   :  { %p4425_p0 = scmp.ne.s32.totalorder %s47_s30, %s4424_s17  ;;  %p4430_p2 = scmp.lt.s32.totalorder %s4424_s17, %s4424_s17 }
   0x8   :  { %p4431_p3 = por %p4430_p2, %p4429_p1 }
   0xa   :  { %p4432_p4 = pnand %p4431_p3, %p4425_p0 }
   0xc   :  { %4435 = shalt.err (!%p4432_p4)
}
   0xd   :  { %s4526_s18 = smov 512   ;;  %s4527_s19 = smov 32  }
   0xe   :  { %52 = dma.hbm_to_vmem [thread:$0]  %s6640_s4, 16384, %s47_s30, [#allocation7], %s4526_s18, %s4526_s18, %s4527_s19  }
   0xf   :  { %s4444_s22 = scalar_lea.vmem %s33_s16, 1024  ;;  %p4449_p6 = scmp.lt.s32.totalorder %s33_s16, %s33_s16 }
  0x10   :  { %p4445_p5 = scmp.ne.s32.totalorder %s33_s16, %s4444_s22  ;;  %p4450_p7 = scmp.lt.s32.totalorder %s4444_s22, %s4444_s22 }
  0x12   :  { %p4451_p8 = por %p4450_p7, %p4449_p6 }
  0x14   :  { %p4452_p9 = pnand %p4451_p8, %p4445_p5 }
  0x16   :  { %4455 = shalt.err (!%p4452_p9)
}
  0x17   :  { %38 = dma.hbm_to_vmem [thread:$0]  %s6638_s2, 1024, %s33_s16, [#allocation4], %s4526_s18, %s4526_s18, %s4527_s19  }
  0x18   :  { %s4528_s25 = smov [#allocation8]  }
  0x19   :  { %s64_s26 = sshll.u32 %s4528_s25, 4  ;;  %s65_s26 = int_to_ptr.vmem [resolvable:$true] %s64_s26 }
  0x1a   :  { %s4464_s27 = scalar_lea.vmem %s65_s26, 1024  ;;  %p4469_p11 = scmp.lt.s32.totalorder %s65_s26, %s65_s26 }
  0x1b   :  { %p4465_p10 = scmp.ne.s32.totalorder %s65_s26, %s4464_s27  ;;  %p4470_p12 = scmp.lt.s32.totalorder %s4464_s27, %s4464_s27 }
  0x1d   :  { %p4471_p13 = por %p4470_p12, %p4469_p11 }
  0x1f   :  { %p4472_p0 = pnand %p4471_p13, %p4465_p10 }
  0x21   :  { %4475 = shalt.err (!%p4472_p0)
}
  0x22   :  { %s4529_s4 = smov 64   ;;  %s4530_s28 = smov 4  }
  0x23   :  { %70 = dma.hbm_to_vmem [thread:$0]  %s6644_s8, 1024, %s65_s26, [#allocation7], %s4529_s4, %s4529_s4, %s4530_s28  }
  0x24   :  { %s4531_s15 = smov [#allocation9]  }
  0x25   :  { %s80_s17 = sshll.u32 %s4531_s15, 4  ;;  %s81_s17 = int_to_ptr.vmem [resolvable:$true] %s80_s17 }
  0x26   :  { %s4484_s2 = scalar_lea.vmem %s81_s17, 1024  ;;  %p4489_p2 = scmp.lt.s32.totalorder %s81_s17, %s81_s17 }
  0x27   :  { %p4485_p1 = scmp.ne.s32.totalorder %s81_s17, %s4484_s2  ;;  %p4490_p3 = scmp.lt.s32.totalorder %s4484_s2, %s4484_s2 }
  0x29   :  { %p4491_p4 = por %p4490_p3, %p4489_p2 }
  0x2b   :  { %p4492_p5 = pnand %p4491_p4, %p4485_p1 }
  0x2d   :  { %4495 = shalt.err (!%p4492_p5)
}
  0x2e   :  { %86 = dma.hbm_to_vmem [thread:$0]  %s6647_s11, 1024, %s81_s17, [#allocation10], %s4529_s4, %s4529_s4, %s4530_s28  }
  0x2f   :  { %4516 = dma.done.wait [#allocation4], 1024  }
  0x30   :  { %4517 = vsyncadd [#allocation4], 4294966272 }
  0x31   :  { %4518 = dma.done.wait [#allocation7], 17408  }
  0x32   :  { %4519 = vsyncadd [#allocation7], 4294949888 }
  0x33   :  { %4520 = dma.done.wait [#allocation10], 1024  }
  0x34   :  { %4521 = vsyncadd [#allocation10], 4294966272  ;;  %v6653_v0 = vmov 0   ;;  %v112_v1 = vld [vmem:[#allocation3] sm:$0xff]  ;;  %v4633_v6 = vld [vmem:[%s6636_s0 + $0x18] sm:$0xff]   ;;  %vm222_vm0 = vcmask 130048  }
  0x35   :  { %267 = vmatprep.mubr.bf16.mxu0 %v6653_v0  ;;  %297 = vmatprep.mubr.bf16.mxu1 %v6653_v0  ;;  %v116_v2 = vld [vmem:[#allocation3 + $0x20] sm:$0xff]  ;;  %v114_v7 = vld [vmem:[#allocation3 + $0x10] sm:$0xff]  ;;  %v113_v9 = vld [vmem:[#allocation3 + $0x8] sm:$0xff]  ;;  %v6651_v18 = vmov 0.0   ;;  %vm606_vm1 = vcmask 1041408   ;;  %vm4534_vm2 = vmmov 0  }
  0x36   :  { %v3903_v3 = vcombine.high %v112_v1, %v116_v2  ;;  %v3902_v4 = vcombine.low %v112_v1, %v116_v2  ;;  %v4628_v5 = vld [vmem:[%s6636_s0] sm:$0xff]   ;;  %v118_v8 = vld [vmem:[#allocation3 + $0x30] sm:$0xff]  ;;  %v117_v10 = vld [vmem:[#allocation3 + $0x28] sm:$0xff]  ;;  %vm602_vm3 = vcmask 31744   ;;  %s4535_s22 = smov [#allocation11]  }
  0x37   :  { %v3906_v11 = vcombine.low %v114_v7, %v118_v8  ;;  %v3907_v12 = vcombine.high %v114_v7, %v118_v8  ;;  %v3904_v13 = vcombine.low %v113_v9, %v117_v10  ;;  %v3905_v14 = vcombine.high %v113_v9, %v117_v10  ;;  %v115_v15 = vld [vmem:[#allocation3 + $0x18] sm:$0xff]  ;;  %v4212_v19 = vld [vmem:[%s6636_s0 + $0x8] sm:$0xff]   ;;  %v819_v20 = vld [vmem:[#allocation6 + $0x1c0] sm:$0xff]  ;;  %s3880_s23 = sshll.u32 %s4535_s22, 4  ;;  %s3881_s23 = int_to_ptr.vmem [resolvable:$true] %s3880_s23 }
  0x38   :  { %249 = vmatprep.subr.bf16.mxu0 %v3903_v3  ;;  %4196 = vmatprep.subr.bf16.mxu1 %v3903_v3  ;;  %v119_v16 = vld [vmem:[#allocation3 + $0x38] sm:$0xff]  ;;  %v823_v21 = vld [vmem:[#allocation6 + $0x1e0] sm:$0xff]  ;;  %v4656_v24 = vld [vmem:[%s6636_s0 + $0x10] sm:$0xff]   ;;  %p4501_p7 = scmp.lt.s32.totalorder %s3881_s23, %s3881_s23 }
  0x39   :  { %250 = vmatpush1.bf16.msra.mxu0 %v3902_v4  ;;  %4197 = vmatpush1.bf16.msra.mxu1 %v3902_v4  ;;  %v3909_v17 = vcombine.high %v115_v15, %v119_v16  ;;  %v3908_v22 = vcombine.low %v115_v15, %v119_v16  ;;  %v4645_v23 = vcombine.high %v819_v20, %v823_v21  ;;  %v594_v25 = vld [vmem:[%s6642_s6] sm:$0x3]  ;;  %v820_v58 = vld [vmem:[#allocation6 + $0x1c8] sm:$0xff] }
  0x3a   :  { %395 = vmatprep.subr.bf16.mxu0 %v3907_v12  ;;  %322 = vmatprep.subr.bf16.mxu1 %v3905_v14  ;;  %v608_v26 = vsel %vm606_vm1, %v594_v25, 0  ;;  %v811_v27 = vld [vmem:[#allocation6 + $0x180] sm:$0xff]  ;;  %v4679_v29 = vcombine.low %v819_v20, %v823_v21  ;;  %v824_v59 = vld [vmem:[#allocation6 + $0x1e8] sm:$0xff] }
  0x3b   :  { %6908 = vst [vmem:[#allocation16_spill] sm:$0xff] %v4645_v23  ;;  %v815_v28 = vld [vmem:[#allocation6 + $0x1a0] sm:$0xff]  ;;  %v4749_v2 = vcombine.high %v820_v58, %v824_v59  ;;  %v812_v8 = vld [vmem:[#allocation6 + $0x188] sm:$0xff]  ;;  %v4767_v10 = vcombine.low %v820_v58, %v824_v59 }
  0x3c   :  { %3910 = vmatmul.mubr.msk.bf16.vlgmr.msra.gmra.mxu0 %vm222_vm0, %v4628_v5  ;;  %3913 = vmatmul.mubr.msk.bf16.vlgmr.msra.gmra.mxu1 %vm222_vm0, %v4633_v6  ;;  %6909 = vst [vmem:[#allocation17_spill] sm:$0xff] %v4679_v29  ;;  %v4681_v30 = vcombine.high %v811_v27, %v815_v28  ;;  %v803_v31 = vld [vmem:[#allocation6 + $0x140] sm:$0xff]  ;;  %v4688_v33 = vcombine.low %v811_v27, %v815_v28  ;;  %v816_v9 = vld [vmem:[#allocation6 + $0x1a8] sm:$0xff] }
  0x3d   :  { %396 = vmatpush1.bf16.msra.mxu0 %v3906_v11  ;;  %323 = vmatpush1.bf16.msra.mxu1 %v3904_v13  ;;  %v807_v32 = vld [vmem:[#allocation6 + $0x160] sm:$0xff]  ;;  %6923 = vst [vmem:[#allocation31_spill] sm:$0xff] %v4749_v2  ;;  %6927 = vst [vmem:[#allocation35_spill] sm:$0xff] %v4767_v10  ;;  %v4772_v12 = vcombine.high %v812_v8, %v816_v9  ;;  %v804_v15 = vld [vmem:[#allocation6 + $0x148] sm:$0xff] }
  0x3e   :  { %277 = vmatprep.mubr.bf16.mxu0 %v6653_v0  ;;  %340 = vmatprep.mubr.bf16.mxu1 %v6653_v0  ;;  %6910 = vst [vmem:[#allocation18_spill] sm:$0xff] %v4681_v30  ;;  %6911 = vst [vmem:[#allocation19_spill] sm:$0xff] %v4688_v33  ;;  %v795_v34 = vld [vmem:[#allocation6 + $0x100] sm:$0xff]  ;;  %v4692_v36 = vcombine.high %v803_v31, %v807_v32  ;;  %v4696_v37 = vcombine.low %v803_v31, %v807_v32  ;;  %v808_v16 = vld [vmem:[#allocation6 + $0x168] sm:$0xff] }
  0x3f   :  { %4138 = vmatprep.subr.bf16.mxu0 %v6651_v18  ;;  %468 = vmatprep.subr.bf16.mxu1 %v3909_v17  ;;  %v799_v35 = vld [vmem:[#allocation6 + $0x120] sm:$0xff]  ;;  %6929 = vst [vmem:[#allocation37_spill] sm:$0xff] %v4772_v12  ;;  %v4785_v21 = vcombine.high %v804_v15, %v808_v16  ;;  %v796_v25 = vld [vmem:[#allocation6 + $0x108] sm:$0xff]  ;;  %v4792_v28 = vcombine.low %v804_v15, %v808_v16 }
  0x40   :  { %6912 = vst [vmem:[#allocation20_spill] sm:$0xff] %v4692_v36  ;;  %6913 = vst [vmem:[#allocation21_spill] sm:$0xff] %v4696_v37  ;;  %v787_v38 = vld [vmem:[#allocation6 + $0xc0] sm:$0xff]  ;;  %v4699_v40 = vcombine.high %v795_v34, %v799_v35  ;;  %v4711_v43 = vcombine.low %v795_v34, %v799_v35  ;;  %v764_v15 = vld [vmem:[#allocation6 + $0x8] sm:$0xff] }
  0x41   :  { %v791_v39 = vld [vmem:[#allocation6 + $0xe0] sm:$0xff]  ;;  %6933 = vst [vmem:[#allocation41_spill] sm:$0xff] %v4785_v21  ;;  %6935 = vst [vmem:[#allocation43_spill] sm:$0xff] %v4792_v28  ;;  %v768_v16 = vld [vmem:[#allocation6 + $0x28] sm:$0xff] }
  0x42   :  { %6914 = vst [vmem:[#allocation22_spill] sm:$0xff] %v4699_v40  ;;  %v592_v41 = vld [vmem:[%s6637_s1] sm:$0xff]  ;;  %6915 = vst [vmem:[#allocation23_spill] sm:$0xff] %v4711_v43  ;;  %v4716_v46 = vcombine.high %v787_v38, %v791_v39  ;;  %v4720_v48 = vcombine.low %v787_v38, %v791_v39  ;;  %v788_v38 = vld [vmem:[#allocation6 + $0xc8] sm:$0xff] }
  0x43   :  { %v650_v42 = vld [vmem:[%s6645_s9] sm:$0x3]  ;;  %v593_v47 = vpack.c.bf16 %v592_v41, %v592_v41  ;;  %v792_v39 = vld [vmem:[#allocation6 + $0xe8] sm:$0xff] }
  0x44   :  { %3911 = vmatmul.mubr.msk.bf16.gmra.mxu0 %vm222_vm0, %v4212_v19  ;;  %3914 = vmatmul.mubr.msk.bf16.vlgmr.msra.gmra.mxu1 %vm222_vm0, %v4628_v5  ;;  %v779_v44 = vld [vmem:[#allocation6 + $0x80] sm:$0xff]  ;;  %6916 = vst [vmem:[#allocation24_spill] sm:$0xff] %v4716_v46  ;;  %6917 = vst [vmem:[#allocation25_spill] sm:$0xff] %v4720_v48  ;;  %v659_v49 = vsel %vm606_vm1, %v650_v42, 0 }
  0x45   :  { %287 = vmatprep.mubr.bf16.mxu0 %v6653_v0  ;;  %350 = vmatprep.mubr.bf16.mxu1 %v6653_v0  ;;  %v783_v45 = vld [vmem:[#allocation6 + $0xa0] sm:$0xff] }
  0x46   :  { %469 = vmatpush1.bf16.msra.mxu1 %v3908_v22  ;;  %v771_v50 = vld [vmem:[#allocation6 + $0x40] sm:$0xff]  ;;  %v4724_v52 = vcombine.high %v779_v44, %v783_v45  ;;  %v4730_v53 = vcombine.low %v779_v44, %v783_v45  ;;  %v4810_v45 = vcombine.high %v788_v38, %v792_v39 }
  0x47   :  { %1531 = vmatprep.subr.bf16.mxu1 %v4645_v23  ;;  %v775_v51 = vld [vmem:[#allocation6 + $0x60] sm:$0xff] }
  0x48   :  { %6918 = vst [vmem:[#allocation26_spill] sm:$0xff] %v4724_v52  ;;  %6919 = vst [vmem:[#allocation27_spill] sm:$0xff] %v4730_v53  ;;  %v701_v54 = vld [vmem:[%s6648_s12] sm:$0x3]  ;;  %v4738_v57 = vcombine.high %v771_v50, %v775_v51  ;;  %v4743_v60 = vcombine.low %v771_v50, %v775_v51  ;;  %v780_v50 = vld [vmem:[#allocation6 + $0x88] sm:$0xff] }
  0x49   :  { %v763_v55 = vld [vmem:[#allocation6] sm:$0xff]  ;;  %v710_v62 = vsel %vm606_vm1, %v701_v54, 0  ;;  %6941 = vst [vmem:[#allocation49_spill] sm:$0xff] %v4810_v45  ;;  %v784_v51 = vld [vmem:[#allocation6 + $0xa8] sm:$0xff] }
  0x4a   :  { %v767_v56 = vld [vmem:[#allocation6 + $0x20] sm:$0xff]  ;;  %6920 = vst [vmem:[#allocation28_spill] sm:$0xff] %v4738_v57  ;;  %6921 = vst [vmem:[#allocation29_spill] sm:$0xff] %v4743_v60  ;;  %v4822_v58 = vcombine.high %v780_v50, %v784_v51 }
  0x4b   :  { %v883_v61 = vld [vmem:[#allocation6 + $0x3c0] sm:$0xff]  ;;  %v4747_v63 = vcombine.high %v763_v55, %v767_v56  ;;  %v4755_v3 = vcombine.low %v763_v55, %v767_v56  ;;  %v4816_v55 = vcombine.low %v788_v38, %v792_v39  ;;  %v821_v38 = vld [vmem:[#allocation6 + $0x1d0] sm:$0xff] }
  0x4c   :  { %3912 = vmatmul.mubr.msk.bf16.gmra.mxu0 %vm222_vm0, %v4656_v24  ;;  %3915 = vmatmul.mubr.msk.bf16.gmra.mxu1 %vm222_vm0, %v4212_v19  ;;  %v887_v1 = vld [vmem:[#allocation6 + $0x3e0] sm:$0xff]  ;;  %6945 = vst [vmem:[#allocation53_spill] sm:$0xff] %v4822_v58  ;;  %v825_v39 = vld [vmem:[#allocation6 + $0x1f0] sm:$0xff] }
  0x4d   :  { %360 = vmatprep.mubr.bf16.mxu1 %v6653_v0  ;;  %413 = vmatprep.mubr.bf16.mxu0 %v6653_v0  ;;  %6922 = vst [vmem:[#allocation30_spill] sm:$0xff] %v4747_v63  ;;  %6924 = vst [vmem:[#allocation32_spill] sm:$0xff] %v4755_v3  ;;  %v4760_v4 = vcombine.high %v883_v61, %v887_v1  ;;  %v879_v7 = vld [vmem:[#allocation6 + $0x3a0] sm:$0xff] }
  0x4e   :  { %v867_v13 = vld [vmem:[#allocation6 + $0x340] sm:$0xff]  ;;  %6943 = vst [vmem:[#allocation51_spill] sm:$0xff] %v4816_v55 }
  0x4f   :  { %6925 = vst [vmem:[#allocation33_spill] sm:$0xff] %v4760_v4  ;;  %v871_v14 = vld [vmem:[#allocation6 + $0x360] sm:$0xff] }
  0x50   :  { %v4783_v20 = vcombine.high %v867_v13, %v871_v14  ;;  %v859_v22 = vld [vmem:[#allocation6 + $0x300] sm:$0xff]  ;;  %v4790_v27 = vcombine.low %v867_v13, %v871_v14 }
  0x51   :  { %v851_v34 = vld [vmem:[#allocation6 + $0x2c0] sm:$0xff] }
  0x52   :  { %6932 = vst [vmem:[#allocation40_spill] sm:$0xff] %v4783_v20  ;;  %6934 = vst [vmem:[#allocation42_spill] sm:$0xff] %v4790_v27  ;;  %v855_v35 = vld [vmem:[#allocation6 + $0x2e0] sm:$0xff] }
  0x53   :  { %v4808_v44 = vcombine.high %v851_v34, %v855_v35  ;;  %v4814_v54 = vcombine.low %v851_v34, %v855_v35  ;;  %v835_v59 = vld [vmem:[#allocation6 + $0x240] sm:$0xff]  ;;  %v884_v34 = vld [vmem:[#allocation6 + $0x3c8] sm:$0xff] }
  0x54   :  { %3916 = vmatmul.mubr.msk.bf16.gmra.mxu1 %vm222_vm0, %v4656_v24  ;;  %3918 = vmatmul.mubr.msk.bf16.vlgmr.msra.gmra.mxu0 %vm222_vm0, %v4628_v5  ;;  %v827_v13 = vld [vmem:[#allocation6 + $0x200] sm:$0xff]  ;;  %v888_v35 = vld [vmem:[#allocation6 + $0x3e8] sm:$0xff] }
  0x55   :  { %4139 = vmatpush3.bf16.msra.mxu0 %v608_v26  ;;  %370 = vmatprep.mubr.bf16.mxu1 %v6653_v0  ;;  %v800_v26 = vld [vmem:[#allocation6 + $0x128] sm:$0xff]  ;;  %6940 = vst [vmem:[#allocation48_spill] sm:$0xff] %v4808_v44  ;;  %6942 = vst [vmem:[#allocation50_spill] sm:$0xff] %v4814_v54  ;;  %v831_v14 = vld [vmem:[#allocation6 + $0x220] sm:$0xff] }
  0x56   :  { %423 = vmatprep.mubr.bf16.mxu0 %v6653_v0  ;;  %4144 = vmatprep.subr.bf16.mxu0 %v6651_v18  ;;  %v4798_v32 = vcombine.high %v796_v25, %v800_v26  ;;  %v4804_v42 = vcombine.low %v796_v25, %v800_v26  ;;  %v4844_v25 = vcombine.high %v827_v13, %v831_v14 }
  0x57   :  { %v4846_v26 = vcombine.high %v764_v15, %v768_v16 }
  0x58   :  { %6937 = vst [vmem:[#allocation45_spill] sm:$0xff] %v4798_v32  ;;  %6939 = vst [vmem:[#allocation47_spill] sm:$0xff] %v4804_v42 }
  0x59   :  { %6952 = vst [vmem:[#allocation60_spill] sm:$0xff] %v4844_v25  ;;  %6953 = vst [vmem:[#allocation61_spill] sm:$0xff] %v4846_v26 }
  0x5c   :  { %3917 = vmatmul.mubr.msk.bf16.gmra.mxu1 %vm222_vm0, %v4633_v6  ;;  %3919 = vmatmul.mubr.msk.bf16.gmra.mxu0 %vm222_vm0, %v4212_v19 }
  0x5d   :  { %433 = vmatprep.mubr.bf16.mxu0 %v6653_v0  ;;  %486 = vmatprep.mubr.bf16.mxu1 %v6653_v0 }
  0x64   :  { %3920 = vmatmul.mubr.msk.bf16.gmra.mxu0 %vm222_vm0, %v4656_v24  ;;  %3922 = vmatmul.mubr.msk.bf16.vlgmr.msra.gmra.mxu1 %vm222_vm0, %v4628_v5  ;;  %v875_v5 = vld [vmem:[#allocation6 + $0x380] sm:$0xff] }
  0x65   :  { %1532 = vmatpush1.bf16.msra.mxu1 %v4679_v29  ;;  %443 = vmatprep.mubr.bf16.mxu0 %v6653_v0  ;;  %v4770_v11 = vcombine.high %v875_v5, %v879_v7  ;;  %v4777_v17 = vcombine.low %v875_v5, %v879_v7  ;;  %v4828_v7 = vcombine.low %v780_v50, %v784_v51 }
  0x66   :  { %1533 = vmatprep.subr.bf16.mxu1 %v4681_v30  ;;  %496 = vmatprep.mubr.bf16.mxu1 %v6653_v0  ;;  %v4856_v50 = vcombine.high %v884_v34, %v888_v35  ;;  %v4858_v51 = vcombine.high %v821_v38, %v825_v39 }
  0x67   :  { %6928 = vst [vmem:[#allocation36_spill] sm:$0xff] %v4770_v11  ;;  %6930 = vst [vmem:[#allocation38_spill] sm:$0xff] %v4777_v17 }
  0x68   :  { %6947 = vst [vmem:[#allocation55_spill] sm:$0xff] %v4828_v7  ;;  %6956 = vst [vmem:[#allocation64_spill] sm:$0xff] %v4856_v50 }
  0x69   :  { %1534 = vmatpush1.bf16.msra.mxu1 %v4688_v33  ;;  %6957 = vst [vmem:[#allocation65_spill] sm:$0xff] %v4858_v51 }
  0x6a   :  { %1535 = vmatprep.subr.bf16.mxu1 %v4692_v36 }
  0x6c   :  { %3921 = vmatmul.mubr.msk.bf16.gmra.mxu0 %vm222_vm0, %v4633_v6  ;;  %3923 = vmatmul.mubr.msk.bf16.gmra.mxu1 %vm222_vm0, %v4212_v19  ;;  %v4779_v19 = vcombine.low %v812_v8, %v816_v9 }
  0x6d   :  { %1536 = vmatpush1.bf16.msra.mxu1 %v4696_v37  ;;  %4140 = vmatprep.mubr.msk.bf16.mxu0 %vm4534_vm2, %v6651_v18 }
  0x6e   :  { %1537 = vmatprep.subr.bf16.mxu1 %v4699_v40  ;;  %506 = vmatprep.mubr.bf16.mxu1 %v6653_v0  ;;  %6931 = vst [vmem:[#allocation39_spill] sm:$0xff] %v4779_v19 }
  0x71   :  { %1538 = vmatpush1.bf16.msra.mxu1 %v4711_v43 }
  0x72   :  { %1539 = vmatprep.subr.bf16.mxu1 %v4716_v46 }
  0x74   :  { %4141 = vmatmul.mubr.msk.bf16.vlgmr.msra.gmra.mxu0 %vm602_vm3, %v593_v47  ;;  %3924 = vmatmul.mubr.msk.bf16.gmra.mxu1 %vm222_vm0, %v4656_v24  ;;  %v863_v24 = vld [vmem:[#allocation6 + $0x320] sm:$0xff] }
  0x75   :  { %1540 = vmatpush1.bf16.msra.mxu1 %v4720_v48  ;;  %4145 = vmatpush3.bf16.msra.mxu0 %v659_v49  ;;  %v4796_v31 = vcombine.high %v859_v22, %v863_v24  ;;  %v4802_v41 = vcombine.low %v859_v22, %v863_v24  ;;  %v847_v49 = vld [vmem:[#allocation6 + $0x2a0] sm:$0xff] }
  0x76   :  { %1541 = vmatprep.subr.bf16.mxu1 %v4724_v52  ;;  %4146 = vmatprep.mubr.msk.bf16.mxu0 %vm4534_vm2, %v6651_v18 }
  0x77   :  { %4150 = vmatprep.subr.bf16.mxu0 %v6651_v18  ;;  %516 = vmatprep.mubr.bf16.mxu1 %v6653_v0  ;;  %6936 = vst [vmem:[#allocation44_spill] sm:$0xff] %v4796_v31  ;;  %6938 = vst [vmem:[#allocation46_spill] sm:$0xff] %v4802_v41 }
  0x79   :  { %1542 = vmatpush1.bf16.msra.mxu1 %v4730_v53 }
  0x7a   :  { %1543 = vmatprep.subr.bf16.mxu1 %v4738_v57 }
  0x7c   :  { %4147 = vmatmul.mubr.msk.bf16.vlgmr.msra.gmra.mxu0 %vm602_vm3, %v593_v47  ;;  %3925 = vmatmul.mubr.msk.bf16.gmra.mxu1 %vm222_vm0, %v4633_v6  ;;  %v4765_v6 = vcombine.low %v883_v61, %v887_v1  ;;  %v839_v61 = vld [vmem:[#allocation6 + $0x260] sm:$0xff]  ;;  %v776_v1 = vld [vmem:[#allocation6 + $0x68] sm:$0xff] }
  0x7d   :  { %1544 = vmatpush1.bf16.msra.mxu1 %v4743_v60  ;;  %4151 = vmatpush3.bf16.msra.mxu0 %v710_v62  ;;  %v772_v62 = vld [vmem:[#allocation6 + $0x48] sm:$0xff]  ;;  %v4832_v8 = vcombine.high %v835_v59, %v839_v61  ;;  %v4838_v22 = vcombine.low %v835_v59, %v839_v61 }
  0x7e   :  { %1545 = vmatprep.subr.bf16.mxu1 %v4747_v63  ;;  %4152 = vmatprep.mubr.msk.bf16.mxu0 %vm4534_vm2, %v6651_v18  ;;  %6926 = vst [vmem:[#allocation34_spill] sm:$0xff] %v4765_v6  ;;  %v4834_v9 = vcombine.high %v772_v62, %v776_v1  ;;  %v4840_v24 = vcombine.low %v772_v62, %v776_v1  ;;  %v876_v59 = vld [vmem:[#allocation6 + $0x388] sm:$0xff]  ;;  %v813_v62 = vld [vmem:[#allocation6 + $0x190] sm:$0xff] }
  0x7f   :  { %1572 = vmatprep.subr.bf16.mxu0 %v4749_v2  ;;  %1563 = vmatprep.mubr.bf16.mxu1 %v6653_v0  ;;  %6948 = vst [vmem:[#allocation56_spill] sm:$0xff] %v4832_v8  ;;  %6950 = vst [vmem:[#allocation58_spill] sm:$0xff] %v4838_v22  ;;  %v880_v61 = vld [vmem:[#allocation6 + $0x3a8] sm:$0xff]  ;;  %v817_v1 = vld [vmem:[#allocation6 + $0x1b0] sm:$0xff] }
  0x80   :  { %6949 = vst [vmem:[#allocation57_spill] sm:$0xff] %v4834_v9  ;;  %6951 = vst [vmem:[#allocation59_spill] sm:$0xff] %v4840_v24  ;;  %v868_v18 = vld [vmem:[#allocation6 + $0x348] sm:$0xff] }
  0x81   :  { %1546 = vmatpush1.bf16.msra.mxu1 %v4755_v3 }
  0x82   :  { %1547 = vmatprep.subr.bf16.mxu1 %v4760_v4 }
  0x84   :  { %4153 = vmatmul.mubr.msk.bf16.vlgmr.msra.gmra.mxu0 %vm602_vm3, %v593_v47  ;;  %v843_v47 = vld [vmem:[#allocation6 + $0x280] sm:$0xff] }
  0x85   :  { %1548 = vmatpush2.bf16.msra.mxu1 %v4765_v6  ;;  %1573 = vmatpush1.bf16.msra.mxu0 %v4767_v10  ;;  %v4820_v56 = vcombine.high %v843_v47, %v847_v49  ;;  %v4826_v5 = vcombine.low %v843_v47, %v847_v49  ;;  %v4850_v47 = vcombine.low %v827_v13, %v831_v14 }
  0x86   :  { %1549 = vmatprep.subr.bf16.mxu1 %v4770_v11  ;;  %1574 = vmatprep.subr.bf16.mxu0 %v4772_v12  ;;  %v4852_v49 = vcombine.low %v764_v15, %v768_v16  ;;  %v4862_v13 = vcombine.low %v884_v34, %v888_v35  ;;  %v4864_v14 = vcombine.low %v821_v38, %v825_v39 }
  0x87   :  { %1604 = vmatprep.mubr.bf16.mxu0 %v6653_v0  ;;  %6944 = vst [vmem:[#allocation52_spill] sm:$0xff] %v4820_v56  ;;  %6946 = vst [vmem:[#allocation54_spill] sm:$0xff] %v4826_v5  ;;  %v4868_v15 = vcombine.high %v876_v59, %v880_v61  ;;  %v4870_v16 = vcombine.high %v813_v62, %v817_v1  ;;  %v872_v0 = vld [vmem:[#allocation6 + $0x368] sm:$0xff]  ;;  %v4875_v34 = vcombine.low %v876_v59, %v880_v61 }
  0x88   :  { %6954 = vst [vmem:[#allocation62_spill] sm:$0xff] %v4850_v47  ;;  %6955 = vst [vmem:[#allocation63_spill] sm:$0xff] %v4852_v49  ;;  %v4877_v35 = vcombine.low %v813_v62, %v817_v1  ;;  %v4881_v38 = vcombine.high %v868_v18, %v872_v0  ;;  %v4888_v59 = vcombine.low %v868_v18, %v872_v0 }
  0x89   :  { %1550 = vmatpush2.bf16.msra.mxu1 %v4777_v17  ;;  %1575 = vmatpush1.bf16.msra.mxu0 %v4779_v19  ;;  %6958 = vst [vmem:[#allocation66_spill] sm:$0xff] %v4862_v13  ;;  %6959 = vst [vmem:[#allocation67_spill] sm:$0xff] %v4864_v14 }
  0x8a   :  { %1551 = vmatprep.subr.bf16.mxu1 %v4783_v20  ;;  %1576 = vmatprep.subr.bf16.mxu0 %v4785_v21  ;;  %6960 = vst [vmem:[#allocation68_spill] sm:$0xff] %v4868_v15  ;;  %6961 = vst [vmem:[#allocation69_spill] sm:$0xff] %v4870_v16 }
  0x8b   :  { %6963 = vst [vmem:[#allocation70_spill] sm:$0xff] %v4875_v34  ;;  %6964 = vst [vmem:[#allocation71_spill] sm:$0xff] %v4877_v35 }
  0x8c   :  { %6965 = vst [vmem:[#allocation72_spill] sm:$0xff] %v4881_v38  ;;  %6967 = vst [vmem:[#allocation74_spill] sm:$0xff] %v4888_v59 }
  0x8d   :  { %1552 = vmatpush2.bf16.msra.mxu1 %v4790_v27  ;;  %1577 = vmatpush1.bf16.msra.mxu0 %v4792_v28 }
  0x8e   :  { %1553 = vmatprep.subr.bf16.mxu1 %v4796_v31  ;;  %1578 = vmatprep.subr.bf16.mxu0 %v4798_v32 }
  0x91   :  { %1554 = vmatpush2.bf16.msra.mxu1 %v4802_v41  ;;  %1579 = vmatpush1.bf16.msra.mxu0 %v4804_v42 }
  0x92   :  { %1555 = vmatprep.subr.bf16.mxu1 %v4808_v44  ;;  %1580 = vmatprep.subr.bf16.mxu0 %v4810_v45 }
  0x95   :  { %1556 = vmatpush2.bf16.msra.mxu1 %v4814_v54  ;;  %1581 = vmatpush1.bf16.msra.mxu0 %v4816_v55 }
  0x96   :  { %1557 = vmatprep.subr.bf16.mxu1 %v4820_v56  ;;  %1582 = vmatprep.subr.bf16.mxu0 %v4822_v58 }
  0x99   :  { %1558 = vmatpush2.bf16.msra.mxu1 %v4826_v5  ;;  %1583 = vmatpush1.bf16.msra.mxu0 %v4828_v7 }
  0x9a   :  { %1559 = vmatprep.subr.bf16.mxu1 %v4832_v8  ;;  %1584 = vmatprep.subr.bf16.mxu0 %v4834_v9 }
  0x9d   :  { %1560 = vmatpush2.bf16.msra.mxu1 %v4838_v22  ;;  %1585 = vmatpush1.bf16.msra.mxu0 %v4840_v24  ;;  %v6962_v22 = vmov 0  }
  0x9e   :  { %1561 = vmatprep.subr.bf16.mxu1 %v4844_v25  ;;  %1586 = vmatprep.subr.bf16.mxu0 %v4846_v26  ;;  %v805_v25 = vld [vmem:[#allocation6 + $0x150] sm:$0xff] }
  0x9f   :  { %v809_v26 = vld [vmem:[#allocation6 + $0x170] sm:$0xff] }
  0xa0   :  { %v4883_v39 = vcombine.high %v805_v25, %v809_v26  ;;  %v4890_v61 = vcombine.low %v805_v25, %v809_v26 }
  0xa1   :  { %1562 = vmatpush2.bf16.msra.mxu1 %v4850_v47  ;;  %1587 = vmatpush1.bf16.msra.mxu0 %v4852_v49  ;;  %v797_v47 = vld [vmem:[#allocation6 + $0x110] sm:$0xff] }
  0xa2   :  { %1588 = vmatprep.subr.bf16.mxu0 %v4856_v50  ;;  %1613 = vmatprep.subr.bf16.mxu1 %v4858_v51  ;;  %6966 = vst [vmem:[#allocation73_spill] sm:$0xff] %v4883_v39  ;;  %v860_v51 = vld [vmem:[#allocation6 + $0x308] sm:$0xff]  ;;  %v801_v49 = vld [vmem:[#allocation6 + $0x130] sm:$0xff]  ;;  %6968 = vst [vmem:[#allocation75_spill] sm:$0xff] %v4890_v61 }
  0xa3   :  { %v864_v50 = vld [vmem:[#allocation6 + $0x328] sm:$0xff]  ;;  %v4896_v1 = vcombine.high %v797_v47, %v801_v49  ;;  %v4902_v18 = vcombine.low %v797_v47, %v801_v49 }
  0xa4   :  { %1564 = vmatmul.mubr.bf16.vlgmr.msra.gmra.mxu1 %v6962_v22  ;;  %v4894_v62 = vcombine.high %v860_v51, %v864_v50  ;;  %v4900_v0 = vcombine.low %v860_v51, %v864_v50 }
  0xa5   :  { %1589 = vmatpush2.bf16.msra.mxu0 %v4862_v13  ;;  %1614 = vmatpush1.bf16.msra.mxu1 %v4864_v14  ;;  %6970 = vst [vmem:[#allocation77_spill] sm:$0xff] %v4896_v1  ;;  %v856_v14 = vld [vmem:[#allocation6 + $0x2e8] sm:$0xff]  ;;  %v793_v13 = vld [vmem:[#allocation6 + $0xf0] sm:$0xff]  ;;  %6972 = vst [vmem:[#allocation79_spill] sm:$0xff] %v4902_v18 }
  0xa6   :  { %1590 = vmatprep.subr.bf16.mxu0 %v4868_v15  ;;  %1615 = vmatprep.subr.bf16.mxu1 %v4870_v16  ;;  %6969 = vst [vmem:[#allocation76_spill] sm:$0xff] %v4894_v62  ;;  %v852_v16 = vld [vmem:[#allocation6 + $0x2c8] sm:$0xff]  ;;  %v789_v15 = vld [vmem:[#allocation6 + $0xd0] sm:$0xff]  ;;  %6971 = vst [vmem:[#allocation78_spill] sm:$0xff] %v4900_v0 }
  0xa7   :  { %1645 = vmatprep.mubr.bf16.mxu1 %v6962_v22  ;;  %v4906_v25 = vcombine.high %v852_v16, %v856_v14  ;;  %v4908_v26 = vcombine.high %v789_v15, %v793_v13  ;;  %v4912_v50 = vcombine.low %v852_v16, %v856_v14  ;;  %v4914_v47 = vcombine.low %v789_v15, %v793_v13 }
  0xa9   :  { %1591 = vmatpush2.bf16.msra.mxu0 %v4875_v34  ;;  %1616 = vmatpush1.bf16.msra.mxu1 %v4877_v35  ;;  %6973 = vst [vmem:[#allocation80_spill] sm:$0xff] %v4906_v25  ;;  %6974 = vst [vmem:[#allocation81_spill] sm:$0xff] %v4908_v26  ;;  %v848_v35 = vld [vmem:[#allocation6 + $0x2a8] sm:$0xff]  ;;  %v785_v34 = vld [vmem:[#allocation6 + $0xb0] sm:$0xff] }
  0xaa   :  { %1592 = vmatprep.subr.bf16.mxu0 %v4881_v38  ;;  %1617 = vmatprep.subr.bf16.mxu1 %v4883_v39  ;;  %v844_v39 = vld [vmem:[#allocation6 + $0x288] sm:$0xff]  ;;  %v781_v38 = vld [vmem:[#allocation6 + $0x90] sm:$0xff]  ;;  %6975 = vst [vmem:[#allocation82_spill] sm:$0xff] %v4912_v50  ;;  %6976 = vst [vmem:[#allocation83_spill] sm:$0xff] %v4914_v47 }
  0xab   :  { %v4918_v49 = vcombine.high %v844_v39, %v848_v35  ;;  %v4920_v51 = vcombine.high %v781_v38, %v785_v34  ;;  %v4924_v14 = vcombine.low %v844_v39, %v848_v35  ;;  %v4926_v13 = vcombine.low %v781_v38, %v785_v34 }
  0xad   :  { %1593 = vmatpush2.bf16.msra.mxu0 %v4888_v59  ;;  %1618 = vmatpush1.bf16.msra.mxu1 %v4890_v61  ;;  %6977 = vst [vmem:[#allocation84_spill] sm:$0xff] %v4918_v49  ;;  %6978 = vst [vmem:[#allocation85_spill] sm:$0xff] %v4920_v51  ;;  %v840_v61 = vld [vmem:[#allocation6 + $0x268] sm:$0xff]  ;;  %v777_v59 = vld [vmem:[#allocation6 + $0x70] sm:$0xff] }
  0xae   :  { %1594 = vmatprep.subr.bf16.mxu0 %v4894_v62  ;;  %1619 = vmatprep.subr.bf16.mxu1 %v4896_v1  ;;  %v836_v1 = vld [vmem:[#allocation6 + $0x248] sm:$0xff]  ;;  %v773_v62 = vld [vmem:[#allocation6 + $0x50] sm:$0xff]  ;;  %6979 = vst [vmem:[#allocation86_spill] sm:$0xff] %v4924_v14  ;;  %6980 = vst [vmem:[#allocation87_spill] sm:$0xff] %v4926_v13 }
  0xaf   :  { %v4930_v15 = vcombine.high %v836_v1, %v840_v61  ;;  %v4932_v16 = vcombine.high %v773_v62, %v777_v59  ;;  %v4936_v35 = vcombine.low %v836_v1, %v840_v61  ;;  %v4938_v34 = vcombine.low %v773_v62, %v777_v59 }
  0xb1   :  { %1595 = vmatpush2.bf16.msra.mxu0 %v4900_v0  ;;  %1620 = vmatpush1.bf16.msra.mxu1 %v4902_v18  ;;  %6981 = vst [vmem:[#allocation88_spill] sm:$0xff] %v4930_v15  ;;  %6982 = vst [vmem:[#allocation89_spill] sm:$0xff] %v4932_v16  ;;  %v832_v18 = vld [vmem:[#allocation6 + $0x228] sm:$0xff]  ;;  %v769_v0 = vld [vmem:[#allocation6 + $0x30] sm:$0xff] }
  0xb2   :  { %1596 = vmatprep.subr.bf16.mxu0 %v4906_v25  ;;  %1621 = vmatprep.subr.bf16.mxu1 %v4908_v26  ;;  %v828_v26 = vld [vmem:[#allocation6 + $0x208] sm:$0xff]  ;;  %v765_v25 = vld [vmem:[#allocation6 + $0x10] sm:$0xff]  ;;  %6983 = vst [vmem:[#allocation90_spill] sm:$0xff] %v4936_v35  ;;  %6984 = vst [vmem:[#allocation91_spill] sm:$0xff] %v4938_v34 }
  0xb3   :  { %v4942_v38 = vcombine.high %v828_v26, %v832_v18  ;;  %v4944_v39 = vcombine.high %v765_v25, %v769_v0  ;;  %v4948_v61 = vcombine.low %v828_v26, %v832_v18  ;;  %v4950_v59 = vcombine.low %v765_v25, %v769_v0 }
  0xb5   :  { %1597 = vmatpush2.bf16.msra.mxu0 %v4912_v50  ;;  %1622 = vmatpush1.bf16.msra.mxu1 %v4914_v47  ;;  %6985 = vst [vmem:[#allocation92_spill] sm:$0xff] %v4942_v38  ;;  %6986 = vst [vmem:[#allocation93_spill] sm:$0xff] %v4944_v39  ;;  %v889_v47 = vld [vmem:[#allocation6 + $0x3f0] sm:$0xff]  ;;  %v826_v50 = vld [vmem:[#allocation6 + $0x1f8] sm:$0xff] }
  0xb6   :  { %1598 = vmatprep.subr.bf16.mxu0 %v4918_v49  ;;  %1623 = vmatprep.subr.bf16.mxu1 %v4920_v51  ;;  %v885_v51 = vld [vmem:[#allocation6 + $0x3d0] sm:$0xff]  ;;  %v822_v49 = vld [vmem:[#allocation6 + $0x1d8] sm:$0xff]  ;;  %6987 = vst [vmem:[#allocation94_spill] sm:$0xff] %v4948_v61  ;;  %6988 = vst [vmem:[#allocation95_spill] sm:$0xff] %v4950_v59 }
  0xb7   :  { %v4954_v62 = vcombine.high %v885_v51, %v889_v47  ;;  %v4956_v1 = vcombine.high %v822_v49, %v826_v50  ;;  %v4960_v18 = vcombine.low %v885_v51, %v889_v47  ;;  %v4962_v0 = vcombine.low %v822_v49, %v826_v50 }
  0xb9   :  { %1599 = vmatpush2.bf16.msra.mxu0 %v4924_v14  ;;  %1624 = vmatpush1.bf16.msra.mxu1 %v4926_v13  ;;  %6989 = vst [vmem:[#allocation96_spill] sm:$0xff] %v4954_v62  ;;  %6990 = vst [vmem:[#allocation97_spill] sm:$0xff] %v4956_v1  ;;  %v881_v13 = vld [vmem:[#allocation6 + $0x3b0] sm:$0xff]  ;;  %v818_v14 = vld [vmem:[#allocation6 + $0x1b8] sm:$0xff] }
  0xba   :  { %1600 = vmatprep.subr.bf16.mxu0 %v4930_v15  ;;  %1625 = vmatprep.subr.bf16.mxu1 %v4932_v16  ;;  %v877_v16 = vld [vmem:[#allocation6 + $0x390] sm:$0xff]  ;;  %v814_v15 = vld [vmem:[#allocation6 + $0x198] sm:$0xff]  ;;  %6991 = vst [vmem:[#allocation98_spill] sm:$0xff] %v4960_v18  ;;  %6992 = vst [vmem:[#allocation99_spill] sm:$0xff] %v4962_v0 }
  0xbb   :  { %v4966_v25 = vcombine.high %v877_v16, %v881_v13  ;;  %v4968_v26 = vcombine.high %v814_v15, %v818_v14  ;;  %v4973_v50 = vcombine.low %v877_v16, %v881_v13  ;;  %v4975_v47 = vcombine.low %v814_v15, %v818_v14 }
  0xbd   :  { %1601 = vmatpush2.bf16.msra.mxu0 %v4936_v35  ;;  %1626 = vmatpush1.bf16.msra.mxu1 %v4938_v34  ;;  %6993 = vst [vmem:[#allocation100_spill] sm:$0xff] %v4966_v25  ;;  %6994 = vst [vmem:[#allocation101_spill] sm:$0xff] %v4968_v26  ;;  %v873_v34 = vld [vmem:[#allocation6 + $0x370] sm:$0xff]  ;;  %v810_v35 = vld [vmem:[#allocation6 + $0x178] sm:$0xff] }
  0xbe   :  { %1602 = vmatprep.subr.bf16.mxu0 %v4942_v38  ;;  %1627 = vmatprep.subr.bf16.mxu1 %v4944_v39  ;;  %v869_v39 = vld [vmem:[#allocation6 + $0x350] sm:$0xff]  ;;  %v806_v38 = vld [vmem:[#allocation6 + $0x158] sm:$0xff]  ;;  %6995 = vst [vmem:[#allocation102_spill] sm:$0xff] %v4973_v50  ;;  %6996 = vst [vmem:[#allocation103_spill] sm:$0xff] %v4975_v47 }
  0xbf   :  { %v4979_v49 = vcombine.high %v869_v39, %v873_v34  ;;  %v4981_v51 = vcombine.high %v806_v38, %v810_v35  ;;  %v4986_v14 = vcombine.low %v869_v39, %v873_v34  ;;  %v4988_v13 = vcombine.low %v806_v38, %v810_v35 }
  0xc1   :  { %1603 = vmatpush2.bf16.msra.mxu0 %v4948_v61  ;;  %1628 = vmatpush1.bf16.msra.mxu1 %v4950_v59  ;;  %6997 = vst [vmem:[#allocation104_spill] sm:$0xff] %v4979_v49  ;;  %6998 = vst [vmem:[#allocation105_spill] sm:$0xff] %v4981_v51  ;;  %v865_v59 = vld [vmem:[#allocation6 + $0x330] sm:$0xff]  ;;  %v802_v61 = vld [vmem:[#allocation6 + $0x138] sm:$0xff] }
  0xc2   :  { %1629 = vmatprep.subr.bf16.mxu1 %v4954_v62  ;;  %1654 = vmatprep.subr.bf16.mxu0 %v4956_v1  ;;  %v861_v62 = vld [vmem:[#allocation6 + $0x310] sm:$0xff]  ;;  %v798_v1 = vld [vmem:[#allocation6 + $0x118] sm:$0xff]  ;;  %6999 = vst [vmem:[#allocation106_spill] sm:$0xff] %v4986_v14  ;;  %7000 = vst [vmem:[#allocation107_spill] sm:$0xff] %v4988_v13 }
  0xc3   :  { %v4992_v15 = vcombine.high %v861_v62, %v865_v59  ;;  %v4994_v16 = vcombine.high %v798_v1, %v802_v61  ;;  %v4998_v34 = vcombine.low %v861_v62, %v865_v59  ;;  %v5000_v35 = vcombine.low %v798_v1, %v802_v61 }
  0xc4   :  { %1605 = vmatmul.mubr.bf16.vlgmr.msra.gmra.mxu0 %v6962_v22 }
  0xc5   :  { %1630 = vmatpush2.bf16.msra.mxu1 %v4960_v18  ;;  %1655 = vmatpush1.bf16.msra.mxu0 %v4962_v0  ;;  %7001 = vst [vmem:[#allocation108_spill] sm:$0xff] %v4992_v15  ;;  %7002 = vst [vmem:[#allocation109_spill] sm:$0xff] %v4994_v16  ;;  %v857_v18 = vld [vmem:[#allocation6 + $0x2f0] sm:$0xff]  ;;  %v794_v0 = vld [vmem:[#allocation6 + $0xf8] sm:$0xff] }
  0xc6   :  { %1631 = vmatprep.subr.bf16.mxu1 %v4966_v25  ;;  %1656 = vmatprep.subr.bf16.mxu0 %v4968_v26  ;;  %v853_v25 = vld [vmem:[#allocation6 + $0x2d0] sm:$0xff]  ;;  %v790_v26 = vld [vmem:[#allocation6 + $0xd8] sm:$0xff]  ;;  %7003 = vst [vmem:[#allocation110_spill] sm:$0xff] %v4998_v34  ;;  %7004 = vst [vmem:[#allocation111_spill] sm:$0xff] %v5000_v35 }
  0xc7   :  { %1686 = vmatprep.mubr.bf16.mxu0 %v6962_v22  ;;  %v5004_v38 = vcombine.high %v853_v25, %v857_v18  ;;  %v5006_v39 = vcombine.high %v790_v26, %v794_v0  ;;  %v5010_v59 = vcombine.low %v853_v25, %v857_v18  ;;  %v5012_v61 = vcombine.low %v790_v26, %v794_v0 }
  0xc9   :  { %1632 = vmatpush2.bf16.msra.mxu1 %v4973_v50  ;;  %1657 = vmatpush1.bf16.msra.mxu0 %v4975_v47  ;;  %7005 = vst [vmem:[#allocation112_spill] sm:$0xff] %v5004_v38  ;;  %7006 = vst [vmem:[#allocation113_spill] sm:$0xff] %v5006_v39  ;;  %v849_v50 = vld [vmem:[#allocation6 + $0x2b0] sm:$0xff]  ;;  %v786_v47 = vld [vmem:[#allocation6 + $0xb8] sm:$0xff] }
  0xca   :  { %1633 = vmatprep.subr.bf16.mxu1 %v4979_v49  ;;  %1658 = vmatprep.subr.bf16.mxu0 %v4981_v51  ;;  %v845_v49 = vld [vmem:[#allocation6 + $0x290] sm:$0xff]  ;;  %v782_v51 = vld [vmem:[#allocation6 + $0x98] sm:$0xff]  ;;  %7007 = vst [vmem:[#allocation114_spill] sm:$0xff] %v5010_v59 }
  0xcb   :  { %v5016_v62 = vcombine.high %v845_v49, %v849_v50  ;;  %v5018_v1 = vcombine.high %v782_v51, %v786_v47  ;;  %v5022_v18 = vcombine.low %v845_v49, %v849_v50  ;;  %v5024_v0 = vcombine.low %v782_v51, %v786_v47 }
  0xcd   :  { %1634 = vmatpush2.bf16.msra.mxu1 %v4986_v14  ;;  %1659 = vmatpush1.bf16.msra.mxu0 %v4988_v13  ;;  %7008 = vst [vmem:[#allocation115_spill] sm:$0xff] %v5016_v62  ;;  %v841_v14 = vld [vmem:[#allocation6 + $0x270] sm:$0xff]  ;;  %v778_v13 = vld [vmem:[#allocation6 + $0x78] sm:$0xff]  ;;  %7009 = vst [vmem:[#allocation116_spill] sm:$0xff] %v5022_v18 }
  0xce   :  { %1635 = vmatprep.subr.bf16.mxu1 %v4992_v15  ;;  %1660 = vmatprep.subr.bf16.mxu0 %v4994_v16  ;;  %v837_v15 = vld [vmem:[#allocation6 + $0x250] sm:$0xff]  ;;  %v774_v16 = vld [vmem:[#allocation6 + $0x58] sm:$0xff] }
  0xcf   :  { %v5028_v25 = vcombine.high %v837_v15, %v841_v14  ;;  %v5030_v26 = vcombine.high %v774_v16, %v778_v13  ;;  %v5034_v50 = vcombine.low %v837_v15, %v841_v14  ;;  %v5036_v47 = vcombine.low %v774_v16, %v778_v13  ;;  %v878_v15 = vld [vmem:[#allocation6 + $0x398] sm:$0xff] }
  0xd0   :  { %v882_v16 = vld [vmem:[#allocation6 + $0x3b8] sm:$0xff] }
  0xd1   :  { %1636 = vmatpush2.bf16.msra.mxu1 %v4998_v34  ;;  %1661 = vmatpush1.bf16.msra.mxu0 %v5000_v35  ;;  %7010 = vst [vmem:[#allocation117_spill] sm:$0xff] %v5028_v25  ;;  %v833_v34 = vld [vmem:[#allocation6 + $0x230] sm:$0xff]  ;;  %v770_v35 = vld [vmem:[#allocation6 + $0x38] sm:$0xff]  ;;  %7011 = vst [vmem:[#allocation118_spill] sm:$0xff] %v5034_v50 }
  0xd2   :  { %1637 = vmatprep.subr.bf16.mxu1 %v5004_v38  ;;  %1662 = vmatprep.subr.bf16.mxu0 %v5006_v39  ;;  %v829_v38 = vld [vmem:[#allocation6 + $0x210] sm:$0xff]  ;;  %v766_v39 = vld [vmem:[#allocation6 + $0x18] sm:$0xff] }
  0xd3   :  { %v5040_v49 = vcombine.high %v829_v38, %v833_v34  ;;  %v5042_v51 = vcombine.high %v766_v39, %v770_v35  ;;  %v5048_v14 = vcombine.low %v766_v39, %v770_v35  ;;  %v870_v35 = vld [vmem:[#allocation6 + $0x358] sm:$0xff]  ;;  %v5064_v39 = vcombine.low %v878_v15, %v882_v16 }
  0xd5   :  { %1638 = vmatpush2.bf16.msra.mxu1 %v5010_v59  ;;  %1663 = vmatpush1.bf16.msra.mxu0 %v5012_v61  ;;  %7012 = vst [vmem:[#allocation119_spill] sm:$0xff] %v5040_v49  ;;  %v890_v59 = vld [vmem:[#allocation6 + $0x3f8] sm:$0xff]  ;;  %7017 = vst [vmem:[#allocation124_spill] sm:$0xff] %v5064_v39 }
  0xd6   :  { %1639 = vmatprep.subr.bf16.mxu1 %v5016_v62  ;;  %1664 = vmatprep.subr.bf16.mxu0 %v5018_v1  ;;  %v886_v62 = vld [vmem:[#allocation6 + $0x3d8] sm:$0xff] }
  0xd7   :  { %v5052_v13 = vcombine.high %v886_v62, %v890_v59 }
  0xd9   :  { %1640 = vmatpush2.bf16.msra.mxu1 %v5022_v18  ;;  %1665 = vmatpush1.bf16.msra.mxu0 %v5024_v0  ;;  %v5046_v18 = vcombine.low %v829_v38, %v833_v34  ;;  %7014 = vst [vmem:[#allocation121_spill] sm:$0xff] %v5052_v13  ;;  %v5059_v34 = vcombine.high %v878_v15, %v882_v16  ;;  %v874_v38 = vld [vmem:[#allocation6 + $0x378] sm:$0xff] }
  0xda   :  { %1641 = vmatprep.subr.bf16.mxu1 %v5028_v25  ;;  %1666 = vmatprep.subr.bf16.mxu0 %v5030_v26  ;;  %v5056_v25 = vcombine.low %v886_v62, %v890_v59  ;;  %v5068_v59 = vcombine.high %v870_v35, %v874_v38  ;;  %v862_v62 = vld [vmem:[#allocation6 + $0x318] sm:$0xff] }
  0xdb   :  { %7013 = vst [vmem:[#allocation120_spill] sm:$0xff] %v5046_v18  ;;  %7016 = vst [vmem:[#allocation123_spill] sm:$0xff] %v5059_v34  ;;  %v854_v16 = vld [vmem:[#allocation6 + $0x2d8] sm:$0xff] }
  0xdc   :  { %7015 = vst [vmem:[#allocation122_spill] sm:$0xff] %v5056_v25  ;;  %7018 = vst [vmem:[#allocation125_spill] sm:$0xff] %v5068_v59 }
  0xdd   :  { %1642 = vmatpush2.bf16.msra.mxu1 %v5034_v50  ;;  %1667 = vmatpush1.bf16.msra.mxu0 %v5036_v47 }
  0xde   :  { %1643 = vmatprep.subr.bf16.mxu1 %v5040_v49  ;;  %1668 = vmatprep.subr.bf16.mxu0 %v5042_v51 }
  0xe1   :  { %1644 = vmatpush2.bf16.msra.mxu1 %v5046_v18  ;;  %1669 = vmatpush1.bf16.msra.mxu0 %v5048_v14  ;;  %v866_v18 = vld [vmem:[#allocation6 + $0x338] sm:$0xff] }
  0xe2   :  { %1670 = vmatprep.subr.bf16.mxu0 %v5052_v13  ;;  %1752 = vmatprep.subr.bf16.mxu1 %v4645_v23  ;;  %v5072_v23 = vcombine.low %v870_v35, %v874_v38  ;;  %v5076_v15 = vcombine.high %v862_v62, %v866_v18  ;;  %v5080_v49 = vcombine.low %v862_v62, %v866_v18  ;;  %v846_v38 = vld [vmem:[#allocation6 + $0x298] sm:$0xff] }
  0xe3   :  { %v838_v62 = vld [vmem:[#allocation6 + $0x258] sm:$0xff] }
  0xe4   :  { %1646 = vmatmul.mubr.bf16.vlgmr.msra.gmra.mxu1 %v6962_v22  ;;  %7019 = vst [vmem:[#allocation126_spill] sm:$0xff] %v5072_v23  ;;  %7020 = vst [vmem:[#allocation127_spill] sm:$0xff] %v5076_v15 }
  0xe5   :  { %1671 = vmatpush2.bf16.msra.mxu0 %v5056_v25  ;;  %1753 = vmatpush1.bf16.msra.mxu1 %v4679_v29  ;;  %v858_v29 = vld [vmem:[#allocation6 + $0x2f8] sm:$0xff]  ;;  %7021 = vst [vmem:[#allocation128_spill] sm:$0xff] %v5080_v49 }
  0xe6   :  { %1672 = vmatprep.subr.bf16.mxu0 %v5059_v34  ;;  %1754 = vmatprep.subr.bf16.mxu1 %v4681_v30  ;;  %v5084_v35 = vcombine.high %v854_v16, %v858_v29  ;;  %v122_v30 = vlaneseq }
  0xe8   :  { %7022 = vst [vmem:[#allocation129_spill] sm:$0xff] %v5084_v35  ;;  %v5095_v50 = vshrl.u32 %v122_v30, 7  ;;  %v5109_v30 = vld [vmem:[%s6639_s3] sm:$0xff] }
  0xe9   :  { %1673 = vmatpush2.bf16.msra.mxu0 %v5064_v39  ;;  %1755 = vmatpush1.bf16.msra.mxu1 %v4688_v33  ;;  %v850_v33 = vld [vmem:[#allocation6 + $0x2b8] sm:$0xff] }
  0xea   :  { %1674 = vmatprep.subr.bf16.mxu0 %v5068_v59  ;;  %1756 = vmatprep.subr.bf16.mxu1 %v4692_v36  ;;  %v5088_v36 = vcombine.low %v854_v16, %v858_v29  ;;  %v5092_v18 = vcombine.high %v846_v38, %v850_v33  ;;  %7025 = vst [vmem:[#allocation132_spill] sm:$0xff] %v5095_v50  ;;  %v124_v16 = vsub.s32 0, %v5095_v50 }
  0xec   :  { %7023 = vst [vmem:[#allocation130_spill] sm:$0xff] %v5088_v36  ;;  %7024 = vst [vmem:[#allocation131_spill] sm:$0xff] %v5092_v18 }
  0xed   :  { %1675 = vmatpush2.bf16.msra.mxu0 %v5072_v23  ;;  %1757 = vmatpush1.bf16.msra.mxu1 %v4696_v37  ;;  %v842_v37 = vld [vmem:[#allocation6 + $0x278] sm:$0xff] }
  0xee   :  { %1676 = vmatprep.subr.bf16.mxu0 %v5076_v15  ;;  %1758 = vmatprep.subr.bf16.mxu1 %v4699_v40  ;;  %v5098_v40 = vcombine.low %v846_v38, %v850_v33  ;;  %v5102_v29 = vcombine.high %v838_v62, %v842_v37  ;;  %v5112_v33 = vcombine.low %v838_v62, %v842_v37  ;;  %v6813_v38 = vsub.s32 1, %v5095_v50 }
  0xf0   :  { %7026 = vst [vmem:[#allocation133_spill] sm:$0xff] %v5098_v40  ;;  %7027 = vst [vmem:[#allocation134_spill] sm:$0xff] %v5102_v29  ;;  %v5131_v62 = vrot.slane %v5109_v30, %v6813_v38 }
  0xf1   :  { %1677 = vmatpush2.bf16.msra.mxu0 %v5080_v49  ;;  %1759 = vmatpush1.bf16.msra.mxu1 %v4711_v43  ;;  %v830_v43 = vld [vmem:[#allocation6 + $0x218] sm:$0xff]  ;;  %7028 = vst [vmem:[#allocation135_spill] sm:$0xff] %v5112_v33 }
  0xf2   :  { %1678 = vmatprep.subr.bf16.mxu0 %v5084_v35  ;;  %1760 = vmatprep.subr.bf16.mxu1 %v4716_v46  ;;  %v834_v46 = vld [vmem:[#allocation6 + $0x238] sm:$0xff]  ;;  %7031 = vst [vmem:[#allocation138_spill] sm:$0xff] %v5131_v62 }
  0xf3   :  { %v5126_v37 = vcombine.low %v830_v43, %v834_v46 }
  0xf5   :  { %1679 = vmatpush2.bf16.msra.mxu0 %v5088_v36  ;;  %1761 = vmatpush1.bf16.msra.mxu1 %v4720_v48  ;;  %v5121_v48 = vrot.slane %v5109_v30, %v124_v16  ;;  %7030 = vst [vmem:[#allocation137_spill] sm:$0xff] %v5126_v37 }
  0xf6   :  { %1680 = vmatprep.subr.bf16.mxu0 %v5092_v18  ;;  %1762 = vmatprep.subr.bf16.mxu1 %v4724_v52  ;;  %v5117_v52 = vcombine.high %v830_v43, %v834_v46 }
  0xf8   :  { %7029 = vst [vmem:[#allocation136_spill] sm:$0xff] %v5117_v52 }
  0xf9   :  { %1681 = vmatpush2.bf16.msra.mxu0 %v5098_v40  ;;  %1763 = vmatpush1.bf16.msra.mxu1 %v4730_v53 }
  0xfa   :  { %1682 = vmatprep.subr.bf16.mxu0 %v5102_v29  ;;  %1764 = vmatprep.subr.bf16.mxu1 %v4738_v57 }
  0xfc   :  { %v5123_v18 = vpop.f32.mrf.mxu0  ;;  %v299_v36 = vpop.f32.mrf.mxu1 }
  0xfd   :  { %1683 = vmatpush2.bf16.msra.mxu0 %v5112_v33  ;;  %v5134_v53 = vadd.f32 %v299_v36, %v5121_v48  ;;  %1765 = vmatpush1.bf16.msra.mxu1 %v4743_v60 }
  0xfe   :  { %v271_v57 = vpop.f32.mrf.mxu0  ;;  %1684 = vmatprep.subr.bf16.mxu0 %v5117_v52  ;;  %v301_v16 = vpop.f32.mrf.mxu1  ;;  %1766 = vmatprep.subr.bf16.mxu1 %v4747_v63 }
  0xff   :  { %7032 = vst [vmem:[#allocation139_spill] sm:$0xff] %v5134_v53  ;;  %v5140_v33 = vadd.f32 %v301_v16, %v5131_v62  ;;  %v132_v57 = vsub.s32 2, %v5095_v50  ;;  %v6818_v16 = vsub.s32 3, %v5095_v50 }
 0x100   :  { %v273_v43 = vpop.f32.mrf.mxu0  ;;  %v303_v46 = vpop.f32.mrf.mxu1 }
 0x101   :  { %7033 = vst [vmem:[#allocation140_spill] sm:$0xff] %v5140_v33  ;;  %v5143_v29 = vadd.f32 %v273_v43, %v5121_v48  ;;  %1685 = vmatpush2.bf16.msra.mxu0 %v5126_v37  ;;  %v5147_v36 = vadd.f32 %v303_v46, %v5121_v48  ;;  %1767 = vmatpush1.bf16.msra.mxu1 %v4755_v3 }
 0x102   :  { %v5151_v38 = vpop.f32.mrf.mxu0  ;;  %v5153_v53 = vpop.f32.mrf.mxu1  ;;  %1793 = vmatprep.subr.bf16.mxu0 %v4749_v2  ;;  %1768 = vmatprep.subr.bf16.mxu1 %v4760_v4 }
 0x103   :  { %7034 = vst [vmem:[#allocation141_spill] sm:$0xff] %v5143_v29  ;;  %7035 = vst [vmem:[#allocation142_spill] sm:$0xff] %v5147_v36  ;;  %v5165_v36 = vrot.slane %v5109_v30, %v132_v57 }
 0x104   :  { %7036 = vst [vmem:[#allocation143_spill] sm:$0xff] %v5151_v38  ;;  %7037 = vst [vmem:[#allocation144_spill] sm:$0xff] %v5153_v53  ;;  %1687 = vmatmul.mubr.bf16.vlgmr.msra.gmra.mxu0 %v6962_v22  ;;  %v279_v43 = vpop.f32.mrf.mxu0  ;;  %v5159_v33 = vpop.f32.mrf.mxu1 }
 0x105   :  { %v5162_v46 = vadd.f32 %v279_v43, %v5121_v48  ;;  %1794 = vmatpush1.bf16.msra.mxu0 %v4767_v10  ;;  %1769 = vmatpush2.bf16.msra.mxu1 %v4765_v6  ;;  %v5179_v43 = vrot.slane %v5109_v30, %v6818_v16 }
 0x106   :  { %v281_v53 = vpop.f32.mrf.mxu0  ;;  %v5169_v38 = vpop.f32.mrf.mxu1  ;;  %1795 = vmatprep.subr.bf16.mxu0 %v4772_v12  ;;  %1770 = vmatprep.subr.bf16.mxu1 %v4770_v11 }
 0x107   :  { %7038 = vst [vmem:[#allocation145_spill] sm:$0xff] %v5162_v46  ;;  %v5174_v22 = vadd.f32 %v281_v53, %v5131_v62 }
 0x108   :  { %v283_v57 = vpop.f32.mrf.mxu0  ;;  %v346_v46 = vpop.f32.mrf.mxu1 }
 0x109   :  { %7039 = vst [vmem:[#allocation146_spill] sm:$0xff] %v5174_v22  ;;  %v5182_v29 = vadd.f32 %v283_v57, %v5121_v48  ;;  %v5185_v6 = vadd.f32 %v346_v46, %v5165_v36  ;;  %1796 = vmatpush1.bf16.msra.mxu0 %v4779_v19  ;;  %1771 = vmatpush2.bf16.msra.mxu1 %v4777_v17 }
 0x10a   :  { %v285_v11 = vpop.f32.mrf.mxu0  ;;  %v348_v53 = vpop.f32.mrf.mxu1  ;;  %1797 = vmatprep.subr.bf16.mxu0 %v4785_v21  ;;  %1772 = vmatprep.subr.bf16.mxu1 %v4783_v20 }
 0x10b   :  { %7040 = vst [vmem:[#allocation147_spill] sm:$0xff] %v5182_v29  ;;  %7041 = vst [vmem:[#allocation148_spill] sm:$0xff] %v5185_v6  ;;  %v5192_v16 = vadd.f32 %v285_v11, %v5131_v62  ;;  %v5195_v22 = vadd.f32 %v348_v53, %v5179_v43 }
 0x10c   :  { %v289_v57 = vpop.f32.mrf.mxu0  ;;  %v352_v29 = vpop.f32.mrf.mxu1 }
 0x10d   :  { %7042 = vst [vmem:[#allocation149_spill] sm:$0xff] %v5192_v16  ;;  %7043 = vst [vmem:[#allocation150_spill] sm:$0xff] %v5195_v22  ;;  %v5198_v46 = vadd.f32 %v289_v57, %v5121_v48  ;;  %v5201_v6 = vadd.f32 %v352_v29, %v5165_v36  ;;  %1798 = vmatpush1.bf16.msra.mxu0 %v4792_v28  ;;  %1773 = vmatpush2.bf16.msra.mxu1 %v4790_v27  ;;  %v7075_v27 = vld [vmem:[#allocation66_spill] sm:$0xff] }
 0x10e   :  { %v291_v17 = vpop.f32.mrf.mxu0  ;;  %v354_v20 = vpop.f32.mrf.mxu1  ;;  %1799 = vmatprep.subr.bf16.mxu0 %v4798_v32  ;;  %1774 = vmatprep.subr.bf16.mxu1 %v4796_v31 }
 0x10f   :  { %7044 = vst [vmem:[#allocation151_spill] sm:$0xff] %v5198_v46  ;;  %7045 = vst [vmem:[#allocation152_spill] sm:$0xff] %v5201_v6  ;;  %v5208_v11 = vadd.f32 %v291_v17, %v5131_v62  ;;  %v5211_v53 = vadd.f32 %v354_v20, %v5179_v43  ;;  %v140_v20 = vsub.s32 4, %v5095_v50 }
 0x110   :  { %v293_v57 = vpop.f32.mrf.mxu0  ;;  %v356_v46 = vpop.f32.mrf.mxu1 }
 0x111   :  { %7046 = vst [vmem:[#allocation153_spill] sm:$0xff] %v5208_v11  ;;  %7047 = vst [vmem:[#allocation154_spill] sm:$0xff] %v5211_v53  ;;  %v5214_v29 = vadd.f32 %v293_v57, %v5121_v48  ;;  %v5217_v16 = vadd.f32 %v356_v46, %v5165_v36  ;;  %1800 = vmatpush1.bf16.msra.mxu0 %v4804_v42  ;;  %1775 = vmatpush2.bf16.msra.mxu1 %v4802_v41  ;;  %v7069_v41 = vld [vmem:[#allocation62_spill] sm:$0xff] }
 0x112   :  { %v295_v6 = vpop.f32.mrf.mxu0  ;;  %v358_v22 = vpop.f32.mrf.mxu1  ;;  %1801 = vmatprep.subr.bf16.mxu0 %v4810_v45  ;;  %1776 = vmatprep.subr.bf16.mxu1 %v4808_v44  ;;  %v7062_v44 = vld [vmem:[#allocation61_spill] sm:$0xff] }
 0x113   :  { %7048 = vst [vmem:[#allocation155_spill] sm:$0xff] %v5214_v29  ;;  %7049 = vst [vmem:[#allocation156_spill] sm:$0xff] %v5217_v16  ;;  %v5224_v17 = vadd.f32 %v295_v6, %v5131_v62  ;;  %v5228_v57 = vadd.f32 %v358_v22, %v5179_v43  ;;  %v5243_v22 = vrot.slane %v5109_v30, %v140_v20 }
 0x114   :  { %v5230_v46 = vpop.f32.mrf.mxu0  ;;  %v362_v29 = vpop.f32.mrf.mxu1 }
 0x115   :  { %7050 = vst [vmem:[#allocation157_spill] sm:$0xff] %v5224_v17  ;;  %7051 = vst [vmem:[#allocation158_spill] sm:$0xff] %v5228_v57  ;;  %v5234_v16 = vadd.f32 %v362_v29, %v5165_v36  ;;  %1802 = vmatpush1.bf16.msra.mxu0 %v4816_v55  ;;  %1777 = vmatpush2.bf16.msra.mxu1 %v4814_v54 }
 0x116   :  { %v5238_v53 = vpop.f32.mrf.mxu0  ;;  %v364_v6 = vpop.f32.mrf.mxu1  ;;  %1803 = vmatprep.subr.bf16.mxu0 %v4822_v58  ;;  %1778 = vmatprep.subr.bf16.mxu1 %v4820_v56 }
 0x117   :  { %7052 = vst [vmem:[#allocation159_spill] sm:$0xff] %v5234_v16  ;;  %v5246_v17 = vadd.f32 %v364_v6, %v5179_v43  ;;  %v7054_v16 = vsub.s32 5, %v5095_v50 }
 0x118   :  { %v419_v11 = vpop.f32.mrf.mxu0  ;;  %v366_v29 = vpop.f32.mrf.mxu1 }
 0x119   :  { %7053 = vst [vmem:[#allocation160_spill] sm:$0xff] %v5246_v17  ;;  %v5251_v57 = vrot.slane %v5109_v30, %v7054_v16  ;;  %v5254_v62 = vadd.f32 %v419_v11, %v5243_v22  ;;  %v5257_v54 = vadd.f32 %v366_v29, %v5165_v36  ;;  %1804 = vmatpush1.bf16.msra.mxu0 %v4828_v7 }
 0x11a   :  { %1779 = vmatpush2.bf16.msra.mxu1 %v4826_v5  ;;  %v421_v20 = vpop.f32.mrf.mxu0  ;;  %v368_v6 = vpop.f32.mrf.mxu1  ;;  %1805 = vmatprep.subr.bf16.mxu0 %v4834_v9  ;;  %v7061_v5 = vld [vmem:[#allocation58_spill] sm:$0xff] }
 0x11b   :  { %7055 = vst [vmem:[#allocation161_spill] sm:$0xff] %v5254_v62  ;;  %7056 = vst [vmem:[#allocation162_spill] sm:$0xff] %v5257_v54  ;;  %1780 = vmatprep.subr.bf16.mxu1 %v4832_v8  ;;  %v5264_v17 = vadd.f32 %v421_v20, %v5251_v57  ;;  %v5267_v16 = vadd.f32 %v368_v6, %v5179_v43  ;;  %v7063_v20 = vld [vmem:[#allocation60_spill] sm:$0xff] }
 0x11c   :  { %v425_v11 = vpop.f32.mrf.mxu0  ;;  %v372_v62 = vpop.f32.mrf.mxu1 }
 0x11d   :  { %7057 = vst [vmem:[#allocation163_spill] sm:$0xff] %v5264_v17  ;;  %7058 = vst [vmem:[#allocation164_spill] sm:$0xff] %v5267_v16  ;;  %v5270_v29 = vadd.f32 %v425_v11, %v5243_v22  ;;  %v5273_v54 = vadd.f32 %v372_v62, %v5165_v36  ;;  %1806 = vmatpush1.bf16.msra.mxu0 %v4840_v24  ;;  %v148_v17 = vsub.s32 6, %v5095_v50 }
 0x11e   :  { %1781 = vmatpush2.bf16.msra.mxu1 %v7061_v5  ;;  %v427_v56 = vpop.f32.mrf.mxu0  ;;  %v374_v8 = vpop.f32.mrf.mxu1  ;;  %1807 = vmatprep.subr.bf16.mxu0 %v7062_v44  ;;  %v7068_v5 = vld [vmem:[#allocation63_spill] sm:$0xff] }
 0x11f   :  { %7059 = vst [vmem:[#allocation165_spill] sm:$0xff] %v5270_v29  ;;  %7060 = vst [vmem:[#allocation166_spill] sm:$0xff] %v5273_v54  ;;  %1782 = vmatprep.subr.bf16.mxu1 %v7063_v20  ;;  %v5280_v6 = vadd.f32 %v427_v56, %v5251_v57  ;;  %v5283_v16 = vadd.f32 %v374_v8, %v5179_v43  ;;  %v7071_v8 = vld [vmem:[#allocation65_spill] sm:$0xff] }
 0x120   :  { %v429_v11 = vpop.f32.mrf.mxu0  ;;  %v376_v29 = vpop.f32.mrf.mxu1 }
 0x121   :  { %7064 = vst [vmem:[#allocation167_spill] sm:$0xff] %v5280_v6  ;;  %7065 = vst [vmem:[#allocation168_spill] sm:$0xff] %v5283_v16  ;;  %v5286_v62 = vadd.f32 %v429_v11, %v5243_v22  ;;  %v5289_v54 = vadd.f32 %v376_v29, %v5165_v36  ;;  %1808 = vmatpush1.bf16.msra.mxu0 %v7068_v5  ;;  %v7070_v6 = vld [vmem:[#allocation64_spill] sm:$0xff]  ;;  %v6843_v29 = vsub.s32 7, %v5095_v50 }
 0x122   :  { %1783 = vmatpush2.bf16.msra.mxu1 %v7069_v41  ;;  %v431_v20 = vpop.f32.mrf.mxu0  ;;  %v378_v56 = vpop.f32.mrf.mxu1  ;;  %1809 = vmatprep.subr.bf16.mxu0 %v7070_v6  ;;  %v5309_v41 = vrot.slane %v5109_v30, %v148_v17  ;;  %v7081_v5 = vld [vmem:[#allocation72_spill] sm:$0xff] }
 0x123   :  { %7066 = vst [vmem:[#allocation169_spill] sm:$0xff] %v5286_v62  ;;  %7067 = vst [vmem:[#allocation170_spill] sm:$0xff] %v5289_v54  ;;  %1834 = vmatprep.subr.bf16.mxu1 %v7071_v8  ;;  %v5297_v16 = vadd.f32 %v431_v20, %v5251_v57  ;;  %v5300_v11 = vadd.f32 %v378_v56, %v5179_v43  ;;  %v7076_v20 = vld [vmem:[#allocation68_spill] sm:$0xff] }
 0x124   :  { %v435_v54 = vpop.f32.mrf.mxu0  ;;  %v5303_v62 = vpop.f32.mrf.mxu1 }
 0x125   :  { %7072 = vst [vmem:[#allocation171_spill] sm:$0xff] %v5297_v16  ;;  %7073 = vst [vmem:[#allocation172_spill] sm:$0xff] %v5300_v11  ;;  %v5306_v31 = vadd.f32 %v435_v54, %v5243_v22  ;;  %1810 = vmatpush2.bf16.msra.mxu0 %v7075_v27  ;;  %v5321_v11 = vrot.slane %v5109_v30, %v6843_v29  ;;  %v7080_v27 = vld [vmem:[#allocation70_spill] sm:$0xff] }
 0x126   :  { %v437_v8 = vpop.f32.mrf.mxu0  ;;  %v5312_v6 = vpop.f32.mrf.mxu1  ;;  %1811 = vmatprep.subr.bf16.mxu0 %v7076_v20 }
 0x127   :  { %7074 = vst [vmem:[#allocation173_spill] sm:$0xff] %v5306_v31  ;;  %v5316_v56 = vadd.f32 %v437_v8, %v5251_v57 }
 0x128   :  { %v439_v54 = vpop.f32.mrf.mxu0  ;;  %v492_v31 = vpop.f32.mrf.mxu1 }
 0x129   :  { %7077 = vst [vmem:[#allocation174_spill] sm:$0xff] %v5316_v56  ;;  %v5324_v17 = vadd.f32 %v439_v54, %v5243_v22  ;;  %v5327_v16 = vadd.f32 %v492_v31, %v5309_v41  ;;  %1812 = vmatpush2.bf16.msra.mxu0 %v7080_v27  ;;  %v7087_v27 = vld [vmem:[#allocation76_spill] sm:$0xff] }
 0x12a   :  { %v441_v4 = vpop.f32.mrf.mxu0  ;;  %v494_v20 = vpop.f32.mrf.mxu1  ;;  %1813 = vmatprep.subr.bf16.mxu0 %v7081_v5  ;;  %v7093_v5 = vld [vmem:[#allocation80_spill] sm:$0xff] }
 0x12b   :  { %7078 = vst [vmem:[#allocation175_spill] sm:$0xff] %v5324_v17  ;;  %7079 = vst [vmem:[#allocation176_spill] sm:$0xff] %v5327_v16  ;;  %v5332_v8 = vadd.f32 %v441_v4, %v5251_v57  ;;  %v5335_v30 = vadd.f32 %v494_v20, %v5321_v11  ;;  %v7086_v17 = vld [vmem:[#allocation74_spill] sm:$0xff] }
 0x12c   :  { %v445_v29 = vpop.f32.mrf.mxu0  ;;  %v498_v50 = vpop.f32.mrf.mxu1 }
 0x12d   :  { %7082 = vst [vmem:[#allocation177_spill] sm:$0xff] %v5332_v8  ;;  %7083 = vst [vmem:[#allocation178_spill] sm:$0xff] %v5335_v30  ;;  %v5338_v54 = vadd.f32 %v445_v29, %v5243_v22  ;;  %v5341_v31 = vadd.f32 %v498_v50, %v5309_v41  ;;  %1814 = vmatpush2.bf16.msra.mxu0 %v7086_v17 }
 0x12e   :  { %v447_v56 = vpop.f32.mrf.mxu0  ;;  %v500_v16 = vpop.f32.mrf.mxu1  ;;  %1815 = vmatprep.subr.bf16.mxu0 %v7087_v27 }
 0x12f   :  { %7084 = vst [vmem:[#allocation179_spill] sm:$0xff] %v5338_v54  ;;  %7085 = vst [vmem:[#allocation180_spill] sm:$0xff] %v5341_v31  ;;  %v5346_v4 = vadd.f32 %v447_v56, %v5251_v57  ;;  %v5349_v20 = vadd.f32 %v500_v16, %v5321_v11  ;;  %v7092_v54 = vld [vmem:[#allocation78_spill] sm:$0xff] }
 0x130   :  { %v449_v8 = vpop.f32.mrf.mxu0  ;;  %v502_v30 = vpop.f32.mrf.mxu1 }
 0x131   :  { %7088 = vst [vmem:[#allocation181_spill] sm:$0xff] %v5346_v4  ;;  %7089 = vst [vmem:[#allocation182_spill] sm:$0xff] %v5349_v20  ;;  %v5352_v29 = vadd.f32 %v449_v8, %v5243_v22  ;;  %v5355_v50 = vadd.f32 %v502_v30, %v5309_v41  ;;  %1816 = vmatpush2.bf16.msra.mxu0 %v7092_v54  ;;  %v7098_v30 = vld [vmem:[#allocation82_spill] sm:$0xff]  ;;  %v7099_v54 = vld [vmem:[#allocation84_spill] sm:$0xff] }
 0x132   :  { %v451_v31 = vpop.f32.mrf.mxu0  ;;  %v504_v17 = vpop.f32.mrf.mxu1  ;;  %1817 = vmatprep.subr.bf16.mxu0 %v7093_v5 }
 0x133   :  { %7090 = vst [vmem:[#allocation183_spill] sm:$0xff] %v5352_v29  ;;  %7091 = vst [vmem:[#allocation184_spill] sm:$0xff] %v5355_v50  ;;  %v5360_v56 = vadd.f32 %v451_v31, %v5251_v57  ;;  %v5363_v16 = vadd.f32 %v504_v17, %v5321_v11 }
 0x134   :  { %v5365_v4 = vpop.f32.mrf.mxu0  ;;  %v508_v20 = vpop.f32.mrf.mxu1 }
 0x135   :  { %7094 = vst [vmem:[#allocation185_spill] sm:$0xff] %v5360_v56  ;;  %7095 = vst [vmem:[#allocation186_spill] sm:$0xff] %v5363_v16  ;;  %v5368_v8 = vadd.f32 %v508_v20, %v5309_v41  ;;  %1818 = vmatpush2.bf16.msra.mxu0 %v7098_v30  ;;  %v7102_v16 = vld [vmem:[#allocation86_spill] sm:$0xff]  ;;  %v7103_v20 = vld [vmem:[#allocation88_spill] sm:$0xff] }
 0x136   :  { %7096 = vst [vmem:[#allocation187_spill] sm:$0xff] %v5365_v4  ;;  %v4142_v29 = vpop.f32.mrf.mxu0  ;;  %v510_v50 = vpop.f32.mrf.mxu1  ;;  %1819 = vmatprep.subr.bf16.mxu0 %v7099_v54 }
 0x137   :  { %7097 = vst [vmem:[#allocation188_spill] sm:$0xff] %v5368_v8  ;;  %v5373_v5 = vadd.f32 %v510_v50, %v5321_v11 }
 0x138   :  { %v647_v31 = vpop.f32.mrf.mxu0  ;;  %v512_v56 = vpop.f32.mrf.mxu1 }
 0x139   :  { %7100 = vst [vmem:[#allocation189_spill] sm:$0xff] %v5373_v5  ;;  %v5376_v17 = vadd.f32 %v512_v56, %v5309_v41  ;;  %1820 = vmatpush2.bf16.msra.mxu0 %v7102_v16  ;;  %v7107_v31 = vld [vmem:[#allocation90_spill] sm:$0xff] }
 0x13a   :  { %v4143_v4 = vpop.f32.mrf.mxu0  ;;  %v514_v27 = vpop.f32.mrf.mxu1  ;;  %1821 = vmatprep.subr.bf16.mxu0 %v7103_v20 }
 0x13b   :  { %7101 = vst [vmem:[#allocation190_spill] sm:$0xff] %v5376_v17  ;;  %v5381_v8 = vadd.f32 %v514_v27, %v5321_v11  ;;  %v7108_v17 = vld [vmem:[#allocation92_spill] sm:$0xff] }
 0x13c   :  { %v5383_v29 = vpop.f32.mrf.mxu0  ;;  %v518_v54 = vpop.f32.mrf.mxu1 }
 0x13d   :  { %7104 = vst [vmem:[#allocation191_spill] sm:$0xff] %v5381_v8  ;;  %7105 = vst [vmem:[#allocation192_spill] sm:$0xff] %v5383_v29  ;;  %v5386_v50 = vadd.f32 %v518_v54, %v5309_v41  ;;  %1822 = vmatpush2.bf16.msra.mxu0 %v7107_v31  ;;  %v7111_v8 = vld [vmem:[#allocation94_spill] sm:$0xff]  ;;  %v7112_v54 = vld [vmem:[#allocation97_spill] sm:$0xff] }
 0x13e   :  { %v4148_v5 = vpop.f32.mrf.mxu0  ;;  %v520_v56 = vpop.f32.mrf.mxu1  ;;  %1823 = vmatprep.subr.bf16.mxu0 %v7108_v17 }
 0x13f   :  { %7106 = vst [vmem:[#allocation193_spill] sm:$0xff] %v5386_v50  ;;  %v5391_v4 = vadd.f32 %v520_v56, %v5321_v11 }
 0x140   :  { %v698_v16 = vpop.f32.mrf.mxu0  ;;  %v522_v20 = vpop.f32.mrf.mxu1 }
 0x141   :  { %7109 = vst [vmem:[#allocation194_spill] sm:$0xff] %v5391_v4  ;;  %v5394_v27 = vadd.f32 %v522_v20, %v5309_v41  ;;  %1824 = vmatpush2.bf16.msra.mxu0 %v7111_v8  ;;  %v270_v16 = vadd.f32 %v5123_v18, %v5121_v48 }
 0x142   :  { %v4149_v29 = vpop.f32.mrf.mxu0  ;;  %v524_v30 = vpop.f32.mrf.mxu1  ;;  %1875 = vmatprep.subr.bf16.mxu0 %v7112_v54 }
 0x143   :  { %7110 = vst [vmem:[#allocation195_spill] sm:$0xff] %v5394_v27  ;;  %v5399_v50 = vadd.f32 %v524_v30, %v5321_v11 }
 0x144   :  { %v5401_v5 = vpop.f32.mrf.mxu0 }
 0x145   :  { %7113 = vst [vmem:[#allocation196_spill] sm:$0xff] %v5399_v50  ;;  %7114 = vst [vmem:[#allocation197_spill] sm:$0xff] %v5401_v5  ;;  %v7143_v5 = vld [vmem:[#allocation106_spill] sm:$0xff] }
 0x146   :  { %v4154_v17 = vpop.f32.mrf.mxu0 }
 0x147   :  { %v343_v17 = vadd.f32 %v5159_v33, %v5165_v36  ;;  %v491_v33 = vadd.f32 %v5312_v6, %v5321_v11 }
 0x148   :  { %v749_v31 = vpop.f32.mrf.mxu0 }
 0x149   :  { %v345_v31 = vadd.f32 %v5169_v38, %v5179_v43  ;;  %v416_v43 = vadd.f32 %v5230_v46, %v5243_v22 }
 0x14a   :  { %v4155_v56 = vpop.f32.mrf.mxu0 }
 0x164   :  { %v1565_v4 = vpop.f32.mrf.mxu1 }
 0x165   :  { %v1695_v20 = vadd.f32 %v1565_v4, %v270_v16 }
 0x166   :  { %v1567_v27 = vpop.f32.mrf.mxu1 }
 0x167   :  { %v1696_v56 = vadd.f32 -1e+09, %v1567_v27  ;;  %v418_v27 = vadd.f32 %v5238_v53, %v5251_v57 }
 0x168   :  { %v1569_v3 = vpop.f32.mrf.mxu1 }
 0x169   :  { %v1703_v3 = vmul.f32 0.5, %v1695_v20  ;;  %v1704_v16 = vmul.f32 0.5, %v1696_v56 }
 0x16a   :  { %v1570_v8 = vpop.f32.mrf.mxu1 }
 0x184   :  { %v1606_v29 = vpop.f32.mrf.mxu0 }
 0x185   :  { %v1697_v48 = vadd.f32 %v1606_v29, %v343_v17 }
 0x186   :  { %v1608_v44 = vpop.f32.mrf.mxu0 }
 0x187   :  { %v1698_v18 = vadd.f32 %v1608_v44, %v345_v31  ;;  %v1705_v4 = vmul.f32 0.5, %v1697_v48 }
 0x188   :  { %v1610_v63 = vpop.f32.mrf.mxu0 }
 0x189   :  { %v1706_v8 = vmul.f32 0.5, %v1698_v18  ;;  %4246 = vtanh.f32 %v1705_v4 }
 0x18a   :  { %v1611_v54 = vpop.f32.mrf.mxu0  ;;  %4248 = vtanh.f32 %v1703_v3 }
 0x18b   :  { %4250 = vtanh.f32 %v1706_v8 }
 0x18c   :  { %4252 = vtanh.f32 %v1704_v16 }
 0x196   :  { %v4247_v54 = vpop.eup %4246 }
 0x197   :  { %v1717_v31 = vmul.f32 0.5, %v4247_v54 }
 0x199   :  { %v1723_v56 = vadd.f32 0.5, %v1717_v31  ;;  %v7115_v31 = vld [vmem:[#allocation67_spill] sm:$0xff] }
 0x19b   :  { %v1729_v57 = vmul.f32 0.0, %v1723_v56  ;;  %v7121_v56 = vld [vmem:[#allocation73_spill] sm:$0xff] }
 0x1a4   :  { %v1647_v24 = vpop.f32.mrf.mxu1 }
 0x1a5   :  { %v1699_v20 = vadd.f32 %v1647_v24, %v416_v43 }
 0x1a6   :  { %v1649_v30 = vpop.f32.mrf.mxu1 }
 0x1a7   :  { %v1707_v11 = vmul.f32 0.5, %v1699_v20 }
 0x1a8   :  { %v1651_v50 = vpop.f32.mrf.mxu1 }
 0x1aa   :  { %v1652_v60 = vpop.f32.mrf.mxu1 }
 0x1ab   :  { %v489_v60 = vadd.f32 %v5303_v62, %v5309_v41  ;;  %v4249_v41 = vpop.eup %4248  ;;  %v1700_v62 = vadd.f32 %v1649_v30, %v418_v27 }
 0x1ac   :  { %v4251_v17 = vpop.eup %4250  ;;  %v1715_v48 = vmul.f32 0.5, %v4249_v41 }
 0x1ad   :  { %v4253_v6 = vpop.eup %4252  ;;  %v1718_v18 = vmul.f32 0.5, %v4251_v17  ;;  %v1708_v4 = vmul.f32 0.5, %v1700_v62 }
 0x1ae   :  { %v1716_v3 = vmul.f32 0.5, %v4253_v6  ;;  %v1721_v46 = vadd.f32 0.5, %v1715_v48  ;;  %v7116_v6 = vld [vmem:[#allocation99_spill] sm:$0xff]  ;;  %v7118_v48 = vld [vmem:[#allocation101_spill] sm:$0xff] }
 0x1af   :  { %v1724_v22 = vadd.f32 0.5, %v1718_v18  ;;  %v7119_v18 = vld [vmem:[#allocation71_spill] sm:$0xff] }
 0x1b0   :  { %v1722_v8 = vadd.f32 0.5, %v1716_v3  ;;  %v7122_v3 = vld [vmem:[#allocation105_spill] sm:$0xff] }
 0x1c4   :  { %v1688_v63 = vpop.f32.mrf.mxu0 }
 0x1c5   :  { %v1701_v36 = vadd.f32 %v1688_v63, %v489_v60  ;;  %v1730_v60 = vmul.f32 0.0, %v1724_v22  ;;  %v7124_v22 = vld [vmem:[#allocation107_spill] sm:$0xff] }
 0x1c6   :  { %v1690_v38 = vpop.f32.mrf.mxu0 }
 0x1c7   :  { %4254 = vtanh.f32 %v1701_v36  ;;  %v1702_v44 = vadd.f32 %v1690_v38, %v491_v33 }
 0x1c8   :  { %v1692_v50 = vpop.f32.mrf.mxu0 }
 0x1c9   :  { %4256 = vtanh.f32 %v1702_v44 }
 0x1ca   :  { %v1693_v29 = vpop.f32.mrf.mxu0  ;;  %4258 = vtanh.f32 %v1707_v11  ;;  %v7117_v11 = vld [vmem:[#allocation69_spill] sm:$0xff] }
 0x1cb   :  { %4260 = vtanh.f32 %v1708_v4  ;;  %v7120_v4 = vld [vmem:[#allocation103_spill] sm:$0xff] }
 0x1d4   :  { %v4255_v53 = vpop.eup %4254 }
 0x1d5   :  { %v1731_v24 = vmul.f32 %v4255_v53, %v1721_v46  ;;  %v7123_v46 = vld [vmem:[#allocation75_spill] sm:$0xff]  ;;  %v7125_v53 = vld [vmem:[#allocation77_spill] sm:$0xff] }
 0x1d6   :  { %v4257_v16 = vpop.eup %4256 }
 0x1d7   :  { %v5417_v30 = vadd.f32 %v1731_v24, %v1729_v57  ;;  %v1732_v63 = vmul.f32 %v4257_v16, %v1722_v8  ;;  %v4259_v36 = vpop.eup %4258  ;;  %v7126_v57 = vld [vmem:[#allocation109_spill] sm:$0xff]  ;;  %v7127_v8 = vld [vmem:[#allocation79_spill] sm:$0xff] }
 0x1d8   :  { %v4261_v38 = vpop.eup %4260  ;;  %v1719_v44 = vmul.f32 0.5, %v4259_v36  ;;  %v7128_v24 = vld [vmem:[#allocation111_spill] sm:$0xff]  ;;  %v7129_v16 = vld [vmem:[#allocation81_spill] sm:$0xff] }
 0x1d9   :  { %4262 = vtanh.f32 %v5417_v30  ;;  %v5420_v33 = vadd.f32 %v1732_v63, %v1730_v60  ;;  %v1720_v43 = vmul.f32 0.5, %v4261_v38  ;;  %v7130_v60 = vld [vmem:[#allocation113_spill] sm:$0xff]  ;;  %v7131_v63 = vld [vmem:[#allocation83_spill] sm:$0xff] }
 0x1da   :  { %v1725_v27 = vadd.f32 0.5, %v1719_v44  ;;  %v7132_v36 = vld [vmem:[#allocation85_spill] sm:$0xff]  ;;  %v7133_v38 = vld [vmem:[#allocation87_spill] sm:$0xff] }
 0x1db   :  { %4264 = vtanh.f32 %v5420_v33  ;;  %v1726_v54 = vadd.f32 0.5, %v1720_v43  ;;  %v7134_v44 = vld [vmem:[#allocation89_spill] sm:$0xff]  ;;  %v7135_v43 = vld [vmem:[#allocation91_spill] sm:$0xff] }
 0x1e6   :  { %v4263_v50 = vpop.eup %4262 }
 0x1e7   :  { %v1737_v29 = vmul.f32 %v4263_v50, %v1725_v27  ;;  %v7136_v50 = vld [vmem:[#allocation93_spill] sm:$0xff]  ;;  %v7137_v27 = vld [vmem:[#allocation95_spill] sm:$0xff] }
 0x1e8   :  { %v4265_v20 = vpop.eup %4264 }
 0x1e9   :  { %v1738_v41 = vmul.f32 %v4265_v20, %v1726_v54  ;;  %v5423_v17 = vpack.c.bf16 %v1737_v29, %v1737_v29  ;;  %v7138_v54 = vld [vmem:[#allocation96_spill] sm:$0xff]  ;;  %v7139_v20 = vld [vmem:[#allocation98_spill] sm:$0xff] }
 0x1ea   :  { %v7140_v29 = vld [vmem:[#allocation100_spill] sm:$0xff] }
 0x1eb   :  { %v1751_v62 = vpack.c.bf16 %v1738_v41, %v1738_v41  ;;  %v7141_v41 = vld [vmem:[#allocation102_spill] sm:$0xff] }
 0x1ed   :  { %1784 = vmatprep.mubr.bf16.mxu1 %v1751_v62  ;;  %1825 = vmatprep.mubr.bf16.mxu0 %v1751_v62 }
 0x1ee   :  { %1785 = vmatmul.mubr.bf16.vlgmr.msra.gmra.mxu1 %v5423_v17  ;;  %1826 = vmatmul.mubr.bf16.vlgmr.msra.gmra.mxu0 %v5423_v17 }
 0x1ef   :  { %1835 = vmatpush1.bf16.msra.mxu1 %v7115_v31  ;;  %1876 = vmatpush1.bf16.msra.mxu0 %v7116_v6 }
 0x1f0   :  { %1866 = vmatprep.mubr.bf16.mxu1 %v1751_v62  ;;  %1907 = vmatprep.mubr.bf16.mxu0 %v1751_v62  ;;  %v7142_v62 = vld [vmem:[#allocation104_spill] sm:$0xff] }
 0x1f1   :  { %1836 = vmatprep.subr.bf16.mxu1 %v7117_v11  ;;  %1877 = vmatprep.subr.bf16.mxu0 %v7118_v48 }
 0x1f3   :  { %1837 = vmatpush1.bf16.msra.mxu1 %v7119_v18  ;;  %1878 = vmatpush1.bf16.msra.mxu0 %v7120_v4 }
 0x1f4   :  { %1838 = vmatprep.subr.bf16.mxu1 %v7121_v56  ;;  %1879 = vmatprep.subr.bf16.mxu0 %v7122_v3 }
 0x1f7   :  { %1839 = vmatpush1.bf16.msra.mxu1 %v7123_v46  ;;  %1880 = vmatpush1.bf16.msra.mxu0 %v7124_v22 }
 0x1f8   :  { %1840 = vmatprep.subr.bf16.mxu1 %v7125_v53  ;;  %1881 = vmatprep.subr.bf16.mxu0 %v7126_v57 }
 0x1fb   :  { %1841 = vmatpush1.bf16.msra.mxu1 %v7127_v8  ;;  %1882 = vmatpush1.bf16.msra.mxu0 %v7128_v24 }
 0x1fc   :  { %1842 = vmatprep.subr.bf16.mxu1 %v7129_v16  ;;  %1883 = vmatprep.subr.bf16.mxu0 %v7130_v60 }
 0x1ff   :  { %1843 = vmatpush1.bf16.msra.mxu1 %v7131_v63  ;;  %1884 = vmatpush1.bf16.msra.mxu0 %v5012_v61 }
 0x200   :  { %1844 = vmatprep.subr.bf16.mxu1 %v7132_v36  ;;  %1885 = vmatprep.subr.bf16.mxu0 %v5018_v1 }
 0x203   :  { %1845 = vmatpush1.bf16.msra.mxu1 %v7133_v38  ;;  %1886 = vmatpush1.bf16.msra.mxu0 %v5024_v0 }
 0x204   :  { %1846 = vmatprep.subr.bf16.mxu1 %v7134_v44  ;;  %1887 = vmatprep.subr.bf16.mxu0 %v5030_v26 }
 0x207   :  { %1847 = vmatpush1.bf16.msra.mxu1 %v7135_v43  ;;  %1888 = vmatpush1.bf16.msra.mxu0 %v5036_v47 }
 0x208   :  { %1848 = vmatprep.subr.bf16.mxu1 %v7136_v50  ;;  %1889 = vmatprep.subr.bf16.mxu0 %v5042_v51 }
 0x20b   :  { %1849 = vmatpush1.bf16.msra.mxu1 %v7137_v27  ;;  %1890 = vmatpush1.bf16.msra.mxu0 %v5048_v14 }
 0x20c   :  { %1850 = vmatprep.subr.bf16.mxu1 %v7138_v54  ;;  %1891 = vmatprep.subr.bf16.mxu0 %v5052_v13  ;;  %v7144_v13 = vld [vmem:[#allocation108_spill] sm:$0xff] }
 0x20f   :  { %1851 = vmatpush2.bf16.msra.mxu1 %v7139_v20  ;;  %1892 = vmatpush2.bf16.msra.mxu0 %v5056_v25  ;;  %v7145_v25 = vld [vmem:[#allocation110_spill] sm:$0xff] }
 0x210   :  { %1852 = vmatprep.subr.bf16.mxu1 %v7140_v29  ;;  %1893 = vmatprep.subr.bf16.mxu0 %v5059_v34  ;;  %v7146_v34 = vld [vmem:[#allocation112_spill] sm:$0xff] }
 0x213   :  { %1853 = vmatpush2.bf16.msra.mxu1 %v7141_v41  ;;  %1894 = vmatpush2.bf16.msra.mxu0 %v5064_v39  ;;  %v7147_v39 = vld [vmem:[#allocation114_spill] sm:$0xff] }
 0x214   :  { %1854 = vmatprep.subr.bf16.mxu1 %v7142_v62  ;;  %1895 = vmatprep.subr.bf16.mxu0 %v5068_v59  ;;  %v7148_v62 = vld [vmem:[#allocation130_spill] sm:$0xff]  ;;  %v7149_v59 = vld [vmem:[#allocation115_spill] sm:$0xff] }
 0x217   :  { %1855 = vmatpush2.bf16.msra.mxu1 %v7143_v5  ;;  %1896 = vmatpush2.bf16.msra.mxu0 %v5072_v23  ;;  %v7150_v5 = vld [vmem:[#allocation131_spill] sm:$0xff]  ;;  %v7151_v23 = vld [vmem:[#allocation116_spill] sm:$0xff] }
 0x218   :  { %1856 = vmatprep.subr.bf16.mxu1 %v7144_v13  ;;  %1897 = vmatprep.subr.bf16.mxu0 %v5076_v15  ;;  %v7152_v15 = vld [vmem:[#allocation117_spill] sm:$0xff] }
 0x21b   :  { %1857 = vmatpush2.bf16.msra.mxu1 %v7145_v25  ;;  %1898 = vmatpush2.bf16.msra.mxu0 %v5080_v49  ;;  %v7153_v25 = vld [vmem:[#allocation134_spill] sm:$0xff] }
 0x21c   :  { %1858 = vmatprep.subr.bf16.mxu1 %v7146_v34  ;;  %1899 = vmatprep.subr.bf16.mxu0 %v5084_v35  ;;  %v7154_v49 = vld [vmem:[#allocation118_spill] sm:$0xff]  ;;  %v7155_v34 = vld [vmem:[#allocation135_spill] sm:$0xff] }
 0x21d   :  { %v7156_v35 = vld [vmem:[#allocation119_spill] sm:$0xff] }
 0x21f   :  { %1859 = vmatpush2.bf16.msra.mxu1 %v7147_v39  ;;  %1900 = vmatpush2.bf16.msra.mxu0 %v7148_v62  ;;  %v7157_v62 = vld [vmem:[#allocation120_spill] sm:$0xff] }
 0x220   :  { %1860 = vmatprep.subr.bf16.mxu1 %v7149_v59  ;;  %1901 = vmatprep.subr.bf16.mxu0 %v7150_v5  ;;  %v7158_v5 = vld [vmem:[#allocation16_spill] sm:$0xff] }
 0x223   :  { %1861 = vmatpush2.bf16.msra.mxu1 %v7151_v23  ;;  %1902 = vmatpush2.bf16.msra.mxu0 %v5098_v40 }
 0x224   :  { %1862 = vmatprep.subr.bf16.mxu1 %v7152_v15  ;;  %1903 = vmatprep.subr.bf16.mxu0 %v7153_v25  ;;  %v7159_v25 = vld [vmem:[#allocation17_spill] sm:$0xff] }
 0x227   :  { %1863 = vmatpush2.bf16.msra.mxu1 %v7154_v49  ;;  %1904 = vmatpush2.bf16.msra.mxu0 %v7155_v34  ;;  %v7160_v34 = vld [vmem:[#allocation18_spill] sm:$0xff] }
 0x228   :  { %1864 = vmatprep.subr.bf16.mxu1 %v7156_v35  ;;  %1905 = vmatprep.subr.bf16.mxu0 %v5117_v52  ;;  %v7161_v52 = vld [vmem:[#allocation19_spill] sm:$0xff] }
 0x22b   :  { %1865 = vmatpush2.bf16.msra.mxu1 %v7157_v62  ;;  %1906 = vmatpush2.bf16.msra.mxu0 %v5126_v37  ;;  %v7162_v37 = vld [vmem:[#allocation20_spill] sm:$0xff] }
 0x22c   :  { %1973 = vmatprep.subr.bf16.mxu1 %v7158_v5  ;;  %2014 = vmatprep.subr.bf16.mxu0 %v4749_v2  ;;  %v7163_v2 = vld [vmem:[#allocation21_spill] sm:$0xff] }
 0x22e   :  { %1867 = vmatmul.mubr.bf16.vlgmr.msra.gmra.mxu1 %v5423_v17  ;;  %1908 = vmatmul.mubr.bf16.vlgmr.msra.gmra.mxu0 %v5423_v17  ;;  %v7164_v17 = vld [vmem:[#allocation22_spill] sm:$0xff] }
 0x22f   :  { %1974 = vmatpush1.bf16.msra.mxu1 %v7159_v25  ;;  %2015 = vmatpush1.bf16.msra.mxu0 %v4767_v10  ;;  %v7165_v10 = vld [vmem:[#allocation23_spill] sm:$0xff] }
 0x230   :  { %1975 = vmatprep.subr.bf16.mxu1 %v7160_v34  ;;  %2016 = vmatprep.subr.bf16.mxu0 %v4772_v12  ;;  %v7166_v12 = vld [vmem:[#allocation24_spill] sm:$0xff]  ;;  %v7213_v34 = vld [vmem:[#allocation138_spill] sm:$0xff] }
 0x233   :  { %1976 = vmatpush1.bf16.msra.mxu1 %v7161_v52  ;;  %2017 = vmatpush1.bf16.msra.mxu0 %v4779_v19  ;;  %v7167_v19 = vld [vmem:[#allocation25_spill] sm:$0xff] }
 0x234   :  { %1977 = vmatprep.subr.bf16.mxu1 %v7162_v37  ;;  %2018 = vmatprep.subr.bf16.mxu0 %v4785_v21  ;;  %v7168_v21 = vld [vmem:[#allocation26_spill] sm:$0xff]  ;;  %v7211_v37 = vld [vmem:[#allocation148_spill] sm:$0xff]  ;;  %v7212_v52 = vld [vmem:[#allocation141_spill] sm:$0xff] }
 0x237   :  { %1978 = vmatpush1.bf16.msra.mxu1 %v7163_v2  ;;  %2019 = vmatpush1.bf16.msra.mxu0 %v4792_v28  ;;  %v7169_v28 = vld [vmem:[#allocation27_spill] sm:$0xff] }
 0x238   :  { %1979 = vmatprep.subr.bf16.mxu1 %v7164_v17  ;;  %2020 = vmatprep.subr.bf16.mxu0 %v4798_v32  ;;  %v7170_v32 = vld [vmem:[#allocation28_spill] sm:$0xff] }
 0x23b   :  { %1980 = vmatpush1.bf16.msra.mxu1 %v7165_v10  ;;  %2021 = vmatpush1.bf16.msra.mxu0 %v4804_v42  ;;  %v7171_v42 = vld [vmem:[#allocation29_spill] sm:$0xff] }
 0x23c   :  { %1981 = vmatprep.subr.bf16.mxu1 %v7166_v12  ;;  %2022 = vmatprep.subr.bf16.mxu0 %v4810_v45  ;;  %v7172_v12 = vld [vmem:[#allocation59_spill] sm:$0xff]  ;;  %v7173_v45 = vld [vmem:[#allocation30_spill] sm:$0xff] }
 0x23f   :  { %1982 = vmatpush1.bf16.msra.mxu1 %v7167_v19  ;;  %2023 = vmatpush1.bf16.msra.mxu0 %v4816_v55  ;;  %v7174_v19 = vld [vmem:[#allocation61_spill] sm:$0xff]  ;;  %v7175_v55 = vld [vmem:[#allocation32_spill] sm:$0xff] }
 0x240   :  { %1983 = vmatprep.subr.bf16.mxu1 %v7168_v21  ;;  %2024 = vmatprep.subr.bf16.mxu0 %v4822_v58  ;;  %v7176_v21 = vld [vmem:[#allocation63_spill] sm:$0xff]  ;;  %v7177_v58 = vld [vmem:[#allocation33_spill] sm:$0xff] }
 0x243   :  { %1984 = vmatpush1.bf16.msra.mxu1 %v7169_v28  ;;  %2025 = vmatpush1.bf16.msra.mxu0 %v4828_v7  ;;  %v7178_v28 = vld [vmem:[#allocation64_spill] sm:$0xff]  ;;  %v7179_v7 = vld [vmem:[#allocation34_spill] sm:$0xff] }
 0x244   :  { %1985 = vmatprep.subr.bf16.mxu1 %v7170_v32  ;;  %2026 = vmatprep.subr.bf16.mxu0 %v4834_v9  ;;  %v7180_v32 = vld [vmem:[#allocation66_spill] sm:$0xff]  ;;  %v7181_v9 = vld [vmem:[#allocation36_spill] sm:$0xff] }
 0x247   :  { %1986 = vmatpush1.bf16.msra.mxu1 %v7171_v42  ;;  %2027 = vmatpush1.bf16.msra.mxu0 %v7172_v12  ;;  %v7182_v42 = vld [vmem:[#allocation68_spill] sm:$0xff]  ;;  %v7183_v12 = vld [vmem:[#allocation38_spill] sm:$0xff] }
 0x248   :  { %1987 = vmatprep.subr.bf16.mxu1 %v7173_v45  ;;  %2028 = vmatprep.subr.bf16.mxu0 %v7174_v19  ;;  %v7184_v45 = vld [vmem:[#allocation70_spill] sm:$0xff]  ;;  %v7185_v19 = vld [vmem:[#allocation40_spill] sm:$0xff] }
 0x24b   :  { %1988 = vmatpush1.bf16.msra.mxu1 %v7175_v55  ;;  %2029 = vmatpush1.bf16.msra.mxu0 %v7176_v21  ;;  %v7186_v55 = vld [vmem:[#allocation72_spill] sm:$0xff]  ;;  %v7187_v21 = vld [vmem:[#allocation42_spill] sm:$0xff] }
 0x24c   :  { %1989 = vmatprep.subr.bf16.mxu1 %v7177_v58  ;;  %2030 = vmatprep.subr.bf16.mxu0 %v7178_v28  ;;  %v7188_v58 = vld [vmem:[#allocation74_spill] sm:$0xff]  ;;  %v7189_v28 = vld [vmem:[#allocation44_spill] sm:$0xff] }
 0x24f   :  { %1990 = vmatpush2.bf16.msra.mxu1 %v7179_v7  ;;  %2031 = vmatpush2.bf16.msra.mxu0 %v7180_v32  ;;  %v7190_v7 = vld [vmem:[#allocation76_spill] sm:$0xff]  ;;  %v7191_v32 = vld [vmem:[#allocation46_spill] sm:$0xff] }
 0x250   :  { %1991 = vmatprep.subr.bf16.mxu1 %v7181_v9  ;;  %2032 = vmatprep.subr.bf16.mxu0 %v7182_v42  ;;  %v7192_v9 = vld [vmem:[#allocation78_spill] sm:$0xff]  ;;  %v7193_v42 = vld [vmem:[#allocation48_spill] sm:$0xff] }
 0x253   :  { %1992 = vmatpush2.bf16.msra.mxu1 %v7183_v12  ;;  %2033 = vmatpush2.bf16.msra.mxu0 %v7184_v45  ;;  %v7194_v12 = vld [vmem:[#allocation80_spill] sm:$0xff]  ;;  %v7195_v45 = vld [vmem:[#allocation50_spill] sm:$0xff] }
 0x254   :  { %1993 = vmatprep.subr.bf16.mxu1 %v7185_v19  ;;  %2034 = vmatprep.subr.bf16.mxu0 %v7186_v55  ;;  %v7196_v19 = vld [vmem:[#allocation82_spill] sm:$0xff]  ;;  %v7197_v55 = vld [vmem:[#allocation52_spill] sm:$0xff] }
 0x257   :  { %1994 = vmatpush2.bf16.msra.mxu1 %v7187_v21  ;;  %2035 = vmatpush2.bf16.msra.mxu0 %v7188_v58  ;;  %v7198_v21 = vld [vmem:[#allocation84_spill] sm:$0xff]  ;;  %v7199_v58 = vld [vmem:[#allocation54_spill] sm:$0xff] }
 0x258   :  { %1995 = vmatprep.subr.bf16.mxu1 %v7189_v28  ;;  %2036 = vmatprep.subr.bf16.mxu0 %v7190_v7  ;;  %v7200_v28 = vld [vmem:[#allocation86_spill] sm:$0xff]  ;;  %v7201_v7 = vld [vmem:[#allocation56_spill] sm:$0xff] }
 0x25b   :  { %1996 = vmatpush2.bf16.msra.mxu1 %v7191_v32  ;;  %2037 = vmatpush2.bf16.msra.mxu0 %v7192_v9  ;;  %v7202_v32 = vld [vmem:[#allocation88_spill] sm:$0xff]  ;;  %v7203_v9 = vld [vmem:[#allocation58_spill] sm:$0xff] }
 0x25c   :  { %1997 = vmatprep.subr.bf16.mxu1 %v7193_v42  ;;  %2038 = vmatprep.subr.bf16.mxu0 %v7194_v12  ;;  %v7204_v42 = vld [vmem:[#allocation90_spill] sm:$0xff]  ;;  %v7205_v12 = vld [vmem:[#allocation60_spill] sm:$0xff] }
 0x25f   :  { %1998 = vmatpush2.bf16.msra.mxu1 %v7195_v45  ;;  %2039 = vmatpush2.bf16.msra.mxu0 %v7196_v19  ;;  %v7206_v45 = vld [vmem:[#allocation92_spill] sm:$0xff]  ;;  %v7207_v19 = vld [vmem:[#allocation62_spill] sm:$0xff] }
 0x260   :  { %1999 = vmatprep.subr.bf16.mxu1 %v7197_v55  ;;  %2040 = vmatprep.subr.bf16.mxu0 %v7198_v21  ;;  %v7208_v55 = vld [vmem:[#allocation94_spill] sm:$0xff]  ;;  %v7209_v21 = vld [vmem:[#allocation65_spill] sm:$0xff] }
 0x263   :  { %2000 = vmatpush2.bf16.msra.mxu1 %v7199_v58  ;;  %2041 = vmatpush2.bf16.msra.mxu0 %v7200_v28  ;;  %v7210_v58 = vld [vmem:[#allocation97_spill] sm:$0xff] }
 0x264   :  { %2001 = vmatprep.subr.bf16.mxu1 %v7201_v7  ;;  %2042 = vmatprep.subr.bf16.mxu0 %v7202_v32 }
 0x267   :  { %2002 = vmatpush2.bf16.msra.mxu1 %v7203_v9  ;;  %2043 = vmatpush2.bf16.msra.mxu0 %v7204_v42 }
 0x268   :  { %2003 = vmatprep.subr.bf16.mxu1 %v7205_v12  ;;  %2044 = vmatprep.subr.bf16.mxu0 %v7206_v45 }
 0x26b   :  { %2004 = vmatpush2.bf16.msra.mxu1 %v7207_v19  ;;  %2045 = vmatpush2.bf16.msra.mxu0 %v7208_v55  ;;  %v7214_v19 = vld [vmem:[#allocation143_spill] sm:$0xff]  ;;  %v7215_v55 = vld [vmem:[#allocation150_spill] sm:$0xff] }
 0x26c   :  { %2055 = vmatprep.subr.bf16.mxu1 %v7209_v21  ;;  %2096 = vmatprep.subr.bf16.mxu0 %v7210_v58  ;;  %v276_v25 = vadd.f32 %v7214_v19, %v7213_v34 }
 0x2ae   :  { %v1786_v28 = vpop.f32.mrf.mxu1  ;;  %v1827_v7 = vpop.f32.mrf.mxu0 }
 0x2af   :  { %v1918_v12 = vadd.f32 %v1827_v7, %v7211_v37  ;;  %v1916_v45 = vadd.f32 %v1786_v28, %v7212_v52  ;;  %v7217_v28 = vld [vmem:[#allocation178_spill] sm:$0xff] }
 0x2b0   :  { %v1788_v10 = vpop.f32.mrf.mxu1  ;;  %v1829_v32 = vpop.f32.mrf.mxu0 }
 0x2b1   :  { %v1919_v5 = vadd.f32 %v1829_v32, %v7215_v55  ;;  %v1926_v21 = vmul.f32 0.5, %v1918_v12  ;;  %v1917_v62 = vadd.f32 %v1788_v10, %v276_v25  ;;  %v1924_v58 = vmul.f32 0.5, %v1916_v45  ;;  %v7219_v25 = vld [vmem:[#allocation163_spill] sm:$0xff] }
 0x2b2   :  { %v1790_v17 = vpop.f32.mrf.mxu1  ;;  %v1831_v9 = vpop.f32.mrf.mxu0 }
 0x2b3   :  { %v1927_v35 = vmul.f32 0.5, %v1919_v5  ;;  %4266 = vtanh.f32 %v1926_v21  ;;  %v1925_v49 = vmul.f32 0.5, %v1917_v62  ;;  %v7216_v9 = vld [vmem:[#allocation176_spill] sm:$0xff]  ;;  %v7218_v21 = vld [vmem:[#allocation161_spill] sm:$0xff] }
 0x2b4   :  { %v1791_v2 = vpop.f32.mrf.mxu1  ;;  %v1832_v42 = vpop.f32.mrf.mxu0  ;;  %4268 = vtanh.f32 %v1924_v58 }
 0x2b5   :  { %4270 = vtanh.f32 %v1927_v35 }
 0x2b6   :  { %4272 = vtanh.f32 %v1925_v49 }
 0x2c0   :  { %v4267_v12 = vpop.eup %4266 }
 0x2c1   :  { %v4269_v58 = vpop.eup %4268  ;;  %v1938_v5 = vmul.f32 0.5, %v4267_v12 }
 0x2c2   :  { %v4271_v35 = vpop.eup %4270 }
 0x2c3   :  { %v4273_v62 = vpop.eup %4272  ;;  %v1939_v34 = vmul.f32 0.5, %v4271_v35  ;;  %v1944_v15 = vadd.f32 0.5, %v1938_v5 }
 0x2ee   :  { %v1868_v2 = vpop.f32.mrf.mxu1  ;;  %v1909_v42 = vpop.f32.mrf.mxu0 }
 0x2ef   :  { %v1922_v7 = vadd.f32 %v1909_v42, %v7216_v9  ;;  %v1920_v55 = vadd.f32 %v1868_v2, %v7218_v21  ;;  %v1936_v42 = vmul.f32 0.5, %v4269_v58 }
 0x2f0   :  { %v1870_v37 = vpop.f32.mrf.mxu1  ;;  %v1911_v52 = vpop.f32.mrf.mxu0 }
 0x2f1   :  { %4274 = vtanh.f32 %v1922_v7  ;;  %v1923_v19 = vadd.f32 %v1911_v52, %v7217_v28  ;;  %v1921_v49 = vadd.f32 %v1870_v37, %v7219_v25  ;;  %v1928_v9 = vmul.f32 0.5, %v1920_v55 }
 0x2f2   :  { %v1872_v17 = vpop.f32.mrf.mxu1  ;;  %v1913_v32 = vpop.f32.mrf.mxu0  ;;  %v1937_v52 = vmul.f32 0.5, %v4273_v62  ;;  %v1942_v28 = vadd.f32 0.5, %v1936_v42 }
 0x2f3   :  { %4276 = vtanh.f32 %v1923_v19  ;;  %v1929_v7 = vmul.f32 0.5, %v1921_v49  ;;  %v1945_v19 = vadd.f32 0.5, %v1939_v34  ;;  %v1950_v32 = vmul.f32 %v1944_v15, %v5417_v30 }
 0x2f4   :  { %v1873_v10 = vpop.f32.mrf.mxu1  ;;  %v1914_v45 = vpop.f32.mrf.mxu0  ;;  %4278 = vtanh.f32 %v1928_v9 }
 0x2f5   :  { %4280 = vtanh.f32 %v1929_v7  ;;  %v1943_v10 = vadd.f32 0.5, %v1937_v52  ;;  %v1951_v12 = vmul.f32 %v1945_v19, %v5420_v33  ;;  %v7220_v33 = vld [vmem:[#allocation121_spill] sm:$0xff]  ;;  %v7221_v52 = vld [vmem:[#allocation122_spill] sm:$0xff]  ;;  %v7224_v19 = vld [vmem:[#allocation104_spill] sm:$0xff] }
 0x2fe   :  { %v4275_v17 = vpop.eup %4274 }
 0x2ff   :  { %v1952_v2 = vmul.f32 %v4275_v17, %v1942_v28  ;;  %v7222_v28 = vld [vmem:[#allocation123_spill] sm:$0xff]  ;;  %v7223_v17 = vld [vmem:[#allocation124_spill] sm:$0xff] }
 0x300   :  { %v4277_v45 = vpop.eup %4276 }
 0x301   :  { %v5567_v37 = vadd.f32 %v1952_v2, %v1950_v32  ;;  %v1953_v21 = vmul.f32 %v4277_v45, %v1943_v10  ;;  %v4279_v58 = vpop.eup %4278  ;;  %v7225_v32 = vld [vmem:[#allocation125_spill] sm:$0xff]  ;;  %v7226_v2 = vld [vmem:[#allocation106_spill] sm:$0xff]  ;;  %v7228_v45 = vld [vmem:[#allocation127_spill] sm:$0xff] }
 0x302   :  { %v4281_v25 = vpop.eup %4280  ;;  %v1940_v34 = vmul.f32 0.5, %v4279_v58  ;;  %v7227_v10 = vld [vmem:[#allocation126_spill] sm:$0xff]  ;;  %v7231_v58 = vld [vmem:[#allocation112_spill] sm:$0xff] }
 0x303   :  { %4282 = vtanh.f32 %v5567_v37  ;;  %v5571_v55 = vadd.f32 %v1953_v21, %v1951_v12  ;;  %v1941_v49 = vmul.f32 0.5, %v4281_v25  ;;  %v7229_v12 = vld [vmem:[#allocation110_spill] sm:$0xff]  ;;  %v7230_v21 = vld [vmem:[#allocation128_spill] sm:$0xff]  ;;  %v7232_v25 = vld [vmem:[#allocation129_spill] sm:$0xff] }
 0x304   :  { %v1946_v15 = vadd.f32 0.5, %v1940_v34  ;;  %v7233_v34 = vld [vmem:[#allocation130_spill] sm:$0xff] }
 0x305   :  { %4284 = vtanh.f32 %v5571_v55  ;;  %v1947_v30 = vadd.f32 0.5, %v1941_v49  ;;  %v7234_v49 = vld [vmem:[#allocation131_spill] sm:$0xff] }
 0x310   :  { %v4283_v35 = vpop.eup %4282 }
 0x311   :  { %v1958_v62 = vmul.f32 %v4283_v35, %v1946_v15  ;;  %v7235_v35 = vld [vmem:[#allocation117_spill] sm:$0xff]  ;;  %v7236_v15 = vld [vmem:[#allocation134_spill] sm:$0xff] }
 0x312   :  { %v4285_v5 = vpop.eup %4284 }
 0x313   :  { %v1959_v42 = vmul.f32 %v4285_v5, %v1947_v30  ;;  %v5574_v7 = vpack.c.bf16 %v1958_v62, %v1958_v62  ;;  %v7237_v30 = vld [vmem:[#allocation118_spill] sm:$0xff]  ;;  %v7238_v5 = vld [vmem:[#allocation135_spill] sm:$0xff] }
 0x314   :  { %v7239_v62 = vld [vmem:[#allocation119_spill] sm:$0xff] }
 0x315   :  { %v1972_v9 = vpack.c.bf16 %v1959_v42, %v1959_v42  ;;  %v7240_v42 = vld [vmem:[#allocation136_spill] sm:$0xff] }
 0x317   :  { %2005 = vmatprep.mubr.bf16.mxu1 %v1972_v9  ;;  %2046 = vmatprep.mubr.bf16.mxu0 %v1972_v9 }
 0x318   :  { %2006 = vmatmul.mubr.bf16.vlgmr.msra.gmra.mxu1 %v5574_v7  ;;  %2047 = vmatmul.mubr.bf16.vlgmr.msra.gmra.mxu0 %v5574_v7 }
 0x319   :  { %2056 = vmatpush1.bf16.msra.mxu1 %v7115_v31  ;;  %2097 = vmatpush1.bf16.msra.mxu0 %v7116_v6 }
 0x31a   :  { %2087 = vmatprep.mubr.bf16.mxu1 %v1972_v9  ;;  %2128 = vmatprep.mubr.bf16.mxu0 %v1972_v9  ;;  %v7241_v9 = vld [vmem:[#allocation120_spill] sm:$0xff] }
 0x31b   :  { %2057 = vmatprep.subr.bf16.mxu1 %v7117_v11  ;;  %2098 = vmatprep.subr.bf16.mxu0 %v7118_v48 }
 0x31d   :  { %2058 = vmatpush1.bf16.msra.mxu1 %v7119_v18  ;;  %2099 = vmatpush1.bf16.msra.mxu0 %v7120_v4 }
 0x31e   :  { %2059 = vmatprep.subr.bf16.mxu1 %v7121_v56  ;;  %2100 = vmatprep.subr.bf16.mxu0 %v7122_v3 }
 0x321   :  { %2060 = vmatpush1.bf16.msra.mxu1 %v7123_v46  ;;  %2101 = vmatpush1.bf16.msra.mxu0 %v7124_v22 }
 0x322   :  { %2061 = vmatprep.subr.bf16.mxu1 %v7125_v53  ;;  %2102 = vmatprep.subr.bf16.mxu0 %v7126_v57 }
 0x325   :  { %2062 = vmatpush1.bf16.msra.mxu1 %v7127_v8  ;;  %2103 = vmatpush1.bf16.msra.mxu0 %v7128_v24 }
 0x326   :  { %2063 = vmatprep.subr.bf16.mxu1 %v7129_v16  ;;  %2104 = vmatprep.subr.bf16.mxu0 %v7130_v60 }
 0x329   :  { %2064 = vmatpush1.bf16.msra.mxu1 %v7131_v63  ;;  %2105 = vmatpush1.bf16.msra.mxu0 %v5012_v61 }
 0x32a   :  { %2065 = vmatprep.subr.bf16.mxu1 %v7132_v36  ;;  %2106 = vmatprep.subr.bf16.mxu0 %v5018_v1 }
 0x32d   :  { %2066 = vmatpush1.bf16.msra.mxu1 %v7133_v38  ;;  %2107 = vmatpush1.bf16.msra.mxu0 %v5024_v0 }
 0x32e   :  { %2067 = vmatprep.subr.bf16.mxu1 %v7134_v44  ;;  %2108 = vmatprep.subr.bf16.mxu0 %v5030_v26 }
 0x331   :  { %2068 = vmatpush1.bf16.msra.mxu1 %v7135_v43  ;;  %2109 = vmatpush1.bf16.msra.mxu0 %v5036_v47 }
 0x332   :  { %2069 = vmatprep.subr.bf16.mxu1 %v7136_v50  ;;  %2110 = vmatprep.subr.bf16.mxu0 %v5042_v51 }
 0x335   :  { %2070 = vmatpush1.bf16.msra.mxu1 %v7137_v27  ;;  %2111 = vmatpush1.bf16.msra.mxu0 %v5048_v14 }
 0x336   :  { %2071 = vmatprep.subr.bf16.mxu1 %v7138_v54  ;;  %2112 = vmatprep.subr.bf16.mxu0 %v7220_v33 }
 0x339   :  { %2072 = vmatpush2.bf16.msra.mxu1 %v7139_v20  ;;  %2113 = vmatpush2.bf16.msra.mxu0 %v7221_v52 }
 0x33a   :  { %2073 = vmatprep.subr.bf16.mxu1 %v7140_v29  ;;  %2114 = vmatprep.subr.bf16.mxu0 %v7222_v28 }
 0x33d   :  { %2074 = vmatpush2.bf16.msra.mxu1 %v7141_v41  ;;  %2115 = vmatpush2.bf16.msra.mxu0 %v7223_v17 }
 0x33e   :  { %2075 = vmatprep.subr.bf16.mxu1 %v7224_v19  ;;  %2116 = vmatprep.subr.bf16.mxu0 %v7225_v32 }
 0x341   :  { %2076 = vmatpush2.bf16.msra.mxu1 %v7226_v2  ;;  %2117 = vmatpush2.bf16.msra.mxu0 %v7227_v10 }
 0x342   :  { %2077 = vmatprep.subr.bf16.mxu1 %v7144_v13  ;;  %2118 = vmatprep.subr.bf16.mxu0 %v7228_v45 }
 0x345   :  { %2078 = vmatpush2.bf16.msra.mxu1 %v7229_v12  ;;  %2119 = vmatpush2.bf16.msra.mxu0 %v7230_v21  ;;  %v7311_v21 = vld [vmem:[#allocation154_spill] sm:$0xff] }
 0x346   :  { %2079 = vmatprep.subr.bf16.mxu1 %v7231_v58  ;;  %2120 = vmatprep.subr.bf16.mxu0 %v7232_v25  ;;  %v7309_v25 = vld [vmem:[#allocation152_spill] sm:$0xff]  ;;  %v7310_v58 = vld [vmem:[#allocation145_spill] sm:$0xff] }
 0x349   :  { %2080 = vmatpush2.bf16.msra.mxu1 %v7147_v39  ;;  %2121 = vmatpush2.bf16.msra.mxu0 %v7233_v34 }
 0x34a   :  { %2081 = vmatprep.subr.bf16.mxu1 %v7149_v59  ;;  %2122 = vmatprep.subr.bf16.mxu0 %v7234_v49  ;;  %v7242_v59 = vld [vmem:[#allocation137_spill] sm:$0xff]  ;;  %v7243_v49 = vld [vmem:[#allocation16_spill] sm:$0xff] }
 0x34d   :  { %2082 = vmatpush2.bf16.msra.mxu1 %v7151_v23  ;;  %2123 = vmatpush2.bf16.msra.mxu0 %v5098_v40  ;;  %v7244_v23 = vld [vmem:[#allocation31_spill] sm:$0xff] }
 0x34e   :  { %2083 = vmatprep.subr.bf16.mxu1 %v7235_v35  ;;  %2124 = vmatprep.subr.bf16.mxu0 %v7236_v15  ;;  %v7245_v15 = vld [vmem:[#allocation17_spill] sm:$0xff]  ;;  %v7254_v35 = vld [vmem:[#allocation43_spill] sm:$0xff] }
 0x351   :  { %2084 = vmatpush2.bf16.msra.mxu1 %v7237_v30  ;;  %2125 = vmatpush2.bf16.msra.mxu0 %v7238_v5  ;;  %v7246_v30 = vld [vmem:[#allocation35_spill] sm:$0xff]  ;;  %v7247_v5 = vld [vmem:[#allocation18_spill] sm:$0xff] }
 0x352   :  { %2085 = vmatprep.subr.bf16.mxu1 %v7239_v62  ;;  %2126 = vmatprep.subr.bf16.mxu0 %v7240_v42  ;;  %v7248_v62 = vld [vmem:[#allocation37_spill] sm:$0xff]  ;;  %v7249_v42 = vld [vmem:[#allocation19_spill] sm:$0xff] }
 0x355   :  { %2086 = vmatpush2.bf16.msra.mxu1 %v7241_v9  ;;  %2127 = vmatpush2.bf16.msra.mxu0 %v7242_v59  ;;  %v7250_v9 = vld [vmem:[#allocation39_spill] sm:$0xff]  ;;  %v7251_v59 = vld [vmem:[#allocation20_spill] sm:$0xff] }
 0x356   :  { %2194 = vmatprep.subr.bf16.mxu1 %v7243_v49  ;;  %2235 = vmatprep.subr.bf16.mxu0 %v7244_v23  ;;  %v7252_v49 = vld [vmem:[#allocation41_spill] sm:$0xff] }
 0x357   :  { %v7253_v23 = vld [vmem:[#allocation21_spill] sm:$0xff] }
 0x358   :  { %2088 = vmatmul.mubr.bf16.vlgmr.msra.gmra.mxu1 %v5574_v7  ;;  %2129 = vmatmul.mubr.bf16.vlgmr.msra.gmra.mxu0 %v5574_v7  ;;  %v7255_v7 = vld [vmem:[#allocation22_spill] sm:$0xff] }
 0x359   :  { %2195 = vmatpush1.bf16.msra.mxu1 %v7245_v15  ;;  %2236 = vmatpush1.bf16.msra.mxu0 %v7246_v30  ;;  %v7256_v15 = vld [vmem:[#allocation45_spill] sm:$0xff]  ;;  %v7257_v30 = vld [vmem:[#allocation23_spill] sm:$0xff] }
 0x35a   :  { %2196 = vmatprep.subr.bf16.mxu1 %v7247_v5  ;;  %2237 = vmatprep.subr.bf16.mxu0 %v7248_v62  ;;  %v7258_v5 = vld [vmem:[#allocation47_spill] sm:$0xff]  ;;  %v7259_v62 = vld [vmem:[#allocation24_spill] sm:$0xff] }
 0x35d   :  { %2197 = vmatpush1.bf16.msra.mxu1 %v7249_v42  ;;  %2238 = vmatpush1.bf16.msra.mxu0 %v7250_v9  ;;  %v7260_v42 = vld [vmem:[#allocation49_spill] sm:$0xff] }
 0x35e   :  { %2198 = vmatprep.subr.bf16.mxu1 %v7251_v59  ;;  %2239 = vmatprep.subr.bf16.mxu0 %v7252_v49  ;;  %v7261_v9 = vld [vmem:[#allocation25_spill] sm:$0xff]  ;;  %v7262_v59 = vld [vmem:[#allocation51_spill] sm:$0xff]  ;;  %v7263_v49 = vld [vmem:[#allocation26_spill] sm:$0xff] }
 0x361   :  { %2199 = vmatpush1.bf16.msra.mxu1 %v7253_v23  ;;  %2240 = vmatpush1.bf16.msra.mxu0 %v7254_v35  ;;  %v7264_v23 = vld [vmem:[#allocation53_spill] sm:$0xff]  ;;  %v7265_v35 = vld [vmem:[#allocation27_spill] sm:$0xff] }
 0x362   :  { %2200 = vmatprep.subr.bf16.mxu1 %v7255_v7  ;;  %2241 = vmatprep.subr.bf16.mxu0 %v7256_v15  ;;  %v7266_v7 = vld [vmem:[#allocation55_spill] sm:$0xff]  ;;  %v7267_v15 = vld [vmem:[#allocation28_spill] sm:$0xff] }
 0x365   :  { %2201 = vmatpush1.bf16.msra.mxu1 %v7257_v30  ;;  %2242 = vmatpush1.bf16.msra.mxu0 %v7258_v5  ;;  %v7268_v30 = vld [vmem:[#allocation57_spill] sm:$0xff] }
 0x366   :  { %2202 = vmatprep.subr.bf16.mxu1 %v7259_v62  ;;  %2243 = vmatprep.subr.bf16.mxu0 %v7260_v42  ;;  %v7269_v5 = vld [vmem:[#allocation29_spill] sm:$0xff]  ;;  %v7270_v62 = vld [vmem:[#allocation59_spill] sm:$0xff]  ;;  %v7271_v42 = vld [vmem:[#allocation30_spill] sm:$0xff] }
 0x369   :  { %2203 = vmatpush1.bf16.msra.mxu1 %v7261_v9  ;;  %2244 = vmatpush1.bf16.msra.mxu0 %v7262_v59  ;;  %v7272_v9 = vld [vmem:[#allocation61_spill] sm:$0xff]  ;;  %v7273_v59 = vld [vmem:[#allocation32_spill] sm:$0xff] }
 0x36a   :  { %2204 = vmatprep.subr.bf16.mxu1 %v7263_v49  ;;  %2245 = vmatprep.subr.bf16.mxu0 %v7264_v23  ;;  %v7274_v49 = vld [vmem:[#allocation63_spill] sm:$0xff]  ;;  %v7275_v23 = vld [vmem:[#allocation33_spill] sm:$0xff] }
 0x36d   :  { %2205 = vmatpush1.bf16.msra.mxu1 %v7265_v35  ;;  %2246 = vmatpush1.bf16.msra.mxu0 %v7266_v7  ;;  %v7276_v35 = vld [vmem:[#allocation64_spill] sm:$0xff]  ;;  %v7277_v7 = vld [vmem:[#allocation34_spill] sm:$0xff] }
 0x36e   :  { %2206 = vmatprep.subr.bf16.mxu1 %v7267_v15  ;;  %2247 = vmatprep.subr.bf16.mxu0 %v7268_v30  ;;  %v7278_v15 = vld [vmem:[#allocation66_spill] sm:$0xff]  ;;  %v7279_v30 = vld [vmem:[#allocation36_spill] sm:$0xff] }
 0x371   :  { %2207 = vmatpush1.bf16.msra.mxu1 %v7269_v5  ;;  %2248 = vmatpush1.bf16.msra.mxu0 %v7270_v62  ;;  %v7280_v5 = vld [vmem:[#allocation68_spill] sm:$0xff]  ;;  %v7281_v62 = vld [vmem:[#allocation38_spill] sm:$0xff] }
 0x372   :  { %2208 = vmatprep.subr.bf16.mxu1 %v7271_v42  ;;  %2249 = vmatprep.subr.bf16.mxu0 %v7272_v9  ;;  %v7282_v42 = vld [vmem:[#allocation70_spill] sm:$0xff]  ;;  %v7283_v9 = vld [vmem:[#allocation40_spill] sm:$0xff] }
 0x375   :  { %2209 = vmatpush1.bf16.msra.mxu1 %v7273_v59  ;;  %2250 = vmatpush1.bf16.msra.mxu0 %v7274_v49  ;;  %v7284_v59 = vld [vmem:[#allocation72_spill] sm:$0xff]  ;;  %v7285_v49 = vld [vmem:[#allocation42_spill] sm:$0xff] }
 0x376   :  { %2210 = vmatprep.subr.bf16.mxu1 %v7275_v23  ;;  %2251 = vmatprep.subr.bf16.mxu0 %v7276_v35  ;;  %v7286_v23 = vld [vmem:[#allocation74_spill] sm:$0xff]  ;;  %v7287_v35 = vld [vmem:[#allocation44_spill] sm:$0xff] }
 0x379   :  { %2211 = vmatpush2.bf16.msra.mxu1 %v7277_v7  ;;  %2252 = vmatpush2.bf16.msra.mxu0 %v7278_v15  ;;  %v7288_v7 = vld [vmem:[#allocation76_spill] sm:$0xff]  ;;  %v7289_v15 = vld [vmem:[#allocation46_spill] sm:$0xff] }
 0x37a   :  { %2212 = vmatprep.subr.bf16.mxu1 %v7279_v30  ;;  %2253 = vmatprep.subr.bf16.mxu0 %v7280_v5  ;;  %v7290_v30 = vld [vmem:[#allocation78_spill] sm:$0xff]  ;;  %v7291_v5 = vld [vmem:[#allocation48_spill] sm:$0xff] }
 0x37d   :  { %2213 = vmatpush2.bf16.msra.mxu1 %v7281_v62  ;;  %2254 = vmatpush2.bf16.msra.mxu0 %v7282_v42  ;;  %v7292_v62 = vld [vmem:[#allocation80_spill] sm:$0xff]  ;;  %v7293_v42 = vld [vmem:[#allocation50_spill] sm:$0xff] }
 0x37e   :  { %2214 = vmatprep.subr.bf16.mxu1 %v7283_v9  ;;  %2255 = vmatprep.subr.bf16.mxu0 %v7284_v59  ;;  %v7294_v9 = vld [vmem:[#allocation82_spill] sm:$0xff]  ;;  %v7295_v59 = vld [vmem:[#allocation52_spill] sm:$0xff] }
 0x381   :  { %2215 = vmatpush2.bf16.msra.mxu1 %v7285_v49  ;;  %2256 = vmatpush2.bf16.msra.mxu0 %v7286_v23  ;;  %v7296_v49 = vld [vmem:[#allocation84_spill] sm:$0xff]  ;;  %v7297_v23 = vld [vmem:[#allocation54_spill] sm:$0xff] }
 0x382   :  { %2216 = vmatprep.subr.bf16.mxu1 %v7287_v35  ;;  %2257 = vmatprep.subr.bf16.mxu0 %v7288_v7  ;;  %v7298_v35 = vld [vmem:[#allocation86_spill] sm:$0xff]  ;;  %v7299_v7 = vld [vmem:[#allocation56_spill] sm:$0xff] }
 0x385   :  { %2217 = vmatpush2.bf16.msra.mxu1 %v7289_v15  ;;  %2258 = vmatpush2.bf16.msra.mxu0 %v7290_v30  ;;  %v7300_v15 = vld [vmem:[#allocation88_spill] sm:$0xff]  ;;  %v7301_v30 = vld [vmem:[#allocation58_spill] sm:$0xff] }
 0x386   :  { %2218 = vmatprep.subr.bf16.mxu1 %v7291_v5  ;;  %2259 = vmatprep.subr.bf16.mxu0 %v7292_v62  ;;  %v7302_v5 = vld [vmem:[#allocation90_spill] sm:$0xff]  ;;  %v7303_v62 = vld [vmem:[#allocation60_spill] sm:$0xff] }
 0x389   :  { %2219 = vmatpush2.bf16.msra.mxu1 %v7293_v42  ;;  %2260 = vmatpush2.bf16.msra.mxu0 %v7294_v9  ;;  %v7304_v42 = vld [vmem:[#allocation92_spill] sm:$0xff]  ;;  %v7305_v9 = vld [vmem:[#allocation62_spill] sm:$0xff] }
 0x38a   :  { %2220 = vmatprep.subr.bf16.mxu1 %v7295_v59  ;;  %2261 = vmatprep.subr.bf16.mxu0 %v7296_v49  ;;  %v7306_v59 = vld [vmem:[#allocation94_spill] sm:$0xff]  ;;  %v7307_v49 = vld [vmem:[#allocation65_spill] sm:$0xff] }
 0x38d   :  { %2221 = vmatpush2.bf16.msra.mxu1 %v7297_v23  ;;  %2262 = vmatpush2.bf16.msra.mxu0 %v7298_v35  ;;  %v7308_v23 = vld [vmem:[#allocation97_spill] sm:$0xff] }
 0x38e   :  { %2222 = vmatprep.subr.bf16.mxu1 %v7299_v7  ;;  %2263 = vmatprep.subr.bf16.mxu0 %v7300_v15 }
 0x391   :  { %2223 = vmatpush2.bf16.msra.mxu1 %v7301_v30  ;;  %2264 = vmatpush2.bf16.msra.mxu0 %v7302_v5 }
 0x392   :  { %2224 = vmatprep.subr.bf16.mxu1 %v7303_v62  ;;  %2265 = vmatprep.subr.bf16.mxu0 %v7304_v42 }
 0x395   :  { %2225 = vmatpush2.bf16.msra.mxu1 %v7305_v9  ;;  %2266 = vmatpush2.bf16.msra.mxu0 %v7306_v59  ;;  %v7312_v59 = vld [vmem:[#allocation146_spill] sm:$0xff] }
 0x396   :  { %2276 = vmatprep.subr.bf16.mxu1 %v7307_v49  ;;  %2317 = vmatprep.subr.bf16.mxu0 %v7308_v23 }
 0x3d8   :  { %v2007_v35 = vpop.f32.mrf.mxu1  ;;  %v2048_v7 = vpop.f32.mrf.mxu0 }
 0x3d9   :  { %v2139_v62 = vadd.f32 %v2048_v7, %v7309_v25  ;;  %v2137_v42 = vadd.f32 %v2007_v35, %v7310_v58  ;;  %v7314_v58 = vld [vmem:[#allocation182_spill] sm:$0xff] }
 0x3da   :  { %v2009_v40 = vpop.f32.mrf.mxu1  ;;  %v2050_v15 = vpop.f32.mrf.mxu0 }
 0x3db   :  { %v2140_v9 = vadd.f32 %v2050_v15, %v7311_v21  ;;  %v2147_v12 = vmul.f32 0.5, %v2139_v62  ;;  %v2138_v45 = vadd.f32 %v2009_v40, %v7312_v59  ;;  %v2145_v49 = vmul.f32 0.5, %v2137_v42 }
 0x3dc   :  { %v2011_v34 = vpop.f32.mrf.mxu1  ;;  %v2052_v30 = vpop.f32.mrf.mxu0 }
 0x3dd   :  { %v2148_v13 = vmul.f32 0.5, %v2140_v9  ;;  %4286 = vtanh.f32 %v2147_v12  ;;  %v2146_v23 = vmul.f32 0.5, %v2138_v45  ;;  %v7315_v12 = vld [vmem:[#allocation165_spill] sm:$0xff] }
 0x3de   :  { %v2012_v39 = vpop.f32.mrf.mxu1  ;;  %v2053_v5 = vpop.f32.mrf.mxu0  ;;  %4288 = vtanh.f32 %v2145_v49 }
 0x3df   :  { %4290 = vtanh.f32 %v2148_v13  ;;  %v7313_v39 = vld [vmem:[#allocation180_spill] sm:$0xff]  ;;  %v7316_v13 = vld [vmem:[#allocation167_spill] sm:$0xff] }
 0x3e0   :  { %4292 = vtanh.f32 %v2146_v23 }
 0x3ea   :  { %v4287_v62 = vpop.eup %4286 }
 0x3eb   :  { %v4289_v49 = vpop.eup %4288  ;;  %v2159_v9 = vmul.f32 0.5, %v4287_v62 }
 0x3ec   :  { %v4291_v42 = vpop.eup %4290 }
 0x3ed   :  { %v4293_v7 = vpop.eup %4292  ;;  %v2160_v2 = vmul.f32 0.5, %v4291_v42  ;;  %v2165_v32 = vadd.f32 0.5, %v2159_v9 }
 0x418   :  { %v2089_v34 = vpop.f32.mrf.mxu1  ;;  %v2130_v30 = vpop.f32.mrf.mxu0 }
 0x419   :  { %v2143_v5 = vadd.f32 %v2130_v30, %v7313_v39  ;;  %v2141_v45 = vadd.f32 %v2089_v34, %v7315_v12  ;;  %v2157_v30 = vmul.f32 0.5, %v4289_v49 }
 0x41a   :  { %v2091_v10 = vpop.f32.mrf.mxu1  ;;  %v2132_v25 = vpop.f32.mrf.mxu0 }
 0x41b   :  { %4294 = vtanh.f32 %v2143_v5  ;;  %v2144_v35 = vadd.f32 %v2132_v25, %v7314_v58  ;;  %v2142_v23 = vadd.f32 %v2091_v10, %v7316_v13  ;;  %v2149_v39 = vmul.f32 0.5, %v2141_v45 }
 0x41c   :  { %v2093_v21 = vpop.f32.mrf.mxu1  ;;  %v2134_v15 = vpop.f32.mrf.mxu0  ;;  %v2158_v25 = vmul.f32 0.5, %v4293_v7  ;;  %v2163_v58 = vadd.f32 0.5, %v2157_v30 }
 0x41d   :  { %4296 = vtanh.f32 %v2144_v35  ;;  %v2150_v5 = vmul.f32 0.5, %v2142_v23  ;;  %v2166_v35 = vadd.f32 0.5, %v2160_v2  ;;  %v2171_v15 = vmul.f32 %v2165_v32, %v5567_v37 }
 0x41e   :  { %v2094_v40 = vpop.f32.mrf.mxu1  ;;  %v2135_v59 = vpop.f32.mrf.mxu0  ;;  %4298 = vtanh.f32 %v2149_v39 }
 0x41f   :  { %4300 = vtanh.f32 %v2150_v5  ;;  %v2164_v40 = vadd.f32 0.5, %v2158_v25  ;;  %v2172_v62 = vmul.f32 %v2166_v35, %v5571_v55  ;;  %v7317_v55 = vld [vmem:[#allocation125_spill] sm:$0xff]  ;;  %v7318_v25 = vld [vmem:[#allocation106_spill] sm:$0xff]  ;;  %v7321_v35 = vld [vmem:[#allocation127_spill] sm:$0xff] }
 0x428   :  { %v4295_v21 = vpop.eup %4294 }
 0x429   :  { %v2173_v34 = vmul.f32 %v4295_v21, %v2163_v58  ;;  %v7319_v58 = vld [vmem:[#allocation126_spill] sm:$0xff]  ;;  %v7320_v21 = vld [vmem:[#allocation108_spill] sm:$0xff] }
 0x42a   :  { %v4297_v59 = vpop.eup %4296 }
 0x42b   :  { %v5717_v10 = vadd.f32 %v2173_v34, %v2171_v15  ;;  %v2174_v12 = vmul.f32 %v4297_v59, %v2164_v40  ;;  %v4299_v49 = vpop.eup %4298  ;;  %v7322_v15 = vld [vmem:[#allocation110_spill] sm:$0xff]  ;;  %v7323_v34 = vld [vmem:[#allocation128_spill] sm:$0xff]  ;;  %v7325_v59 = vld [vmem:[#allocation129_spill] sm:$0xff] }
 0x42c   :  { %v4301_v13 = vpop.eup %4300  ;;  %v2161_v2 = vmul.f32 0.5, %v4299_v49  ;;  %v7324_v40 = vld [vmem:[#allocation112_spill] sm:$0xff]  ;;  %v7328_v49 = vld [vmem:[#allocation115_spill] sm:$0xff] }
 0x42d   :  { %4302 = vtanh.f32 %v5717_v10  ;;  %v5721_v45 = vadd.f32 %v2174_v12, %v2172_v62  ;;  %v2162_v23 = vmul.f32 0.5, %v4301_v13  ;;  %v7326_v62 = vld [vmem:[#allocation114_spill] sm:$0xff]  ;;  %v7329_v13 = vld [vmem:[#allocation131_spill] sm:$0xff] }
 0x42e   :  { %v2167_v37 = vadd.f32 0.5, %v2161_v2  ;;  %v7327_v12 = vld [vmem:[#allocation130_spill] sm:$0xff]  ;;  %v7330_v2 = vld [vmem:[#allocation116_spill] sm:$0xff] }
 0x42f   :  { %4304 = vtanh.f32 %v5721_v45  ;;  %v2168_v32 = vadd.f32 0.5, %v2162_v23  ;;  %v7331_v23 = vld [vmem:[#allocation133_spill] sm:$0xff] }
 0x43a   :  { %v4303_v42 = vpop.eup %4302 }
 0x43b   :  { %v2179_v7 = vmul.f32 %v4303_v42, %v2167_v37  ;;  %v7332_v42 = vld [vmem:[#allocation117_spill] sm:$0xff]  ;;  %v7333_v37 = vld [vmem:[#allocation134_spill] sm:$0xff] }
 0x43c   :  { %v4305_v9 = vpop.eup %4304 }
 0x43d   :  { %v2180_v30 = vmul.f32 %v4305_v9, %v2168_v32  ;;  %v5724_v5 = vpack.c.bf16 %v2179_v7, %v2179_v7  ;;  %v7334_v32 = vld [vmem:[#allocation118_spill] sm:$0xff]  ;;  %v7335_v9 = vld [vmem:[#allocation135_spill] sm:$0xff] }
 0x43e   :  { %v7336_v7 = vld [vmem:[#allocation119_spill] sm:$0xff] }
 0x43f   :  { %v2193_v39 = vpack.c.bf16 %v2180_v30, %v2180_v30  ;;  %v7337_v30 = vld [vmem:[#allocation136_spill] sm:$0xff] }
 0x441   :  { %2226 = vmatprep.mubr.bf16.mxu1 %v2193_v39  ;;  %2267 = vmatprep.mubr.bf16.mxu0 %v2193_v39 }
 0x442   :  { %2227 = vmatmul.mubr.bf16.vlgmr.msra.gmra.mxu1 %v5724_v5  ;;  %2268 = vmatmul.mubr.bf16.vlgmr.msra.gmra.mxu0 %v5724_v5 }
 0x443   :  { %2277 = vmatpush1.bf16.msra.mxu1 %v7115_v31  ;;  %2318 = vmatpush1.bf16.msra.mxu0 %v7116_v6 }
 0x444   :  { %2308 = vmatprep.mubr.bf16.mxu1 %v2193_v39  ;;  %2349 = vmatprep.mubr.bf16.mxu0 %v2193_v39  ;;  %v7338_v39 = vld [vmem:[#allocation120_spill] sm:$0xff] }
 0x445   :  { %2278 = vmatprep.subr.bf16.mxu1 %v7117_v11  ;;  %2319 = vmatprep.subr.bf16.mxu0 %v7118_v48 }
 0x447   :  { %2279 = vmatpush1.bf16.msra.mxu1 %v7119_v18  ;;  %2320 = vmatpush1.bf16.msra.mxu0 %v7120_v4 }
 0x448   :  { %2280 = vmatprep.subr.bf16.mxu1 %v7121_v56  ;;  %2321 = vmatprep.subr.bf16.mxu0 %v7122_v3 }
 0x44b   :  { %2281 = vmatpush1.bf16.msra.mxu1 %v7123_v46  ;;  %2322 = vmatpush1.bf16.msra.mxu0 %v7124_v22 }
 0x44c   :  { %2282 = vmatprep.subr.bf16.mxu1 %v7125_v53  ;;  %2323 = vmatprep.subr.bf16.mxu0 %v7126_v57 }
 0x44f   :  { %2283 = vmatpush1.bf16.msra.mxu1 %v7127_v8  ;;  %2324 = vmatpush1.bf16.msra.mxu0 %v7128_v24 }
 0x450   :  { %2284 = vmatprep.subr.bf16.mxu1 %v7129_v16  ;;  %2325 = vmatprep.subr.bf16.mxu0 %v7130_v60 }
 0x453   :  { %2285 = vmatpush1.bf16.msra.mxu1 %v7131_v63  ;;  %2326 = vmatpush1.bf16.msra.mxu0 %v5012_v61 }
 0x454   :  { %2286 = vmatprep.subr.bf16.mxu1 %v7132_v36  ;;  %2327 = vmatprep.subr.bf16.mxu0 %v5018_v1 }
 0x457   :  { %2287 = vmatpush1.bf16.msra.mxu1 %v7133_v38  ;;  %2328 = vmatpush1.bf16.msra.mxu0 %v5024_v0 }
 0x458   :  { %2288 = vmatprep.subr.bf16.mxu1 %v7134_v44  ;;  %2329 = vmatprep.subr.bf16.mxu0 %v5030_v26 }
 0x45b   :  { %2289 = vmatpush1.bf16.msra.mxu1 %v7135_v43  ;;  %2330 = vmatpush1.bf16.msra.mxu0 %v5036_v47 }
 0x45c   :  { %2290 = vmatprep.subr.bf16.mxu1 %v7136_v50  ;;  %2331 = vmatprep.subr.bf16.mxu0 %v5042_v51 }
 0x45f   :  { %2291 = vmatpush1.bf16.msra.mxu1 %v7137_v27  ;;  %2332 = vmatpush1.bf16.msra.mxu0 %v5048_v14 }
 0x460   :  { %2292 = vmatprep.subr.bf16.mxu1 %v7138_v54  ;;  %2333 = vmatprep.subr.bf16.mxu0 %v7220_v33 }
 0x463   :  { %2293 = vmatpush2.bf16.msra.mxu1 %v7139_v20  ;;  %2334 = vmatpush2.bf16.msra.mxu0 %v7221_v52 }
 0x464   :  { %2294 = vmatprep.subr.bf16.mxu1 %v7140_v29  ;;  %2335 = vmatprep.subr.bf16.mxu0 %v7222_v28 }
 0x467   :  { %2295 = vmatpush2.bf16.msra.mxu1 %v7141_v41  ;;  %2336 = vmatpush2.bf16.msra.mxu0 %v7223_v17 }
 0x468   :  { %2296 = vmatprep.subr.bf16.mxu1 %v7224_v19  ;;  %2337 = vmatprep.subr.bf16.mxu0 %v7317_v55 }
 0x46b   :  { %2297 = vmatpush2.bf16.msra.mxu1 %v7318_v25  ;;  %2338 = vmatpush2.bf16.msra.mxu0 %v7319_v58 }
 0x46c   :  { %2298 = vmatprep.subr.bf16.mxu1 %v7320_v21  ;;  %2339 = vmatprep.subr.bf16.mxu0 %v7321_v35 }
 0x46f   :  { %2299 = vmatpush2.bf16.msra.mxu1 %v7322_v15  ;;  %2340 = vmatpush2.bf16.msra.mxu0 %v7323_v34  ;;  %v7408_v34 = vld [vmem:[#allocation158_spill] sm:$0xff] }
 0x470   :  { %2300 = vmatprep.subr.bf16.mxu1 %v7324_v40  ;;  %2341 = vmatprep.subr.bf16.mxu0 %v7325_v59  ;;  %v7406_v59 = vld [vmem:[#allocation156_spill] sm:$0xff]  ;;  %v7407_v40 = vld [vmem:[#allocation147_spill] sm:$0xff] }
 0x473   :  { %2301 = vmatpush2.bf16.msra.mxu1 %v7326_v62  ;;  %2342 = vmatpush2.bf16.msra.mxu0 %v7327_v12 }
 0x474   :  { %2302 = vmatprep.subr.bf16.mxu1 %v7328_v49  ;;  %2343 = vmatprep.subr.bf16.mxu0 %v7329_v13  ;;  %v7339_v49 = vld [vmem:[#allocation137_spill] sm:$0xff]  ;;  %v7340_v13 = vld [vmem:[#allocation16_spill] sm:$0xff] }
 0x477   :  { %2303 = vmatpush2.bf16.msra.mxu1 %v7330_v2  ;;  %2344 = vmatpush2.bf16.msra.mxu0 %v7331_v23  ;;  %v7341_v2 = vld [vmem:[#allocation31_spill] sm:$0xff] }
 0x478   :  { %2304 = vmatprep.subr.bf16.mxu1 %v7332_v42  ;;  %2345 = vmatprep.subr.bf16.mxu0 %v7333_v37  ;;  %v7342_v37 = vld [vmem:[#allocation17_spill] sm:$0xff]  ;;  %v7351_v42 = vld [vmem:[#allocation43_spill] sm:$0xff] }
 0x47b   :  { %2305 = vmatpush2.bf16.msra.mxu1 %v7334_v32  ;;  %2346 = vmatpush2.bf16.msra.mxu0 %v7335_v9  ;;  %v7343_v32 = vld [vmem:[#allocation35_spill] sm:$0xff]  ;;  %v7344_v9 = vld [vmem:[#allocation18_spill] sm:$0xff] }
 0x47c   :  { %2306 = vmatprep.subr.bf16.mxu1 %v7336_v7  ;;  %2347 = vmatprep.subr.bf16.mxu0 %v7337_v30  ;;  %v7345_v7 = vld [vmem:[#allocation37_spill] sm:$0xff]  ;;  %v7346_v30 = vld [vmem:[#allocation19_spill] sm:$0xff] }
 0x47f   :  { %2307 = vmatpush2.bf16.msra.mxu1 %v7338_v39  ;;  %2348 = vmatpush2.bf16.msra.mxu0 %v7339_v49  ;;  %v7347_v39 = vld [vmem:[#allocation39_spill] sm:$0xff]  ;;  %v7348_v49 = vld [vmem:[#allocation20_spill] sm:$0xff] }
 0x480   :  { %2415 = vmatprep.subr.bf16.mxu1 %v7340_v13  ;;  %2456 = vmatprep.subr.bf16.mxu0 %v7341_v2  ;;  %v7349_v13 = vld [vmem:[#allocation41_spill] sm:$0xff] }
 0x481   :  { %v7350_v2 = vld [vmem:[#allocation21_spill] sm:$0xff] }
 0x482   :  { %2309 = vmatmul.mubr.bf16.vlgmr.msra.gmra.mxu1 %v5724_v5  ;;  %2350 = vmatmul.mubr.bf16.vlgmr.msra.gmra.mxu0 %v5724_v5  ;;  %v7352_v5 = vld [vmem:[#allocation22_spill] sm:$0xff] }
 0x483   :  { %2416 = vmatpush1.bf16.msra.mxu1 %v7342_v37  ;;  %2457 = vmatpush1.bf16.msra.mxu0 %v7343_v32  ;;  %v7353_v37 = vld [vmem:[#allocation45_spill] sm:$0xff]  ;;  %v7354_v32 = vld [vmem:[#allocation23_spill] sm:$0xff] }
 0x484   :  { %2417 = vmatprep.subr.bf16.mxu1 %v7344_v9  ;;  %2458 = vmatprep.subr.bf16.mxu0 %v7345_v7  ;;  %v7355_v9 = vld [vmem:[#allocation47_spill] sm:$0xff]  ;;  %v7356_v7 = vld [vmem:[#allocation24_spill] sm:$0xff] }
 0x487   :  { %2418 = vmatpush1.bf16.msra.mxu1 %v7346_v30  ;;  %2459 = vmatpush1.bf16.msra.mxu0 %v7347_v39  ;;  %v7357_v30 = vld [vmem:[#allocation49_spill] sm:$0xff] }
 0x488   :  { %2419 = vmatprep.subr.bf16.mxu1 %v7348_v49  ;;  %2460 = vmatprep.subr.bf16.mxu0 %v7349_v13  ;;  %v7358_v39 = vld [vmem:[#allocation25_spill] sm:$0xff]  ;;  %v7359_v49 = vld [vmem:[#allocation51_spill] sm:$0xff]  ;;  %v7360_v13 = vld [vmem:[#allocation26_spill] sm:$0xff] }
 0x48b   :  { %2420 = vmatpush1.bf16.msra.mxu1 %v7350_v2  ;;  %2461 = vmatpush1.bf16.msra.mxu0 %v7351_v42  ;;  %v7361_v2 = vld [vmem:[#allocation53_spill] sm:$0xff]  ;;  %v7362_v42 = vld [vmem:[#allocation27_spill] sm:$0xff] }
 0x48c   :  { %2421 = vmatprep.subr.bf16.mxu1 %v7352_v5  ;;  %2462 = vmatprep.subr.bf16.mxu0 %v7353_v37  ;;  %v7363_v5 = vld [vmem:[#allocation55_spill] sm:$0xff]  ;;  %v7364_v37 = vld [vmem:[#allocation28_spill] sm:$0xff] }
 0x48f   :  { %2422 = vmatpush1.bf16.msra.mxu1 %v7354_v32  ;;  %2463 = vmatpush1.bf16.msra.mxu0 %v7355_v9  ;;  %v7365_v32 = vld [vmem:[#allocation57_spill] sm:$0xff] }
 0x490   :  { %2423 = vmatprep.subr.bf16.mxu1 %v7356_v7  ;;  %2464 = vmatprep.subr.bf16.mxu0 %v7357_v30  ;;  %v7366_v9 = vld [vmem:[#allocation29_spill] sm:$0xff]  ;;  %v7367_v7 = vld [vmem:[#allocation59_spill] sm:$0xff]  ;;  %v7368_v30 = vld [vmem:[#allocation30_spill] sm:$0xff] }
 0x493   :  { %2424 = vmatpush1.bf16.msra.mxu1 %v7358_v39  ;;  %2465 = vmatpush1.bf16.msra.mxu0 %v7359_v49  ;;  %v7369_v39 = vld [vmem:[#allocation61_spill] sm:$0xff]  ;;  %v7370_v49 = vld [vmem:[#allocation32_spill] sm:$0xff] }
 0x494   :  { %2425 = vmatprep.subr.bf16.mxu1 %v7360_v13  ;;  %2466 = vmatprep.subr.bf16.mxu0 %v7361_v2  ;;  %v7371_v13 = vld [vmem:[#allocation63_spill] sm:$0xff]  ;;  %v7372_v2 = vld [vmem:[#allocation33_spill] sm:$0xff] }
 0x497   :  { %2426 = vmatpush1.bf16.msra.mxu1 %v7362_v42  ;;  %2467 = vmatpush1.bf16.msra.mxu0 %v7363_v5  ;;  %v7373_v42 = vld [vmem:[#allocation64_spill] sm:$0xff]  ;;  %v7374_v5 = vld [vmem:[#allocation34_spill] sm:$0xff] }
 0x498   :  { %2427 = vmatprep.subr.bf16.mxu1 %v7364_v37  ;;  %2468 = vmatprep.subr.bf16.mxu0 %v7365_v32  ;;  %v7375_v37 = vld [vmem:[#allocation66_spill] sm:$0xff]  ;;  %v7376_v32 = vld [vmem:[#allocation36_spill] sm:$0xff] }
 0x49b   :  { %2428 = vmatpush1.bf16.msra.mxu1 %v7366_v9  ;;  %2469 = vmatpush1.bf16.msra.mxu0 %v7367_v7  ;;  %v7377_v9 = vld [vmem:[#allocation68_spill] sm:$0xff]  ;;  %v7378_v7 = vld [vmem:[#allocation38_spill] sm:$0xff] }
 0x49c   :  { %2429 = vmatprep.subr.bf16.mxu1 %v7368_v30  ;;  %2470 = vmatprep.subr.bf16.mxu0 %v7369_v39  ;;  %v7379_v30 = vld [vmem:[#allocation70_spill] sm:$0xff]  ;;  %v7380_v39 = vld [vmem:[#allocation40_spill] sm:$0xff] }
 0x49f   :  { %2430 = vmatpush1.bf16.msra.mxu1 %v7370_v49  ;;  %2471 = vmatpush1.bf16.msra.mxu0 %v7371_v13  ;;  %v7381_v49 = vld [vmem:[#allocation72_spill] sm:$0xff]  ;;  %v7382_v13 = vld [vmem:[#allocation42_spill] sm:$0xff] }
 0x4a0   :  { %2431 = vmatprep.subr.bf16.mxu1 %v7372_v2  ;;  %2472 = vmatprep.subr.bf16.mxu0 %v7373_v42  ;;  %v7383_v2 = vld [vmem:[#allocation74_spill] sm:$0xff]  ;;  %v7384_v42 = vld [vmem:[#allocation44_spill] sm:$0xff] }
 0x4a3   :  { %2432 = vmatpush2.bf16.msra.mxu1 %v7374_v5  ;;  %2473 = vmatpush2.bf16.msra.mxu0 %v7375_v37  ;;  %v7385_v5 = vld [vmem:[#allocation76_spill] sm:$0xff]  ;;  %v7386_v37 = vld [vmem:[#allocation46_spill] sm:$0xff] }
 0x4a4   :  { %2433 = vmatprep.subr.bf16.mxu1 %v7376_v32  ;;  %2474 = vmatprep.subr.bf16.mxu0 %v7377_v9  ;;  %v7387_v32 = vld [vmem:[#allocation78_spill] sm:$0xff]  ;;  %v7388_v9 = vld [vmem:[#allocation48_spill] sm:$0xff] }
 0x4a7   :  { %2434 = vmatpush2.bf16.msra.mxu1 %v7378_v7  ;;  %2475 = vmatpush2.bf16.msra.mxu0 %v7379_v30  ;;  %v7389_v7 = vld [vmem:[#allocation80_spill] sm:$0xff]  ;;  %v7390_v30 = vld [vmem:[#allocation50_spill] sm:$0xff] }
 0x4a8   :  { %2435 = vmatprep.subr.bf16.mxu1 %v7380_v39  ;;  %2476 = vmatprep.subr.bf16.mxu0 %v7381_v49  ;;  %v7391_v39 = vld [vmem:[#allocation82_spill] sm:$0xff]  ;;  %v7392_v49 = vld [vmem:[#allocation52_spill] sm:$0xff] }
 0x4ab   :  { %2436 = vmatpush2.bf16.msra.mxu1 %v7382_v13  ;;  %2477 = vmatpush2.bf16.msra.mxu0 %v7383_v2  ;;  %v7393_v13 = vld [vmem:[#allocation84_spill] sm:$0xff]  ;;  %v7394_v2 = vld [vmem:[#allocation54_spill] sm:$0xff] }
 0x4ac   :  { %2437 = vmatprep.subr.bf16.mxu1 %v7384_v42  ;;  %2478 = vmatprep.subr.bf16.mxu0 %v7385_v5  ;;  %v7395_v42 = vld [vmem:[#allocation86_spill] sm:$0xff]  ;;  %v7396_v5 = vld [vmem:[#allocation56_spill] sm:$0xff] }
 0x4af   :  { %2438 = vmatpush2.bf16.msra.mxu1 %v7386_v37  ;;  %2479 = vmatpush2.bf16.msra.mxu0 %v7387_v32  ;;  %v7397_v37 = vld [vmem:[#allocation88_spill] sm:$0xff]  ;;  %v7398_v32 = vld [vmem:[#allocation58_spill] sm:$0xff] }
 0x4b0   :  { %2439 = vmatprep.subr.bf16.mxu1 %v7388_v9  ;;  %2480 = vmatprep.subr.bf16.mxu0 %v7389_v7  ;;  %v7399_v9 = vld [vmem:[#allocation90_spill] sm:$0xff]  ;;  %v7400_v7 = vld [vmem:[#allocation60_spill] sm:$0xff] }
 0x4b3   :  { %2440 = vmatpush2.bf16.msra.mxu1 %v7390_v30  ;;  %2481 = vmatpush2.bf16.msra.mxu0 %v7391_v39  ;;  %v7401_v30 = vld [vmem:[#allocation92_spill] sm:$0xff]  ;;  %v7402_v39 = vld [vmem:[#allocation62_spill] sm:$0xff] }
 0x4b4   :  { %2441 = vmatprep.subr.bf16.mxu1 %v7392_v49  ;;  %2482 = vmatprep.subr.bf16.mxu0 %v7393_v13  ;;  %v7403_v49 = vld [vmem:[#allocation94_spill] sm:$0xff]  ;;  %v7404_v13 = vld [vmem:[#allocation65_spill] sm:$0xff] }
 0x4b7   :  { %2442 = vmatpush2.bf16.msra.mxu1 %v7394_v2  ;;  %2483 = vmatpush2.bf16.msra.mxu0 %v7395_v42  ;;  %v7405_v2 = vld [vmem:[#allocation97_spill] sm:$0xff] }
 0x4b8   :  { %2443 = vmatprep.subr.bf16.mxu1 %v7396_v5  ;;  %2484 = vmatprep.subr.bf16.mxu0 %v7397_v37 }
 0x4bb   :  { %2444 = vmatpush2.bf16.msra.mxu1 %v7398_v32  ;;  %2485 = vmatpush2.bf16.msra.mxu0 %v7399_v9 }
 0x4bc   :  { %2445 = vmatprep.subr.bf16.mxu1 %v7400_v7  ;;  %2486 = vmatprep.subr.bf16.mxu0 %v7401_v30 }
 0x4bf   :  { %2446 = vmatpush2.bf16.msra.mxu1 %v7402_v39  ;;  %2487 = vmatpush2.bf16.msra.mxu0 %v7403_v49  ;;  %v7409_v49 = vld [vmem:[#allocation149_spill] sm:$0xff] }
 0x4c0   :  { %2497 = vmatprep.subr.bf16.mxu1 %v7404_v13  ;;  %2538 = vmatprep.subr.bf16.mxu0 %v7405_v2 }
 0x502   :  { %v2228_v42 = vpop.f32.mrf.mxu1  ;;  %v2269_v5 = vpop.f32.mrf.mxu0 }
 0x503   :  { %v2360_v7 = vadd.f32 %v2269_v5, %v7406_v59  ;;  %v2358_v30 = vadd.f32 %v2228_v42, %v7407_v40  ;;  %v7411_v40 = vld [vmem:[#allocation186_spill] sm:$0xff] }
 0x504   :  { %v2230_v23 = vpop.f32.mrf.mxu1  ;;  %v2271_v37 = vpop.f32.mrf.mxu0 }
 0x505   :  { %v2361_v39 = vadd.f32 %v2271_v37, %v7408_v34  ;;  %v2368_v15 = vmul.f32 0.5, %v2360_v7  ;;  %v2359_v35 = vadd.f32 %v2230_v23, %v7409_v49  ;;  %v2366_v13 = vmul.f32 0.5, %v2358_v30 }
 0x506   :  { %v2232_v12 = vpop.f32.mrf.mxu1  ;;  %v2273_v32 = vpop.f32.mrf.mxu0 }
 0x507   :  { %v2369_v21 = vmul.f32 0.5, %v2361_v39  ;;  %4306 = vtanh.f32 %v2368_v15  ;;  %v2367_v2 = vmul.f32 0.5, %v2359_v35  ;;  %v7412_v15 = vld [vmem:[#allocation169_spill] sm:$0xff] }
 0x508   :  { %v2233_v62 = vpop.f32.mrf.mxu1  ;;  %v2274_v9 = vpop.f32.mrf.mxu0  ;;  %4308 = vtanh.f32 %v2366_v13 }
 0x509   :  { %4310 = vtanh.f32 %v2369_v21  ;;  %v7410_v62 = vld [vmem:[#allocation184_spill] sm:$0xff]  ;;  %v7413_v21 = vld [vmem:[#allocation171_spill] sm:$0xff] }
 0x50a   :  { %4312 = vtanh.f32 %v2367_v2 }
 0x514   :  { %v4307_v7 = vpop.eup %4306 }
 0x515   :  { %v4309_v13 = vpop.eup %4308  ;;  %v2380_v39 = vmul.f32 0.5, %v4307_v7 }
 0x516   :  { %v4311_v30 = vpop.eup %4310 }
 0x517   :  { %v4313_v5 = vpop.eup %4312  ;;  %v2381_v25 = vmul.f32 0.5, %v4311_v30  ;;  %v2386_v55 = vadd.f32 0.5, %v2380_v39 }
 0x542   :  { %v2310_v12 = vpop.f32.mrf.mxu1  ;;  %v2351_v32 = vpop.f32.mrf.mxu0 }
 0x543   :  { %v2364_v9 = vadd.f32 %v2351_v32, %v7410_v62  ;;  %v2362_v35 = vadd.f32 %v2310_v12, %v7412_v15  ;;  %v2378_v32 = vmul.f32 0.5, %v4309_v13 }
 0x544   :  { %v2312_v58 = vpop.f32.mrf.mxu1  ;;  %v2353_v59 = vpop.f32.mrf.mxu0 }
 0x545   :  { %4314 = vtanh.f32 %v2364_v9  ;;  %v2365_v42 = vadd.f32 %v2353_v59, %v7411_v40  ;;  %v2363_v2 = vadd.f32 %v2312_v58, %v7413_v21  ;;  %v2370_v62 = vmul.f32 0.5, %v2362_v35 }
 0x546   :  { %v2314_v34 = vpop.f32.mrf.mxu1  ;;  %v2355_v37 = vpop.f32.mrf.mxu0  ;;  %v2379_v59 = vmul.f32 0.5, %v4313_v5  ;;  %v2384_v40 = vadd.f32 0.5, %v2378_v32 }
 0x547   :  { %4316 = vtanh.f32 %v2365_v42  ;;  %v2371_v9 = vmul.f32 0.5, %v2363_v2  ;;  %v2387_v42 = vadd.f32 0.5, %v2381_v25  ;;  %v2392_v37 = vmul.f32 %v2386_v55, %v5717_v10 }
 0x548   :  { %v2315_v49 = vpop.f32.mrf.mxu1  ;;  %v2356_v23 = vpop.f32.mrf.mxu0  ;;  %4318 = vtanh.f32 %v2370_v62 }
 0x549   :  { %4320 = vtanh.f32 %v2371_v9  ;;  %v2385_v49 = vadd.f32 0.5, %v2379_v59  ;;  %v2393_v7 = vmul.f32 %v2387_v42, %v5721_v45  ;;  %v7414_v45 = vld [vmem:[#allocation125_spill] sm:$0xff]  ;;  %v7415_v59 = vld [vmem:[#allocation106_spill] sm:$0xff]  ;;  %v7418_v42 = vld [vmem:[#allocation127_spill] sm:$0xff] }
 0x552   :  { %v4315_v34 = vpop.eup %4314 }
 0x553   :  { %v2394_v12 = vmul.f32 %v4315_v34, %v2384_v40  ;;  %v7416_v40 = vld [vmem:[#allocation126_spill] sm:$0xff]  ;;  %v7417_v34 = vld [vmem:[#allocation108_spill] sm:$0xff] }
 0x554   :  { %v4317_v23 = vpop.eup %4316 }
 0x555   :  { %v5867_v58 = vadd.f32 %v2394_v12, %v2392_v37  ;;  %v2395_v15 = vmul.f32 %v4317_v23, %v2385_v49  ;;  %v4319_v13 = vpop.eup %4318  ;;  %v7419_v37 = vld [vmem:[#allocation110_spill] sm:$0xff]  ;;  %v7420_v12 = vld [vmem:[#allocation128_spill] sm:$0xff]  ;;  %v7422_v23 = vld [vmem:[#allocation129_spill] sm:$0xff] }
 0x556   :  { %v4321_v21 = vpop.eup %4320  ;;  %v2382_v25 = vmul.f32 0.5, %v4319_v13  ;;  %v7421_v49 = vld [vmem:[#allocation112_spill] sm:$0xff]  ;;  %v7425_v13 = vld [vmem:[#allocation115_spill] sm:$0xff] }
 0x557   :  { %4322 = vtanh.f32 %v5867_v58  ;;  %v5871_v35 = vadd.f32 %v2395_v15, %v2393_v7  ;;  %v2383_v2 = vmul.f32 0.5, %v4321_v21  ;;  %v7423_v7 = vld [vmem:[#allocation114_spill] sm:$0xff]  ;;  %v7426_v21 = vld [vmem:[#allocation131_spill] sm:$0xff] }
 0x558   :  { %v2388_v10 = vadd.f32 0.5, %v2382_v25  ;;  %v7424_v15 = vld [vmem:[#allocation130_spill] sm:$0xff]  ;;  %v7427_v25 = vld [vmem:[#allocation116_spill] sm:$0xff] }
 0x559   :  { %4324 = vtanh.f32 %v5871_v35  ;;  %v2389_v55 = vadd.f32 0.5, %v2383_v2  ;;  %v7428_v2 = vld [vmem:[#allocation133_spill] sm:$0xff] }
 0x564   :  { %v4323_v30 = vpop.eup %4322 }
 0x565   :  { %v2400_v5 = vmul.f32 %v4323_v30, %v2388_v10  ;;  %v7429_v30 = vld [vmem:[#allocation117_spill] sm:$0xff]  ;;  %v7430_v10 = vld [vmem:[#allocation134_spill] sm:$0xff] }
 0x566   :  { %v4325_v39 = vpop.eup %4324 }
 0x567   :  { %v2401_v32 = vmul.f32 %v4325_v39, %v2389_v55  ;;  %v5874_v9 = vpack.c.bf16 %v2400_v5, %v2400_v5  ;;  %v7431_v55 = vld [vmem:[#allocation118_spill] sm:$0xff]  ;;  %v7432_v39 = vld [vmem:[#allocation135_spill] sm:$0xff] }
 0x568   :  { %v7433_v5 = vld [vmem:[#allocation119_spill] sm:$0xff] }
 0x569   :  { %v2414_v62 = vpack.c.bf16 %v2401_v32, %v2401_v32  ;;  %v7434_v32 = vld [vmem:[#allocation136_spill] sm:$0xff] }
 0x56b   :  { %2447 = vmatprep.mubr.bf16.mxu1 %v2414_v62  ;;  %2488 = vmatprep.mubr.bf16.mxu0 %v2414_v62 }
 0x56c   :  { %2448 = vmatmul.mubr.bf16.vlgmr.msra.gmra.mxu1 %v5874_v9  ;;  %2489 = vmatmul.mubr.bf16.vlgmr.msra.gmra.mxu0 %v5874_v9 }
 0x56d   :  { %2498 = vmatpush1.bf16.msra.mxu1 %v7115_v31  ;;  %2539 = vmatpush1.bf16.msra.mxu0 %v7116_v6 }
 0x56e   :  { %2529 = vmatprep.mubr.bf16.mxu1 %v2414_v62  ;;  %2570 = vmatprep.mubr.bf16.mxu0 %v2414_v62  ;;  %v7435_v62 = vld [vmem:[#allocation120_spill] sm:$0xff] }
 0x56f   :  { %2499 = vmatprep.subr.bf16.mxu1 %v7117_v11  ;;  %2540 = vmatprep.subr.bf16.mxu0 %v7118_v48 }
 0x571   :  { %2500 = vmatpush1.bf16.msra.mxu1 %v7119_v18  ;;  %2541 = vmatpush1.bf16.msra.mxu0 %v7120_v4 }
 0x572   :  { %2501 = vmatprep.subr.bf16.mxu1 %v7121_v56  ;;  %2542 = vmatprep.subr.bf16.mxu0 %v7122_v3 }
 0x575   :  { %2502 = vmatpush1.bf16.msra.mxu1 %v7123_v46  ;;  %2543 = vmatpush1.bf16.msra.mxu0 %v7124_v22 }
 0x576   :  { %2503 = vmatprep.subr.bf16.mxu1 %v7125_v53  ;;  %2544 = vmatprep.subr.bf16.mxu0 %v7126_v57 }
 0x579   :  { %2504 = vmatpush1.bf16.msra.mxu1 %v7127_v8  ;;  %2545 = vmatpush1.bf16.msra.mxu0 %v7128_v24 }
 0x57a   :  { %2505 = vmatprep.subr.bf16.mxu1 %v7129_v16  ;;  %2546 = vmatprep.subr.bf16.mxu0 %v7130_v60 }
 0x57d   :  { %2506 = vmatpush1.bf16.msra.mxu1 %v7131_v63  ;;  %2547 = vmatpush1.bf16.msra.mxu0 %v5012_v61 }
 0x57e   :  { %2507 = vmatprep.subr.bf16.mxu1 %v7132_v36  ;;  %2548 = vmatprep.subr.bf16.mxu0 %v5018_v1 }
 0x581   :  { %2508 = vmatpush1.bf16.msra.mxu1 %v7133_v38  ;;  %2549 = vmatpush1.bf16.msra.mxu0 %v5024_v0 }
 0x582   :  { %2509 = vmatprep.subr.bf16.mxu1 %v7134_v44  ;;  %2550 = vmatprep.subr.bf16.mxu0 %v5030_v26 }
 0x585   :  { %2510 = vmatpush1.bf16.msra.mxu1 %v7135_v43  ;;  %2551 = vmatpush1.bf16.msra.mxu0 %v5036_v47 }
 0x586   :  { %2511 = vmatprep.subr.bf16.mxu1 %v7136_v50  ;;  %2552 = vmatprep.subr.bf16.mxu0 %v5042_v51 }
 0x589   :  { %2512 = vmatpush1.bf16.msra.mxu1 %v7137_v27  ;;  %2553 = vmatpush1.bf16.msra.mxu0 %v5048_v14 }
 0x58a   :  { %2513 = vmatprep.subr.bf16.mxu1 %v7138_v54  ;;  %2554 = vmatprep.subr.bf16.mxu0 %v7220_v33 }
 0x58d   :  { %2514 = vmatpush2.bf16.msra.mxu1 %v7139_v20  ;;  %2555 = vmatpush2.bf16.msra.mxu0 %v7221_v52 }
 0x58e   :  { %2515 = vmatprep.subr.bf16.mxu1 %v7140_v29  ;;  %2556 = vmatprep.subr.bf16.mxu0 %v7222_v28 }
 0x591   :  { %2516 = vmatpush2.bf16.msra.mxu1 %v7141_v41  ;;  %2557 = vmatpush2.bf16.msra.mxu0 %v7223_v17 }
 0x592   :  { %2517 = vmatprep.subr.bf16.mxu1 %v7224_v19  ;;  %2558 = vmatprep.subr.bf16.mxu0 %v7414_v45 }
 0x595   :  { %2518 = vmatpush2.bf16.msra.mxu1 %v7415_v59  ;;  %2559 = vmatpush2.bf16.msra.mxu0 %v7416_v40 }
 0x596   :  { %2519 = vmatprep.subr.bf16.mxu1 %v7417_v34  ;;  %2560 = vmatprep.subr.bf16.mxu0 %v7418_v42 }
 0x599   :  { %2520 = vmatpush2.bf16.msra.mxu1 %v7419_v37  ;;  %2561 = vmatpush2.bf16.msra.mxu0 %v7420_v12  ;;  %v7505_v12 = vld [vmem:[#allocation160_spill] sm:$0xff] }
 0x59a   :  { %2521 = vmatprep.subr.bf16.mxu1 %v7421_v49  ;;  %2562 = vmatprep.subr.bf16.mxu0 %v7422_v23  ;;  %v7503_v23 = vld [vmem:[#allocation159_spill] sm:$0xff] }
 0x59b   :  { %v7504_v49 = vld [vmem:[#allocation151_spill] sm:$0xff] }
 0x59d   :  { %2522 = vmatpush2.bf16.msra.mxu1 %v7423_v7  ;;  %2563 = vmatpush2.bf16.msra.mxu0 %v7424_v15 }
 0x59e   :  { %2523 = vmatprep.subr.bf16.mxu1 %v7425_v13  ;;  %2564 = vmatprep.subr.bf16.mxu0 %v7426_v21  ;;  %v7436_v13 = vld [vmem:[#allocation137_spill] sm:$0xff]  ;;  %v7437_v21 = vld [vmem:[#allocation16_spill] sm:$0xff] }
 0x5a1   :  { %2524 = vmatpush2.bf16.msra.mxu1 %v7427_v25  ;;  %2565 = vmatpush2.bf16.msra.mxu0 %v7428_v2  ;;  %v7438_v25 = vld [vmem:[#allocation31_spill] sm:$0xff] }
 0x5a2   :  { %2525 = vmatprep.subr.bf16.mxu1 %v7429_v30  ;;  %2566 = vmatprep.subr.bf16.mxu0 %v7430_v10  ;;  %v7439_v10 = vld [vmem:[#allocation17_spill] sm:$0xff]  ;;  %v7448_v30 = vld [vmem:[#allocation43_spill] sm:$0xff] }
 0x5a5   :  { %2526 = vmatpush2.bf16.msra.mxu1 %v7431_v55  ;;  %2567 = vmatpush2.bf16.msra.mxu0 %v7432_v39  ;;  %v7440_v55 = vld [vmem:[#allocation35_spill] sm:$0xff]  ;;  %v7441_v39 = vld [vmem:[#allocation18_spill] sm:$0xff] }
 0x5a6   :  { %2527 = vmatprep.subr.bf16.mxu1 %v7433_v5  ;;  %2568 = vmatprep.subr.bf16.mxu0 %v7434_v32  ;;  %v7442_v5 = vld [vmem:[#allocation37_spill] sm:$0xff]  ;;  %v7443_v32 = vld [vmem:[#allocation19_spill] sm:$0xff] }
 0x5a9   :  { %2528 = vmatpush2.bf16.msra.mxu1 %v7435_v62  ;;  %2569 = vmatpush2.bf16.msra.mxu0 %v7436_v13  ;;  %v7444_v62 = vld [vmem:[#allocation39_spill] sm:$0xff]  ;;  %v7445_v13 = vld [vmem:[#allocation20_spill] sm:$0xff] }
 0x5aa   :  { %2636 = vmatprep.subr.bf16.mxu1 %v7437_v21  ;;  %2677 = vmatprep.subr.bf16.mxu0 %v7438_v25  ;;  %v7446_v21 = vld [vmem:[#allocation41_spill] sm:$0xff] }
 0x5ab   :  { %v7447_v25 = vld [vmem:[#allocation21_spill] sm:$0xff] }
 0x5ac   :  { %2530 = vmatmul.mubr.bf16.vlgmr.msra.gmra.mxu1 %v5874_v9  ;;  %2571 = vmatmul.mubr.bf16.vlgmr.msra.gmra.mxu0 %v5874_v9  ;;  %v7449_v9 = vld [vmem:[#allocation22_spill] sm:$0xff] }
 0x5ad   :  { %2637 = vmatpush1.bf16.msra.mxu1 %v7439_v10  ;;  %2678 = vmatpush1.bf16.msra.mxu0 %v7440_v55  ;;  %v7450_v10 = vld [vmem:[#allocation45_spill] sm:$0xff]  ;;  %v7451_v55 = vld [vmem:[#allocation23_spill] sm:$0xff] }
 0x5ae   :  { %2638 = vmatprep.subr.bf16.mxu1 %v7441_v39  ;;  %2679 = vmatprep.subr.bf16.mxu0 %v7442_v5  ;;  %v7452_v39 = vld [vmem:[#allocation47_spill] sm:$0xff]  ;;  %v7453_v5 = vld [vmem:[#allocation24_spill] sm:$0xff] }
 0x5b1   :  { %2639 = vmatpush1.bf16.msra.mxu1 %v7443_v32  ;;  %2680 = vmatpush1.bf16.msra.mxu0 %v7444_v62  ;;  %v7454_v32 = vld [vmem:[#allocation49_spill] sm:$0xff] }
 0x5b2   :  { %2640 = vmatprep.subr.bf16.mxu1 %v7445_v13  ;;  %2681 = vmatprep.subr.bf16.mxu0 %v7446_v21  ;;  %v7455_v62 = vld [vmem:[#allocation25_spill] sm:$0xff]  ;;  %v7456_v13 = vld [vmem:[#allocation51_spill] sm:$0xff]  ;;  %v7457_v21 = vld [vmem:[#allocation26_spill] sm:$0xff] }
 0x5b5   :  { %2641 = vmatpush1.bf16.msra.mxu1 %v7447_v25  ;;  %2682 = vmatpush1.bf16.msra.mxu0 %v7448_v30  ;;  %v7458_v25 = vld [vmem:[#allocation53_spill] sm:$0xff]  ;;  %v7459_v30 = vld [vmem:[#allocation27_spill] sm:$0xff] }
 0x5b6   :  { %2642 = vmatprep.subr.bf16.mxu1 %v7449_v9  ;;  %2683 = vmatprep.subr.bf16.mxu0 %v7450_v10  ;;  %v7460_v9 = vld [vmem:[#allocation55_spill] sm:$0xff]  ;;  %v7461_v10 = vld [vmem:[#allocation28_spill] sm:$0xff] }
 0x5b9   :  { %2643 = vmatpush1.bf16.msra.mxu1 %v7451_v55  ;;  %2684 = vmatpush1.bf16.msra.mxu0 %v7452_v39  ;;  %v7462_v55 = vld [vmem:[#allocation57_spill] sm:$0xff] }
 0x5ba   :  { %2644 = vmatprep.subr.bf16.mxu1 %v7453_v5  ;;  %2685 = vmatprep.subr.bf16.mxu0 %v7454_v32  ;;  %v7463_v39 = vld [vmem:[#allocation29_spill] sm:$0xff]  ;;  %v7464_v5 = vld [vmem:[#allocation59_spill] sm:$0xff]  ;;  %v7465_v32 = vld [vmem:[#allocation30_spill] sm:$0xff] }
 0x5bd   :  { %2645 = vmatpush1.bf16.msra.mxu1 %v7455_v62  ;;  %2686 = vmatpush1.bf16.msra.mxu0 %v7456_v13  ;;  %v7466_v62 = vld [vmem:[#allocation61_spill] sm:$0xff]  ;;  %v7467_v13 = vld [vmem:[#allocation32_spill] sm:$0xff] }
 0x5be   :  { %2646 = vmatprep.subr.bf16.mxu1 %v7457_v21  ;;  %2687 = vmatprep.subr.bf16.mxu0 %v7458_v25  ;;  %v7468_v21 = vld [vmem:[#allocation63_spill] sm:$0xff]  ;;  %v7469_v25 = vld [vmem:[#allocation33_spill] sm:$0xff] }
 0x5c1   :  { %2647 = vmatpush1.bf16.msra.mxu1 %v7459_v30  ;;  %2688 = vmatpush1.bf16.msra.mxu0 %v7460_v9  ;;  %v7470_v30 = vld [vmem:[#allocation64_spill] sm:$0xff]  ;;  %v7471_v9 = vld [vmem:[#allocation34_spill] sm:$0xff] }
 0x5c2   :  { %2648 = vmatprep.subr.bf16.mxu1 %v7461_v10  ;;  %2689 = vmatprep.subr.bf16.mxu0 %v7462_v55  ;;  %v7472_v10 = vld [vmem:[#allocation66_spill] sm:$0xff]  ;;  %v7473_v55 = vld [vmem:[#allocation36_spill] sm:$0xff] }
 0x5c5   :  { %2649 = vmatpush1.bf16.msra.mxu1 %v7463_v39  ;;  %2690 = vmatpush1.bf16.msra.mxu0 %v7464_v5  ;;  %v7474_v39 = vld [vmem:[#allocation68_spill] sm:$0xff]  ;;  %v7475_v5 = vld [vmem:[#allocation38_spill] sm:$0xff] }
 0x5c6   :  { %2650 = vmatprep.subr.bf16.mxu1 %v7465_v32  ;;  %2691 = vmatprep.subr.bf16.mxu0 %v7466_v62  ;;  %v7476_v32 = vld [vmem:[#allocation70_spill] sm:$0xff]  ;;  %v7477_v62 = vld [vmem:[#allocation40_spill] sm:$0xff] }
 0x5c9   :  { %2651 = vmatpush1.bf16.msra.mxu1 %v7467_v13  ;;  %2692 = vmatpush1.bf16.msra.mxu0 %v7468_v21  ;;  %v7478_v13 = vld [vmem:[#allocation72_spill] sm:$0xff]  ;;  %v7479_v21 = vld [vmem:[#allocation42_spill] sm:$0xff] }
 0x5ca   :  { %2652 = vmatprep.subr.bf16.mxu1 %v7469_v25  ;;  %2693 = vmatprep.subr.bf16.mxu0 %v7470_v30  ;;  %v7480_v25 = vld [vmem:[#allocation74_spill] sm:$0xff]  ;;  %v7481_v30 = vld [vmem:[#allocation44_spill] sm:$0xff] }
 0x5cd   :  { %2653 = vmatpush2.bf16.msra.mxu1 %v7471_v9  ;;  %2694 = vmatpush2.bf16.msra.mxu0 %v7472_v10  ;;  %v7482_v9 = vld [vmem:[#allocation76_spill] sm:$0xff]  ;;  %v7483_v10 = vld [vmem:[#allocation46_spill] sm:$0xff] }
 0x5ce   :  { %2654 = vmatprep.subr.bf16.mxu1 %v7473_v55  ;;  %2695 = vmatprep.subr.bf16.mxu0 %v7474_v39  ;;  %v7484_v55 = vld [vmem:[#allocation78_spill] sm:$0xff]  ;;  %v7485_v39 = vld [vmem:[#allocation48_spill] sm:$0xff] }
 0x5d1   :  { %2655 = vmatpush2.bf16.msra.mxu1 %v7475_v5  ;;  %2696 = vmatpush2.bf16.msra.mxu0 %v7476_v32  ;;  %v7486_v5 = vld [vmem:[#allocation80_spill] sm:$0xff]  ;;  %v7487_v32 = vld [vmem:[#allocation50_spill] sm:$0xff] }
 0x5d2   :  { %2656 = vmatprep.subr.bf16.mxu1 %v7477_v62  ;;  %2697 = vmatprep.subr.bf16.mxu0 %v7478_v13  ;;  %v7488_v62 = vld [vmem:[#allocation82_spill] sm:$0xff]  ;;  %v7489_v13 = vld [vmem:[#allocation52_spill] sm:$0xff] }
 0x5d5   :  { %2657 = vmatpush2.bf16.msra.mxu1 %v7479_v21  ;;  %2698 = vmatpush2.bf16.msra.mxu0 %v7480_v25  ;;  %v7490_v21 = vld [vmem:[#allocation84_spill] sm:$0xff]  ;;  %v7491_v25 = vld [vmem:[#allocation54_spill] sm:$0xff] }
 0x5d6   :  { %2658 = vmatprep.subr.bf16.mxu1 %v7481_v30  ;;  %2699 = vmatprep.subr.bf16.mxu0 %v7482_v9  ;;  %v7492_v30 = vld [vmem:[#allocation86_spill] sm:$0xff]  ;;  %v7493_v9 = vld [vmem:[#allocation56_spill] sm:$0xff] }
 0x5d9   :  { %2659 = vmatpush2.bf16.msra.mxu1 %v7483_v10  ;;  %2700 = vmatpush2.bf16.msra.mxu0 %v7484_v55  ;;  %v7494_v10 = vld [vmem:[#allocation88_spill] sm:$0xff]  ;;  %v7495_v55 = vld [vmem:[#allocation58_spill] sm:$0xff] }
 0x5da   :  { %2660 = vmatprep.subr.bf16.mxu1 %v7485_v39  ;;  %2701 = vmatprep.subr.bf16.mxu0 %v7486_v5  ;;  %v7496_v39 = vld [vmem:[#allocation90_spill] sm:$0xff]  ;;  %v7497_v5 = vld [vmem:[#allocation60_spill] sm:$0xff] }
 0x5dd   :  { %2661 = vmatpush2.bf16.msra.mxu1 %v7487_v32  ;;  %2702 = vmatpush2.bf16.msra.mxu0 %v7488_v62  ;;  %v7498_v32 = vld [vmem:[#allocation92_spill] sm:$0xff]  ;;  %v7499_v62 = vld [vmem:[#allocation62_spill] sm:$0xff] }
 0x5de   :  { %2662 = vmatprep.subr.bf16.mxu1 %v7489_v13  ;;  %2703 = vmatprep.subr.bf16.mxu0 %v7490_v21  ;;  %v7500_v13 = vld [vmem:[#allocation94_spill] sm:$0xff]  ;;  %v7501_v21 = vld [vmem:[#allocation65_spill] sm:$0xff] }
 0x5e1   :  { %2663 = vmatpush2.bf16.msra.mxu1 %v7491_v25  ;;  %2704 = vmatpush2.bf16.msra.mxu0 %v7492_v30  ;;  %v7502_v25 = vld [vmem:[#allocation97_spill] sm:$0xff] }
 0x5e2   :  { %2664 = vmatprep.subr.bf16.mxu1 %v7493_v9  ;;  %2705 = vmatprep.subr.bf16.mxu0 %v7494_v10 }
 0x5e5   :  { %2665 = vmatpush2.bf16.msra.mxu1 %v7495_v55  ;;  %2706 = vmatpush2.bf16.msra.mxu0 %v7496_v39 }
 0x5e6   :  { %2666 = vmatprep.subr.bf16.mxu1 %v7497_v5  ;;  %2707 = vmatprep.subr.bf16.mxu0 %v7498_v32 }
 0x5e9   :  { %2667 = vmatpush2.bf16.msra.mxu1 %v7499_v62  ;;  %2708 = vmatpush2.bf16.msra.mxu0 %v7500_v13  ;;  %v7506_v13 = vld [vmem:[#allocation153_spill] sm:$0xff] }
 0x5ea   :  { %2718 = vmatprep.subr.bf16.mxu1 %v7501_v21  ;;  %2759 = vmatprep.subr.bf16.mxu0 %v7502_v25 }
 0x62c   :  { %v2449_v30 = vpop.f32.mrf.mxu1  ;;  %v2490_v9 = vpop.f32.mrf.mxu0 }
 0x62d   :  { %v2581_v5 = vadd.f32 %v2490_v9, %v7503_v23  ;;  %v2579_v32 = vadd.f32 %v2449_v30, %v7504_v49  ;;  %v7508_v49 = vld [vmem:[#allocation189_spill] sm:$0xff] }
 0x62e   :  { %v2451_v2 = vpop.f32.mrf.mxu1  ;;  %v2492_v10 = vpop.f32.mrf.mxu0 }
 0x62f   :  { %v2582_v62 = vadd.f32 %v2492_v10, %v7505_v12  ;;  %v2589_v37 = vmul.f32 0.5, %v2581_v5  ;;  %v2580_v42 = vadd.f32 %v2451_v2, %v7506_v13  ;;  %v2587_v21 = vmul.f32 0.5, %v2579_v32 }
 0x630   :  { %v2453_v15 = vpop.f32.mrf.mxu1  ;;  %v2494_v55 = vpop.f32.mrf.mxu0 }
 0x631   :  { %v2590_v34 = vmul.f32 0.5, %v2582_v62  ;;  %4326 = vtanh.f32 %v2589_v37  ;;  %v2588_v25 = vmul.f32 0.5, %v2580_v42  ;;  %v7509_v37 = vld [vmem:[#allocation173_spill] sm:$0xff] }
 0x632   :  { %v2454_v7 = vpop.f32.mrf.mxu1  ;;  %v2495_v39 = vpop.f32.mrf.mxu0  ;;  %4328 = vtanh.f32 %v2587_v21 }
 0x633   :  { %4330 = vtanh.f32 %v2590_v34  ;;  %v7507_v7 = vld [vmem:[#allocation188_spill] sm:$0xff]  ;;  %v7510_v34 = vld [vmem:[#allocation174_spill] sm:$0xff] }
 0x634   :  { %4332 = vtanh.f32 %v2588_v25 }
 0x63e   :  { %v4327_v5 = vpop.eup %4326 }
 0x63f   :  { %v4329_v21 = vpop.eup %4328  ;;  %v2601_v62 = vmul.f32 0.5, %v4327_v5 }
 0x640   :  { %v4331_v32 = vpop.eup %4330 }
 0x641   :  { %v4333_v9 = vpop.eup %4332  ;;  %v2602_v59 = vmul.f32 0.5, %v4331_v32  ;;  %v2607_v45 = vadd.f32 0.5, %v2601_v62 }
 0x66c   :  { %v2531_v15 = vpop.f32.mrf.mxu1  ;;  %v2572_v55 = vpop.f32.mrf.mxu0 }
 0x66d   :  { %v2585_v39 = vadd.f32 %v2572_v55, %v7507_v7  ;;  %v2583_v42 = vadd.f32 %v2531_v15, %v7509_v37  ;;  %v2599_v55 = vmul.f32 0.5, %v4329_v21 }
 0x66e   :  { %v2533_v40 = vpop.f32.mrf.mxu1  ;;  %v2574_v23 = vpop.f32.mrf.mxu0 }
 0x66f   :  { %4334 = vtanh.f32 %v2585_v39  ;;  %v2586_v30 = vadd.f32 %v2574_v23, %v7508_v49  ;;  %v2584_v25 = vadd.f32 %v2533_v40, %v7510_v34  ;;  %v2591_v7 = vmul.f32 0.5, %v2583_v42 }
 0x670   :  { %v2535_v12 = vpop.f32.mrf.mxu1  ;;  %v2576_v10 = vpop.f32.mrf.mxu0  ;;  %v2600_v23 = vmul.f32 0.5, %v4333_v9  ;;  %v2605_v49 = vadd.f32 0.5, %v2599_v55 }
 0x671   :  { %4336 = vtanh.f32 %v2586_v30  ;;  %v2592_v39 = vmul.f32 0.5, %v2584_v25  ;;  %v2608_v30 = vadd.f32 0.5, %v2602_v59  ;;  %v2613_v10 = vmul.f32 %v2607_v45, %v5867_v58 }
 0x672   :  { %v2536_v13 = vpop.f32.mrf.mxu1  ;;  %v2577_v2 = vpop.f32.mrf.mxu0  ;;  %4338 = vtanh.f32 %v2591_v7 }
 0x673   :  { %4340 = vtanh.f32 %v2592_v39  ;;  %v2606_v13 = vadd.f32 0.5, %v2600_v23  ;;  %v2614_v5 = vmul.f32 %v2608_v30, %v5871_v35  ;;  %v7511_v35 = vld [vmem:[#allocation125_spill] sm:$0xff]  ;;  %v7512_v23 = vld [vmem:[#allocation106_spill] sm:$0xff]  ;;  %v7515_v30 = vld [vmem:[#allocation127_spill] sm:$0xff] }
 0x67c   :  { %v4335_v12 = vpop.eup %4334 }
 0x67d   :  { %v2615_v15 = vmul.f32 %v4335_v12, %v2605_v49  ;;  %v7513_v49 = vld [vmem:[#allocation126_spill] sm:$0xff]  ;;  %v7514_v12 = vld [vmem:[#allocation108_spill] sm:$0xff] }
 0x67e   :  { %v4337_v2 = vpop.eup %4336 }
 0x67f   :  { %v6017_v40 = vadd.f32 %v2615_v15, %v2613_v10  ;;  %v2616_v37 = vmul.f32 %v4337_v2, %v2606_v13  ;;  %v4339_v21 = vpop.eup %4338  ;;  %v7516_v10 = vld [vmem:[#allocation110_spill] sm:$0xff]  ;;  %v7517_v15 = vld [vmem:[#allocation128_spill] sm:$0xff]  ;;  %v7519_v2 = vld [vmem:[#allocation129_spill] sm:$0xff] }
 0x680   :  { %v4341_v34 = vpop.eup %4340  ;;  %v2603_v59 = vmul.f32 0.5, %v4339_v21  ;;  %v7518_v13 = vld [vmem:[#allocation112_spill] sm:$0xff]  ;;  %v7522_v21 = vld [vmem:[#allocation115_spill] sm:$0xff] }
 0x681   :  { %4342 = vtanh.f32 %v6017_v40  ;;  %v6021_v42 = vadd.f32 %v2616_v37, %v2614_v5  ;;  %v2604_v25 = vmul.f32 0.5, %v4341_v34  ;;  %v7520_v5 = vld [vmem:[#allocation114_spill] sm:$0xff]  ;;  %v7523_v34 = vld [vmem:[#allocation131_spill] sm:$0xff] }
 0x682   :  { %v2609_v58 = vadd.f32 0.5, %v2603_v59  ;;  %v7521_v37 = vld [vmem:[#allocation130_spill] sm:$0xff]  ;;  %v7524_v59 = vld [vmem:[#allocation116_spill] sm:$0xff] }
 0x683   :  { %4344 = vtanh.f32 %v6021_v42  ;;  %v2610_v45 = vadd.f32 0.5, %v2604_v25  ;;  %v7525_v25 = vld [vmem:[#allocation133_spill] sm:$0xff] }
 0x68e   :  { %v4343_v32 = vpop.eup %4342 }
 0x68f   :  { %v2621_v9 = vmul.f32 %v4343_v32, %v2609_v58  ;;  %v7526_v32 = vld [vmem:[#allocation117_spill] sm:$0xff]  ;;  %v7527_v58 = vld [vmem:[#allocation134_spill] sm:$0xff] }
 0x690   :  { %v4345_v62 = vpop.eup %4344 }
 0x691   :  { %v2622_v55 = vmul.f32 %v4345_v62, %v2610_v45  ;;  %v6024_v39 = vpack.c.bf16 %v2621_v9, %v2621_v9  ;;  %v7528_v45 = vld [vmem:[#allocation118_spill] sm:$0xff]  ;;  %v7529_v62 = vld [vmem:[#allocation135_spill] sm:$0xff] }
 0x692   :  { %v7530_v9 = vld [vmem:[#allocation119_spill] sm:$0xff] }
 0x693   :  { %v2635_v7 = vpack.c.bf16 %v2622_v55, %v2622_v55  ;;  %v7531_v55 = vld [vmem:[#allocation136_spill] sm:$0xff] }
 0x695   :  { %2668 = vmatprep.mubr.bf16.mxu1 %v2635_v7  ;;  %2709 = vmatprep.mubr.bf16.mxu0 %v2635_v7 }
 0x696   :  { %2669 = vmatmul.mubr.bf16.vlgmr.msra.gmra.mxu1 %v6024_v39  ;;  %2710 = vmatmul.mubr.bf16.vlgmr.msra.gmra.mxu0 %v6024_v39 }
 0x697   :  { %2719 = vmatpush1.bf16.msra.mxu1 %v7115_v31  ;;  %2760 = vmatpush1.bf16.msra.mxu0 %v7116_v6 }
 0x698   :  { %2750 = vmatprep.mubr.bf16.mxu1 %v2635_v7  ;;  %2791 = vmatprep.mubr.bf16.mxu0 %v2635_v7  ;;  %v7532_v7 = vld [vmem:[#allocation120_spill] sm:$0xff] }
 0x699   :  { %2720 = vmatprep.subr.bf16.mxu1 %v7117_v11  ;;  %2761 = vmatprep.subr.bf16.mxu0 %v7118_v48 }
 0x69b   :  { %2721 = vmatpush1.bf16.msra.mxu1 %v7119_v18  ;;  %2762 = vmatpush1.bf16.msra.mxu0 %v7120_v4 }
 0x69c   :  { %2722 = vmatprep.subr.bf16.mxu1 %v7121_v56  ;;  %2763 = vmatprep.subr.bf16.mxu0 %v7122_v3 }
 0x69f   :  { %2723 = vmatpush1.bf16.msra.mxu1 %v7123_v46  ;;  %2764 = vmatpush1.bf16.msra.mxu0 %v7124_v22 }
 0x6a0   :  { %2724 = vmatprep.subr.bf16.mxu1 %v7125_v53  ;;  %2765 = vmatprep.subr.bf16.mxu0 %v7126_v57 }
 0x6a3   :  { %2725 = vmatpush1.bf16.msra.mxu1 %v7127_v8  ;;  %2766 = vmatpush1.bf16.msra.mxu0 %v7128_v24 }
 0x6a4   :  { %2726 = vmatprep.subr.bf16.mxu1 %v7129_v16  ;;  %2767 = vmatprep.subr.bf16.mxu0 %v7130_v60 }
 0x6a7   :  { %2727 = vmatpush1.bf16.msra.mxu1 %v7131_v63  ;;  %2768 = vmatpush1.bf16.msra.mxu0 %v5012_v61 }
 0x6a8   :  { %2728 = vmatprep.subr.bf16.mxu1 %v7132_v36  ;;  %2769 = vmatprep.subr.bf16.mxu0 %v5018_v1 }
 0x6ab   :  { %2729 = vmatpush1.bf16.msra.mxu1 %v7133_v38  ;;  %2770 = vmatpush1.bf16.msra.mxu0 %v5024_v0 }
 0x6ac   :  { %2730 = vmatprep.subr.bf16.mxu1 %v7134_v44  ;;  %2771 = vmatprep.subr.bf16.mxu0 %v5030_v26 }
 0x6af   :  { %2731 = vmatpush1.bf16.msra.mxu1 %v7135_v43  ;;  %2772 = vmatpush1.bf16.msra.mxu0 %v5036_v47 }
 0x6b0   :  { %2732 = vmatprep.subr.bf16.mxu1 %v7136_v50  ;;  %2773 = vmatprep.subr.bf16.mxu0 %v5042_v51 }
 0x6b3   :  { %2733 = vmatpush1.bf16.msra.mxu1 %v7137_v27  ;;  %2774 = vmatpush1.bf16.msra.mxu0 %v5048_v14 }
 0x6b4   :  { %2734 = vmatprep.subr.bf16.mxu1 %v7138_v54  ;;  %2775 = vmatprep.subr.bf16.mxu0 %v7220_v33 }
 0x6b7   :  { %2735 = vmatpush2.bf16.msra.mxu1 %v7139_v20  ;;  %2776 = vmatpush2.bf16.msra.mxu0 %v7221_v52 }
 0x6b8   :  { %2736 = vmatprep.subr.bf16.mxu1 %v7140_v29  ;;  %2777 = vmatprep.subr.bf16.mxu0 %v7222_v28 }
 0x6bb   :  { %2737 = vmatpush2.bf16.msra.mxu1 %v7141_v41  ;;  %2778 = vmatpush2.bf16.msra.mxu0 %v7223_v17 }
 0x6bc   :  { %2738 = vmatprep.subr.bf16.mxu1 %v7224_v19  ;;  %2779 = vmatprep.subr.bf16.mxu0 %v7511_v35 }
 0x6bf   :  { %2739 = vmatpush2.bf16.msra.mxu1 %v7512_v23  ;;  %2780 = vmatpush2.bf16.msra.mxu0 %v7513_v49 }
 0x6c0   :  { %2740 = vmatprep.subr.bf16.mxu1 %v7514_v12  ;;  %2781 = vmatprep.subr.bf16.mxu0 %v7515_v30 }
 0x6c3   :  { %2741 = vmatpush2.bf16.msra.mxu1 %v7516_v10  ;;  %2782 = vmatpush2.bf16.msra.mxu0 %v7517_v15  ;;  %v7602_v15 = vld [vmem:[#allocation164_spill] sm:$0xff] }
 0x6c4   :  { %2742 = vmatprep.subr.bf16.mxu1 %v7518_v13  ;;  %2783 = vmatprep.subr.bf16.mxu0 %v7519_v2  ;;  %v7600_v2 = vld [vmem:[#allocation162_spill] sm:$0xff]  ;;  %v7601_v13 = vld [vmem:[#allocation155_spill] sm:$0xff] }
 0x6c7   :  { %2743 = vmatpush2.bf16.msra.mxu1 %v7520_v5  ;;  %2784 = vmatpush2.bf16.msra.mxu0 %v7521_v37 }
 0x6c8   :  { %2744 = vmatprep.subr.bf16.mxu1 %v7522_v21  ;;  %2785 = vmatprep.subr.bf16.mxu0 %v7523_v34  ;;  %v7533_v21 = vld [vmem:[#allocation137_spill] sm:$0xff]  ;;  %v7534_v34 = vld [vmem:[#allocation16_spill] sm:$0xff] }
 0x6cb   :  { %2745 = vmatpush2.bf16.msra.mxu1 %v7524_v59  ;;  %2786 = vmatpush2.bf16.msra.mxu0 %v7525_v25  ;;  %v7535_v59 = vld [vmem:[#allocation31_spill] sm:$0xff] }
 0x6cc   :  { %2746 = vmatprep.subr.bf16.mxu1 %v7526_v32  ;;  %2787 = vmatprep.subr.bf16.mxu0 %v7527_v58  ;;  %v7536_v58 = vld [vmem:[#allocation17_spill] sm:$0xff]  ;;  %v7545_v32 = vld [vmem:[#allocation43_spill] sm:$0xff] }
 0x6cf   :  { %2747 = vmatpush2.bf16.msra.mxu1 %v7528_v45  ;;  %2788 = vmatpush2.bf16.msra.mxu0 %v7529_v62  ;;  %v7537_v45 = vld [vmem:[#allocation35_spill] sm:$0xff]  ;;  %v7538_v62 = vld [vmem:[#allocation18_spill] sm:$0xff] }
 0x6d0   :  { %2748 = vmatprep.subr.bf16.mxu1 %v7530_v9  ;;  %2789 = vmatprep.subr.bf16.mxu0 %v7531_v55  ;;  %v7539_v9 = vld [vmem:[#allocation37_spill] sm:$0xff]  ;;  %v7540_v55 = vld [vmem:[#allocation19_spill] sm:$0xff] }
 0x6d3   :  { %2749 = vmatpush2.bf16.msra.mxu1 %v7532_v7  ;;  %2790 = vmatpush2.bf16.msra.mxu0 %v7533_v21  ;;  %v7541_v7 = vld [vmem:[#allocation39_spill] sm:$0xff]  ;;  %v7542_v21 = vld [vmem:[#allocation20_spill] sm:$0xff] }
 0x6d4   :  { %2857 = vmatprep.subr.bf16.mxu1 %v7534_v34  ;;  %2898 = vmatprep.subr.bf16.mxu0 %v7535_v59  ;;  %v7543_v34 = vld [vmem:[#allocation41_spill] sm:$0xff] }
 0x6d5   :  { %v7544_v59 = vld [vmem:[#allocation21_spill] sm:$0xff] }
 0x6d6   :  { %2751 = vmatmul.mubr.bf16.vlgmr.msra.gmra.mxu1 %v6024_v39  ;;  %2792 = vmatmul.mubr.bf16.vlgmr.msra.gmra.mxu0 %v6024_v39  ;;  %v7546_v39 = vld [vmem:[#allocation22_spill] sm:$0xff] }
 0x6d7   :  { %2858 = vmatpush1.bf16.msra.mxu1 %v7536_v58  ;;  %2899 = vmatpush1.bf16.msra.mxu0 %v7537_v45  ;;  %v7547_v58 = vld [vmem:[#allocation45_spill] sm:$0xff]  ;;  %v7548_v45 = vld [vmem:[#allocation23_spill] sm:$0xff] }
 0x6d8   :  { %2859 = vmatprep.subr.bf16.mxu1 %v7538_v62  ;;  %2900 = vmatprep.subr.bf16.mxu0 %v7539_v9  ;;  %v7549_v62 = vld [vmem:[#allocation47_spill] sm:$0xff]  ;;  %v7550_v9 = vld [vmem:[#allocation24_spill] sm:$0xff] }
 0x6db   :  { %2860 = vmatpush1.bf16.msra.mxu1 %v7540_v55  ;;  %2901 = vmatpush1.bf16.msra.mxu0 %v7541_v7  ;;  %v7551_v55 = vld [vmem:[#allocation49_spill] sm:$0xff] }
 0x6dc   :  { %2861 = vmatprep.subr.bf16.mxu1 %v7542_v21  ;;  %2902 = vmatprep.subr.bf16.mxu0 %v7543_v34  ;;  %v7552_v7 = vld [vmem:[#allocation25_spill] sm:$0xff]  ;;  %v7553_v21 = vld [vmem:[#allocation51_spill] sm:$0xff]  ;;  %v7554_v34 = vld [vmem:[#allocation26_spill] sm:$0xff] }
 0x6df   :  { %2862 = vmatpush1.bf16.msra.mxu1 %v7544_v59  ;;  %2903 = vmatpush1.bf16.msra.mxu0 %v7545_v32  ;;  %v7555_v59 = vld [vmem:[#allocation53_spill] sm:$0xff]  ;;  %v7556_v32 = vld [vmem:[#allocation27_spill] sm:$0xff] }
 0x6e0   :  { %2863 = vmatprep.subr.bf16.mxu1 %v7546_v39  ;;  %2904 = vmatprep.subr.bf16.mxu0 %v7547_v58  ;;  %v7557_v39 = vld [vmem:[#allocation55_spill] sm:$0xff]  ;;  %v7558_v58 = vld [vmem:[#allocation28_spill] sm:$0xff] }
 0x6e3   :  { %2864 = vmatpush1.bf16.msra.mxu1 %v7548_v45  ;;  %2905 = vmatpush1.bf16.msra.mxu0 %v7549_v62  ;;  %v7559_v45 = vld [vmem:[#allocation57_spill] sm:$0xff] }
 0x6e4   :  { %2865 = vmatprep.subr.bf16.mxu1 %v7550_v9  ;;  %2906 = vmatprep.subr.bf16.mxu0 %v7551_v55  ;;  %v7560_v62 = vld [vmem:[#allocation29_spill] sm:$0xff]  ;;  %v7561_v9 = vld [vmem:[#allocation59_spill] sm:$0xff]  ;;  %v7562_v55 = vld [vmem:[#allocation30_spill] sm:$0xff] }
 0x6e7   :  { %2866 = vmatpush1.bf16.msra.mxu1 %v7552_v7  ;;  %2907 = vmatpush1.bf16.msra.mxu0 %v7553_v21  ;;  %v7563_v7 = vld [vmem:[#allocation61_spill] sm:$0xff]  ;;  %v7564_v21 = vld [vmem:[#allocation32_spill] sm:$0xff] }
 0x6e8   :  { %2867 = vmatprep.subr.bf16.mxu1 %v7554_v34  ;;  %2908 = vmatprep.subr.bf16.mxu0 %v7555_v59  ;;  %v7565_v34 = vld [vmem:[#allocation63_spill] sm:$0xff]  ;;  %v7566_v59 = vld [vmem:[#allocation33_spill] sm:$0xff] }
 0x6eb   :  { %2868 = vmatpush1.bf16.msra.mxu1 %v7556_v32  ;;  %2909 = vmatpush1.bf16.msra.mxu0 %v7557_v39  ;;  %v7567_v32 = vld [vmem:[#allocation64_spill] sm:$0xff]  ;;  %v7568_v39 = vld [vmem:[#allocation34_spill] sm:$0xff] }
 0x6ec   :  { %2869 = vmatprep.subr.bf16.mxu1 %v7558_v58  ;;  %2910 = vmatprep.subr.bf16.mxu0 %v7559_v45  ;;  %v7569_v58 = vld [vmem:[#allocation66_spill] sm:$0xff]  ;;  %v7570_v45 = vld [vmem:[#allocation36_spill] sm:$0xff] }
 0x6ef   :  { %2870 = vmatpush1.bf16.msra.mxu1 %v7560_v62  ;;  %2911 = vmatpush1.bf16.msra.mxu0 %v7561_v9  ;;  %v7571_v62 = vld [vmem:[#allocation68_spill] sm:$0xff]  ;;  %v7572_v9 = vld [vmem:[#allocation38_spill] sm:$0xff] }
 0x6f0   :  { %2871 = vmatprep.subr.bf16.mxu1 %v7562_v55  ;;  %2912 = vmatprep.subr.bf16.mxu0 %v7563_v7  ;;  %v7573_v55 = vld [vmem:[#allocation70_spill] sm:$0xff]  ;;  %v7574_v7 = vld [vmem:[#allocation40_spill] sm:$0xff] }
 0x6f3   :  { %2872 = vmatpush1.bf16.msra.mxu1 %v7564_v21  ;;  %2913 = vmatpush1.bf16.msra.mxu0 %v7565_v34  ;;  %v7575_v21 = vld [vmem:[#allocation72_spill] sm:$0xff]  ;;  %v7576_v34 = vld [vmem:[#allocation42_spill] sm:$0xff] }
 0x6f4   :  { %2873 = vmatprep.subr.bf16.mxu1 %v7566_v59  ;;  %2914 = vmatprep.subr.bf16.mxu0 %v7567_v32  ;;  %v7577_v59 = vld [vmem:[#allocation74_spill] sm:$0xff]  ;;  %v7578_v32 = vld [vmem:[#allocation44_spill] sm:$0xff] }
 0x6f7   :  { %2874 = vmatpush2.bf16.msra.mxu1 %v7568_v39  ;;  %2915 = vmatpush2.bf16.msra.mxu0 %v7569_v58  ;;  %v7579_v39 = vld [vmem:[#allocation76_spill] sm:$0xff]  ;;  %v7580_v58 = vld [vmem:[#allocation46_spill] sm:$0xff] }
 0x6f8   :  { %2875 = vmatprep.subr.bf16.mxu1 %v7570_v45  ;;  %2916 = vmatprep.subr.bf16.mxu0 %v7571_v62  ;;  %v7581_v45 = vld [vmem:[#allocation78_spill] sm:$0xff]  ;;  %v7582_v62 = vld [vmem:[#allocation48_spill] sm:$0xff] }
 0x6fb   :  { %2876 = vmatpush2.bf16.msra.mxu1 %v7572_v9  ;;  %2917 = vmatpush2.bf16.msra.mxu0 %v7573_v55  ;;  %v7583_v9 = vld [vmem:[#allocation80_spill] sm:$0xff]  ;;  %v7584_v55 = vld [vmem:[#allocation50_spill] sm:$0xff] }
 0x6fc   :  { %2877 = vmatprep.subr.bf16.mxu1 %v7574_v7  ;;  %2918 = vmatprep.subr.bf16.mxu0 %v7575_v21  ;;  %v7585_v7 = vld [vmem:[#allocation82_spill] sm:$0xff]  ;;  %v7586_v21 = vld [vmem:[#allocation52_spill] sm:$0xff] }
 0x6ff   :  { %2878 = vmatpush2.bf16.msra.mxu1 %v7576_v34  ;;  %2919 = vmatpush2.bf16.msra.mxu0 %v7577_v59  ;;  %v7587_v34 = vld [vmem:[#allocation84_spill] sm:$0xff]  ;;  %v7588_v59 = vld [vmem:[#allocation54_spill] sm:$0xff] }
 0x700   :  { %2879 = vmatprep.subr.bf16.mxu1 %v7578_v32  ;;  %2920 = vmatprep.subr.bf16.mxu0 %v7579_v39  ;;  %v7589_v32 = vld [vmem:[#allocation86_spill] sm:$0xff]  ;;  %v7590_v39 = vld [vmem:[#allocation56_spill] sm:$0xff] }
 0x703   :  { %2880 = vmatpush2.bf16.msra.mxu1 %v7580_v58  ;;  %2921 = vmatpush2.bf16.msra.mxu0 %v7581_v45  ;;  %v7591_v58 = vld [vmem:[#allocation88_spill] sm:$0xff]  ;;  %v7592_v45 = vld [vmem:[#allocation58_spill] sm:$0xff] }
 0x704   :  { %2881 = vmatprep.subr.bf16.mxu1 %v7582_v62  ;;  %2922 = vmatprep.subr.bf16.mxu0 %v7583_v9  ;;  %v7593_v62 = vld [vmem:[#allocation90_spill] sm:$0xff]  ;;  %v7594_v9 = vld [vmem:[#allocation60_spill] sm:$0xff] }
 0x707   :  { %2882 = vmatpush2.bf16.msra.mxu1 %v7584_v55  ;;  %2923 = vmatpush2.bf16.msra.mxu0 %v7585_v7  ;;  %v7595_v55 = vld [vmem:[#allocation92_spill] sm:$0xff]  ;;  %v7596_v7 = vld [vmem:[#allocation62_spill] sm:$0xff] }
 0x708   :  { %2883 = vmatprep.subr.bf16.mxu1 %v7586_v21  ;;  %2924 = vmatprep.subr.bf16.mxu0 %v7587_v34  ;;  %v7597_v21 = vld [vmem:[#allocation94_spill] sm:$0xff]  ;;  %v7598_v34 = vld [vmem:[#allocation65_spill] sm:$0xff] }
 0x70b   :  { %2884 = vmatpush2.bf16.msra.mxu1 %v7588_v59  ;;  %2925 = vmatpush2.bf16.msra.mxu0 %v7589_v32  ;;  %v7599_v59 = vld [vmem:[#allocation97_spill] sm:$0xff] }
 0x70c   :  { %2885 = vmatprep.subr.bf16.mxu1 %v7590_v39  ;;  %2926 = vmatprep.subr.bf16.mxu0 %v7591_v58 }
 0x70f   :  { %2886 = vmatpush2.bf16.msra.mxu1 %v7592_v45  ;;  %2927 = vmatpush2.bf16.msra.mxu0 %v7593_v62 }
 0x710   :  { %2887 = vmatprep.subr.bf16.mxu1 %v7594_v9  ;;  %2928 = vmatprep.subr.bf16.mxu0 %v7595_v55 }
 0x713   :  { %2888 = vmatpush2.bf16.msra.mxu1 %v7596_v7  ;;  %2929 = vmatpush2.bf16.msra.mxu0 %v7597_v21  ;;  %v7603_v21 = vld [vmem:[#allocation157_spill] sm:$0xff] }
 0x714   :  { %2939 = vmatprep.subr.bf16.mxu1 %v7598_v34  ;;  %2980 = vmatprep.subr.bf16.mxu0 %v7599_v59 }
 0x756   :  { %v2670_v32 = vpop.f32.mrf.mxu1  ;;  %v2711_v39 = vpop.f32.mrf.mxu0 }
 0x757   :  { %v2802_v9 = vadd.f32 %v2711_v39, %v7600_v2  ;;  %v2800_v55 = vadd.f32 %v2670_v32, %v7601_v13  ;;  %v7605_v13 = vld [vmem:[#allocation191_spill] sm:$0xff] }
 0x758   :  { %v2672_v25 = vpop.f32.mrf.mxu1  ;;  %v2713_v58 = vpop.f32.mrf.mxu0 }
 0x759   :  { %v2803_v7 = vadd.f32 %v2713_v58, %v7602_v15  ;;  %v2810_v10 = vmul.f32 0.5, %v2802_v9  ;;  %v2801_v30 = vadd.f32 %v2672_v25, %v7603_v21  ;;  %v2808_v34 = vmul.f32 0.5, %v2800_v55 }
 0x75a   :  { %v2674_v37 = vpop.f32.mrf.mxu1  ;;  %v2715_v45 = vpop.f32.mrf.mxu0 }
 0x75b   :  { %v2811_v12 = vmul.f32 0.5, %v2803_v7  ;;  %4346 = vtanh.f32 %v2810_v10  ;;  %v2809_v59 = vmul.f32 0.5, %v2801_v30  ;;  %v7606_v10 = vld [vmem:[#allocation175_spill] sm:$0xff] }
 0x75c   :  { %v2675_v5 = vpop.f32.mrf.mxu1  ;;  %v2716_v62 = vpop.f32.mrf.mxu0  ;;  %4348 = vtanh.f32 %v2808_v34 }
 0x75d   :  { %4350 = vtanh.f32 %v2811_v12  ;;  %v7604_v5 = vld [vmem:[#allocation190_spill] sm:$0xff]  ;;  %v7607_v12 = vld [vmem:[#allocation177_spill] sm:$0xff] }
 0x75e   :  { %4352 = vtanh.f32 %v2809_v59 }
 0x768   :  { %v4347_v9 = vpop.eup %4346 }
 0x769   :  { %v4349_v34 = vpop.eup %4348  ;;  %v2822_v7 = vmul.f32 0.5, %v4347_v9 }
 0x76a   :  { %v4351_v55 = vpop.eup %4350 }
 0x76b   :  { %v4353_v39 = vpop.eup %4352  ;;  %v2823_v23 = vmul.f32 0.5, %v4351_v55  ;;  %v2828_v35 = vadd.f32 0.5, %v2822_v7 }
 0x796   :  { %v2752_v37 = vpop.f32.mrf.mxu1  ;;  %v2793_v45 = vpop.f32.mrf.mxu0 }
 0x797   :  { %v2806_v62 = vadd.f32 %v2793_v45, %v7604_v5  ;;  %v2804_v30 = vadd.f32 %v2752_v37, %v7606_v10  ;;  %v2820_v45 = vmul.f32 0.5, %v4349_v34 }
 0x798   :  { %v2754_v49 = vpop.f32.mrf.mxu1  ;;  %v2795_v2 = vpop.f32.mrf.mxu0 }
 0x799   :  { %4354 = vtanh.f32 %v2806_v62  ;;  %v2807_v32 = vadd.f32 %v2795_v2, %v7605_v13  ;;  %v2805_v59 = vadd.f32 %v2754_v49, %v7607_v12  ;;  %v2812_v5 = vmul.f32 0.5, %v2804_v30 }
 0x79a   :  { %v2756_v15 = vpop.f32.mrf.mxu1  ;;  %v2797_v58 = vpop.f32.mrf.mxu0  ;;  %v2821_v2 = vmul.f32 0.5, %v4353_v39  ;;  %v2826_v13 = vadd.f32 0.5, %v2820_v45 }
 0x79b   :  { %4356 = vtanh.f32 %v2807_v32  ;;  %v2813_v62 = vmul.f32 0.5, %v2805_v59  ;;  %v2829_v32 = vadd.f32 0.5, %v2823_v23  ;;  %v2834_v58 = vmul.f32 %v2828_v35, %v6017_v40 }
 0x79c   :  { %v2757_v21 = vpop.f32.mrf.mxu1  ;;  %v2798_v25 = vpop.f32.mrf.mxu0  ;;  %4358 = vtanh.f32 %v2812_v5 }
 0x79d   :  { %4360 = vtanh.f32 %v2813_v62  ;;  %v2827_v21 = vadd.f32 0.5, %v2821_v2  ;;  %v2835_v9 = vmul.f32 %v2829_v32, %v6021_v42  ;;  %v7608_v42 = vld [vmem:[#allocation125_spill] sm:$0xff]  ;;  %v7609_v2 = vld [vmem:[#allocation106_spill] sm:$0xff]  ;;  %v7612_v32 = vld [vmem:[#allocation127_spill] sm:$0xff] }
 0x7a6   :  { %v4355_v15 = vpop.eup %4354 }
 0x7a7   :  { %v2836_v37 = vmul.f32 %v4355_v15, %v2826_v13  ;;  %v7610_v13 = vld [vmem:[#allocation126_spill] sm:$0xff]  ;;  %v7611_v15 = vld [vmem:[#allocation108_spill] sm:$0xff] }
 0x7a8   :  { %v4357_v25 = vpop.eup %4356 }
 0x7a9   :  { %v6167_v49 = vadd.f32 %v2836_v37, %v2834_v58  ;;  %v2837_v10 = vmul.f32 %v4357_v25, %v2827_v21  ;;  %v4359_v34 = vpop.eup %4358  ;;  %v7613_v58 = vld [vmem:[#allocation110_spill] sm:$0xff]  ;;  %v7614_v37 = vld [vmem:[#allocation128_spill] sm:$0xff]  ;;  %v7616_v25 = vld [vmem:[#allocation129_spill] sm:$0xff] }
 0x7aa   :  { %v4361_v12 = vpop.eup %4360  ;;  %v2824_v23 = vmul.f32 0.5, %v4359_v34  ;;  %v7615_v21 = vld [vmem:[#allocation112_spill] sm:$0xff]  ;;  %v7619_v34 = vld [vmem:[#allocation115_spill] sm:$0xff] }
 0x7ab   :  { %4362 = vtanh.f32 %v6167_v49  ;;  %v6171_v30 = vadd.f32 %v2837_v10, %v2835_v9  ;;  %v2825_v59 = vmul.f32 0.5, %v4361_v12  ;;  %v7617_v9 = vld [vmem:[#allocation114_spill] sm:$0xff]  ;;  %v7620_v12 = vld [vmem:[#allocation131_spill] sm:$0xff] }
 0x7ac   :  { %v2830_v40 = vadd.f32 0.5, %v2824_v23  ;;  %v7618_v10 = vld [vmem:[#allocation130_spill] sm:$0xff]  ;;  %v7621_v23 = vld [vmem:[#allocation116_spill] sm:$0xff] }
 0x7ad   :  { %4364 = vtanh.f32 %v6171_v30  ;;  %v2831_v35 = vadd.f32 0.5, %v2825_v59  ;;  %v7622_v59 = vld [vmem:[#allocation133_spill] sm:$0xff] }
 0x7b8   :  { %v4363_v55 = vpop.eup %4362 }
 0x7b9   :  { %v2842_v39 = vmul.f32 %v4363_v55, %v2830_v40  ;;  %v7623_v55 = vld [vmem:[#allocation117_spill] sm:$0xff]  ;;  %v7624_v40 = vld [vmem:[#allocation134_spill] sm:$0xff] }
 0x7ba   :  { %v4365_v7 = vpop.eup %4364 }
 0x7bb   :  { %v2843_v45 = vmul.f32 %v4365_v7, %v2831_v35  ;;  %v6174_v62 = vpack.c.bf16 %v2842_v39, %v2842_v39  ;;  %v7625_v35 = vld [vmem:[#allocation118_spill] sm:$0xff]  ;;  %v7626_v7 = vld [vmem:[#allocation135_spill] sm:$0xff] }
 0x7bc   :  { %v7627_v39 = vld [vmem:[#allocation119_spill] sm:$0xff] }
 0x7bd   :  { %v2856_v5 = vpack.c.bf16 %v2843_v45, %v2843_v45  ;;  %v7628_v45 = vld [vmem:[#allocation136_spill] sm:$0xff] }
 0x7bf   :  { %2889 = vmatprep.mubr.bf16.mxu1 %v2856_v5  ;;  %2930 = vmatprep.mubr.bf16.mxu0 %v2856_v5 }
 0x7c0   :  { %2890 = vmatmul.mubr.bf16.vlgmr.msra.gmra.mxu1 %v6174_v62  ;;  %2931 = vmatmul.mubr.bf16.vlgmr.msra.gmra.mxu0 %v6174_v62 }
 0x7c1   :  { %2940 = vmatpush1.bf16.msra.mxu1 %v7115_v31  ;;  %2981 = vmatpush1.bf16.msra.mxu0 %v7116_v6 }
 0x7c2   :  { %2971 = vmatprep.mubr.bf16.mxu1 %v2856_v5  ;;  %3012 = vmatprep.mubr.bf16.mxu0 %v2856_v5  ;;  %v7629_v5 = vld [vmem:[#allocation120_spill] sm:$0xff] }
 0x7c3   :  { %2941 = vmatprep.subr.bf16.mxu1 %v7117_v11  ;;  %2982 = vmatprep.subr.bf16.mxu0 %v7118_v48 }
 0x7c5   :  { %2942 = vmatpush1.bf16.msra.mxu1 %v7119_v18  ;;  %2983 = vmatpush1.bf16.msra.mxu0 %v7120_v4 }
 0x7c6   :  { %2943 = vmatprep.subr.bf16.mxu1 %v7121_v56  ;;  %2984 = vmatprep.subr.bf16.mxu0 %v7122_v3 }
 0x7c9   :  { %2944 = vmatpush1.bf16.msra.mxu1 %v7123_v46  ;;  %2985 = vmatpush1.bf16.msra.mxu0 %v7124_v22 }
 0x7ca   :  { %2945 = vmatprep.subr.bf16.mxu1 %v7125_v53  ;;  %2986 = vmatprep.subr.bf16.mxu0 %v7126_v57 }
 0x7cd   :  { %2946 = vmatpush1.bf16.msra.mxu1 %v7127_v8  ;;  %2987 = vmatpush1.bf16.msra.mxu0 %v7128_v24 }
 0x7ce   :  { %2947 = vmatprep.subr.bf16.mxu1 %v7129_v16  ;;  %2988 = vmatprep.subr.bf16.mxu0 %v7130_v60 }
 0x7d1   :  { %2948 = vmatpush1.bf16.msra.mxu1 %v7131_v63  ;;  %2989 = vmatpush1.bf16.msra.mxu0 %v5012_v61 }
 0x7d2   :  { %2949 = vmatprep.subr.bf16.mxu1 %v7132_v36  ;;  %2990 = vmatprep.subr.bf16.mxu0 %v5018_v1 }
 0x7d5   :  { %2950 = vmatpush1.bf16.msra.mxu1 %v7133_v38  ;;  %2991 = vmatpush1.bf16.msra.mxu0 %v5024_v0 }
 0x7d6   :  { %2951 = vmatprep.subr.bf16.mxu1 %v7134_v44  ;;  %2992 = vmatprep.subr.bf16.mxu0 %v5030_v26 }
 0x7d9   :  { %2952 = vmatpush1.bf16.msra.mxu1 %v7135_v43  ;;  %2993 = vmatpush1.bf16.msra.mxu0 %v5036_v47 }
 0x7da   :  { %2953 = vmatprep.subr.bf16.mxu1 %v7136_v50  ;;  %2994 = vmatprep.subr.bf16.mxu0 %v5042_v51 }
 0x7dd   :  { %2954 = vmatpush1.bf16.msra.mxu1 %v7137_v27  ;;  %2995 = vmatpush1.bf16.msra.mxu0 %v5048_v14 }
 0x7de   :  { %2955 = vmatprep.subr.bf16.mxu1 %v7138_v54  ;;  %2996 = vmatprep.subr.bf16.mxu0 %v7220_v33 }
 0x7e1   :  { %2956 = vmatpush2.bf16.msra.mxu1 %v7139_v20  ;;  %2997 = vmatpush2.bf16.msra.mxu0 %v7221_v52 }
 0x7e2   :  { %2957 = vmatprep.subr.bf16.mxu1 %v7140_v29  ;;  %2998 = vmatprep.subr.bf16.mxu0 %v7222_v28 }
 0x7e5   :  { %2958 = vmatpush2.bf16.msra.mxu1 %v7141_v41  ;;  %2999 = vmatpush2.bf16.msra.mxu0 %v7223_v17 }
 0x7e6   :  { %2959 = vmatprep.subr.bf16.mxu1 %v7224_v19  ;;  %3000 = vmatprep.subr.bf16.mxu0 %v7608_v42 }
 0x7e9   :  { %2960 = vmatpush2.bf16.msra.mxu1 %v7609_v2  ;;  %3001 = vmatpush2.bf16.msra.mxu0 %v7610_v13 }
 0x7ea   :  { %2961 = vmatprep.subr.bf16.mxu1 %v7611_v15  ;;  %3002 = vmatprep.subr.bf16.mxu0 %v7612_v32 }
 0x7ed   :  { %2962 = vmatpush2.bf16.msra.mxu1 %v7613_v58  ;;  %3003 = vmatpush2.bf16.msra.mxu0 %v7614_v37  ;;  %v7699_v37 = vld [vmem:[#allocation168_spill] sm:$0xff] }
 0x7ee   :  { %2963 = vmatprep.subr.bf16.mxu1 %v7615_v21  ;;  %3004 = vmatprep.subr.bf16.mxu0 %v7616_v25  ;;  %v7697_v25 = vld [vmem:[#allocation166_spill] sm:$0xff]  ;;  %v7698_v21 = vld [vmem:[#allocation139_spill] sm:$0xff] }
 0x7f1   :  { %2964 = vmatpush2.bf16.msra.mxu1 %v7617_v9  ;;  %3005 = vmatpush2.bf16.msra.mxu0 %v7618_v10 }
 0x7f2   :  { %2965 = vmatprep.subr.bf16.mxu1 %v7619_v34  ;;  %3006 = vmatprep.subr.bf16.mxu0 %v7620_v12  ;;  %v7630_v34 = vld [vmem:[#allocation137_spill] sm:$0xff]  ;;  %v7631_v12 = vld [vmem:[#allocation16_spill] sm:$0xff] }
 0x7f5   :  { %2966 = vmatpush2.bf16.msra.mxu1 %v7621_v23  ;;  %3007 = vmatpush2.bf16.msra.mxu0 %v7622_v59  ;;  %v7632_v23 = vld [vmem:[#allocation31_spill] sm:$0xff] }
 0x7f6   :  { %2967 = vmatprep.subr.bf16.mxu1 %v7623_v55  ;;  %3008 = vmatprep.subr.bf16.mxu0 %v7624_v40  ;;  %v7633_v40 = vld [vmem:[#allocation17_spill] sm:$0xff]  ;;  %v7642_v55 = vld [vmem:[#allocation43_spill] sm:$0xff] }
 0x7f9   :  { %2968 = vmatpush2.bf16.msra.mxu1 %v7625_v35  ;;  %3009 = vmatpush2.bf16.msra.mxu0 %v7626_v7  ;;  %v7634_v35 = vld [vmem:[#allocation35_spill] sm:$0xff]  ;;  %v7635_v7 = vld [vmem:[#allocation18_spill] sm:$0xff] }
 0x7fa   :  { %2969 = vmatprep.subr.bf16.mxu1 %v7627_v39  ;;  %3010 = vmatprep.subr.bf16.mxu0 %v7628_v45  ;;  %v7636_v39 = vld [vmem:[#allocation37_spill] sm:$0xff]  ;;  %v7637_v45 = vld [vmem:[#allocation19_spill] sm:$0xff] }
 0x7fd   :  { %2970 = vmatpush2.bf16.msra.mxu1 %v7629_v5  ;;  %3011 = vmatpush2.bf16.msra.mxu0 %v7630_v34  ;;  %v7638_v5 = vld [vmem:[#allocation39_spill] sm:$0xff]  ;;  %v7639_v34 = vld [vmem:[#allocation20_spill] sm:$0xff] }
 0x7fe   :  { %3078 = vmatprep.subr.bf16.mxu1 %v7631_v12  ;;  %3119 = vmatprep.subr.bf16.mxu0 %v7632_v23  ;;  %v7640_v12 = vld [vmem:[#allocation41_spill] sm:$0xff] }
 0x7ff   :  { %v7641_v23 = vld [vmem:[#allocation21_spill] sm:$0xff] }
 0x800   :  { %2972 = vmatmul.mubr.bf16.vlgmr.msra.gmra.mxu1 %v6174_v62  ;;  %3013 = vmatmul.mubr.bf16.vlgmr.msra.gmra.mxu0 %v6174_v62  ;;  %v7643_v62 = vld [vmem:[#allocation22_spill] sm:$0xff] }
 0x801   :  { %3079 = vmatpush1.bf16.msra.mxu1 %v7633_v40  ;;  %3120 = vmatpush1.bf16.msra.mxu0 %v7634_v35  ;;  %v7644_v40 = vld [vmem:[#allocation45_spill] sm:$0xff]  ;;  %v7645_v35 = vld [vmem:[#allocation23_spill] sm:$0xff] }
 0x802   :  { %3080 = vmatprep.subr.bf16.mxu1 %v7635_v7  ;;  %3121 = vmatprep.subr.bf16.mxu0 %v7636_v39  ;;  %v7646_v7 = vld [vmem:[#allocation47_spill] sm:$0xff]  ;;  %v7647_v39 = vld [vmem:[#allocation24_spill] sm:$0xff] }
 0x805   :  { %3081 = vmatpush1.bf16.msra.mxu1 %v7637_v45  ;;  %3122 = vmatpush1.bf16.msra.mxu0 %v7638_v5  ;;  %v7648_v45 = vld [vmem:[#allocation49_spill] sm:$0xff] }
 0x806   :  { %3082 = vmatprep.subr.bf16.mxu1 %v7639_v34  ;;  %3123 = vmatprep.subr.bf16.mxu0 %v7640_v12  ;;  %v7649_v5 = vld [vmem:[#allocation25_spill] sm:$0xff]  ;;  %v7650_v34 = vld [vmem:[#allocation51_spill] sm:$0xff]  ;;  %v7651_v12 = vld [vmem:[#allocation26_spill] sm:$0xff] }
 0x809   :  { %3083 = vmatpush1.bf16.msra.mxu1 %v7641_v23  ;;  %3124 = vmatpush1.bf16.msra.mxu0 %v7642_v55  ;;  %v7652_v23 = vld [vmem:[#allocation53_spill] sm:$0xff]  ;;  %v7653_v55 = vld [vmem:[#allocation27_spill] sm:$0xff] }
 0x80a   :  { %3084 = vmatprep.subr.bf16.mxu1 %v7643_v62  ;;  %3125 = vmatprep.subr.bf16.mxu0 %v7644_v40  ;;  %v7654_v62 = vld [vmem:[#allocation55_spill] sm:$0xff]  ;;  %v7655_v40 = vld [vmem:[#allocation28_spill] sm:$0xff] }
 0x80d   :  { %3085 = vmatpush1.bf16.msra.mxu1 %v7645_v35  ;;  %3126 = vmatpush1.bf16.msra.mxu0 %v7646_v7  ;;  %v7656_v35 = vld [vmem:[#allocation57_spill] sm:$0xff] }
 0x80e   :  { %3086 = vmatprep.subr.bf16.mxu1 %v7647_v39  ;;  %3127 = vmatprep.subr.bf16.mxu0 %v7648_v45  ;;  %v7657_v7 = vld [vmem:[#allocation29_spill] sm:$0xff]  ;;  %v7658_v39 = vld [vmem:[#allocation59_spill] sm:$0xff]  ;;  %v7659_v45 = vld [vmem:[#allocation30_spill] sm:$0xff] }
 0x811   :  { %3087 = vmatpush1.bf16.msra.mxu1 %v7649_v5  ;;  %3128 = vmatpush1.bf16.msra.mxu0 %v7650_v34  ;;  %v7660_v5 = vld [vmem:[#allocation61_spill] sm:$0xff]  ;;  %v7661_v34 = vld [vmem:[#allocation32_spill] sm:$0xff] }
 0x812   :  { %3088 = vmatprep.subr.bf16.mxu1 %v7651_v12  ;;  %3129 = vmatprep.subr.bf16.mxu0 %v7652_v23  ;;  %v7662_v12 = vld [vmem:[#allocation63_spill] sm:$0xff]  ;;  %v7663_v23 = vld [vmem:[#allocation33_spill] sm:$0xff] }
 0x815   :  { %3089 = vmatpush1.bf16.msra.mxu1 %v7653_v55  ;;  %3130 = vmatpush1.bf16.msra.mxu0 %v7654_v62  ;;  %v7664_v55 = vld [vmem:[#allocation64_spill] sm:$0xff]  ;;  %v7665_v62 = vld [vmem:[#allocation34_spill] sm:$0xff] }
 0x816   :  { %3090 = vmatprep.subr.bf16.mxu1 %v7655_v40  ;;  %3131 = vmatprep.subr.bf16.mxu0 %v7656_v35  ;;  %v7666_v40 = vld [vmem:[#allocation66_spill] sm:$0xff]  ;;  %v7667_v35 = vld [vmem:[#allocation36_spill] sm:$0xff] }
 0x819   :  { %3091 = vmatpush1.bf16.msra.mxu1 %v7657_v7  ;;  %3132 = vmatpush1.bf16.msra.mxu0 %v7658_v39  ;;  %v7668_v7 = vld [vmem:[#allocation68_spill] sm:$0xff]  ;;  %v7669_v39 = vld [vmem:[#allocation38_spill] sm:$0xff] }
 0x81a   :  { %3092 = vmatprep.subr.bf16.mxu1 %v7659_v45  ;;  %3133 = vmatprep.subr.bf16.mxu0 %v7660_v5  ;;  %v7670_v45 = vld [vmem:[#allocation70_spill] sm:$0xff]  ;;  %v7671_v5 = vld [vmem:[#allocation40_spill] sm:$0xff] }
 0x81d   :  { %3093 = vmatpush1.bf16.msra.mxu1 %v7661_v34  ;;  %3134 = vmatpush1.bf16.msra.mxu0 %v7662_v12  ;;  %v7672_v34 = vld [vmem:[#allocation72_spill] sm:$0xff]  ;;  %v7673_v12 = vld [vmem:[#allocation42_spill] sm:$0xff] }
 0x81e   :  { %3094 = vmatprep.subr.bf16.mxu1 %v7663_v23  ;;  %3135 = vmatprep.subr.bf16.mxu0 %v7664_v55  ;;  %v7674_v23 = vld [vmem:[#allocation74_spill] sm:$0xff]  ;;  %v7675_v55 = vld [vmem:[#allocation44_spill] sm:$0xff] }
 0x821   :  { %3095 = vmatpush2.bf16.msra.mxu1 %v7665_v62  ;;  %3136 = vmatpush2.bf16.msra.mxu0 %v7666_v40  ;;  %v7676_v62 = vld [vmem:[#allocation76_spill] sm:$0xff]  ;;  %v7677_v40 = vld [vmem:[#allocation46_spill] sm:$0xff] }
 0x822   :  { %3096 = vmatprep.subr.bf16.mxu1 %v7667_v35  ;;  %3137 = vmatprep.subr.bf16.mxu0 %v7668_v7  ;;  %v7678_v35 = vld [vmem:[#allocation78_spill] sm:$0xff]  ;;  %v7679_v7 = vld [vmem:[#allocation48_spill] sm:$0xff] }
 0x825   :  { %3097 = vmatpush2.bf16.msra.mxu1 %v7669_v39  ;;  %3138 = vmatpush2.bf16.msra.mxu0 %v7670_v45  ;;  %v7680_v39 = vld [vmem:[#allocation80_spill] sm:$0xff]  ;;  %v7681_v45 = vld [vmem:[#allocation50_spill] sm:$0xff] }
 0x826   :  { %3098 = vmatprep.subr.bf16.mxu1 %v7671_v5  ;;  %3139 = vmatprep.subr.bf16.mxu0 %v7672_v34  ;;  %v7682_v5 = vld [vmem:[#allocation82_spill] sm:$0xff]  ;;  %v7683_v34 = vld [vmem:[#allocation52_spill] sm:$0xff] }
 0x829   :  { %3099 = vmatpush2.bf16.msra.mxu1 %v7673_v12  ;;  %3140 = vmatpush2.bf16.msra.mxu0 %v7674_v23  ;;  %v7684_v12 = vld [vmem:[#allocation84_spill] sm:$0xff]  ;;  %v7685_v23 = vld [vmem:[#allocation54_spill] sm:$0xff] }
 0x82a   :  { %3100 = vmatprep.subr.bf16.mxu1 %v7675_v55  ;;  %3141 = vmatprep.subr.bf16.mxu0 %v7676_v62  ;;  %v7686_v55 = vld [vmem:[#allocation86_spill] sm:$0xff]  ;;  %v7687_v62 = vld [vmem:[#allocation56_spill] sm:$0xff] }
 0x82d   :  { %3101 = vmatpush2.bf16.msra.mxu1 %v7677_v40  ;;  %3142 = vmatpush2.bf16.msra.mxu0 %v7678_v35  ;;  %v7688_v40 = vld [vmem:[#allocation88_spill] sm:$0xff]  ;;  %v7689_v35 = vld [vmem:[#allocation58_spill] sm:$0xff] }
 0x82e   :  { %3102 = vmatprep.subr.bf16.mxu1 %v7679_v7  ;;  %3143 = vmatprep.subr.bf16.mxu0 %v7680_v39  ;;  %v7690_v7 = vld [vmem:[#allocation90_spill] sm:$0xff]  ;;  %v7691_v39 = vld [vmem:[#allocation60_spill] sm:$0xff] }
 0x831   :  { %3103 = vmatpush2.bf16.msra.mxu1 %v7681_v45  ;;  %3144 = vmatpush2.bf16.msra.mxu0 %v7682_v5  ;;  %v7692_v45 = vld [vmem:[#allocation92_spill] sm:$0xff]  ;;  %v7693_v5 = vld [vmem:[#allocation62_spill] sm:$0xff] }
 0x832   :  { %3104 = vmatprep.subr.bf16.mxu1 %v7683_v34  ;;  %3145 = vmatprep.subr.bf16.mxu0 %v7684_v12  ;;  %v7694_v34 = vld [vmem:[#allocation94_spill] sm:$0xff]  ;;  %v7695_v12 = vld [vmem:[#allocation65_spill] sm:$0xff] }
 0x835   :  { %3105 = vmatpush2.bf16.msra.mxu1 %v7685_v23  ;;  %3146 = vmatpush2.bf16.msra.mxu0 %v7686_v55  ;;  %v7696_v23 = vld [vmem:[#allocation97_spill] sm:$0xff] }
 0x836   :  { %3106 = vmatprep.subr.bf16.mxu1 %v7687_v62  ;;  %3147 = vmatprep.subr.bf16.mxu0 %v7688_v40 }
 0x839   :  { %3107 = vmatpush2.bf16.msra.mxu1 %v7689_v35  ;;  %3148 = vmatpush2.bf16.msra.mxu0 %v7690_v7 }
 0x83a   :  { %3108 = vmatprep.subr.bf16.mxu1 %v7691_v39  ;;  %3149 = vmatprep.subr.bf16.mxu0 %v7692_v45 }
 0x83d   :  { %3109 = vmatpush2.bf16.msra.mxu1 %v7693_v5  ;;  %3150 = vmatpush2.bf16.msra.mxu0 %v7694_v34  ;;  %v7700_v34 = vld [vmem:[#allocation140_spill] sm:$0xff] }
 0x83e   :  { %3160 = vmatprep.subr.bf16.mxu1 %v7695_v12  ;;  %3201 = vmatprep.subr.bf16.mxu0 %v7696_v23 }
 0x880   :  { %v2891_v55 = vpop.f32.mrf.mxu1  ;;  %v2932_v62 = vpop.f32.mrf.mxu0 }
 0x881   :  { %v3023_v39 = vadd.f32 %v2932_v62, %v7697_v25  ;;  %v3021_v45 = vadd.f32 %v2891_v55, %v7698_v21  ;;  %v7702_v21 = vld [vmem:[#allocation194_spill] sm:$0xff] }
 0x882   :  { %v2893_v59 = vpop.f32.mrf.mxu1  ;;  %v2934_v40 = vpop.f32.mrf.mxu0 }
 0x883   :  { %v3024_v5 = vadd.f32 %v2934_v40, %v7699_v37  ;;  %v3031_v58 = vmul.f32 0.5, %v3023_v39  ;;  %v3022_v32 = vadd.f32 %v2893_v59, %v7700_v34  ;;  %v3029_v12 = vmul.f32 0.5, %v3021_v45 }
 0x884   :  { %v2895_v10 = vpop.f32.mrf.mxu1  ;;  %v2936_v35 = vpop.f32.mrf.mxu0 }
 0x885   :  { %v3032_v15 = vmul.f32 0.5, %v3024_v5  ;;  %4366 = vtanh.f32 %v3031_v58  ;;  %v3030_v23 = vmul.f32 0.5, %v3022_v32  ;;  %v7703_v58 = vld [vmem:[#allocation179_spill] sm:$0xff] }
 0x886   :  { %v2896_v9 = vpop.f32.mrf.mxu1  ;;  %v2937_v7 = vpop.f32.mrf.mxu0  ;;  %4368 = vtanh.f32 %v3029_v12 }
 0x887   :  { %4370 = vtanh.f32 %v3032_v15  ;;  %v7701_v9 = vld [vmem:[#allocation193_spill] sm:$0xff] }
 0x888   :  { %4372 = vtanh.f32 %v3030_v23  ;;  %v7704_v15 = vld [vmem:[#allocation181_spill] sm:$0xff] }
 0x892   :  { %v4367_v39 = vpop.eup %4366 }
 0x893   :  { %v4369_v12 = vpop.eup %4368  ;;  %v3043_v5 = vmul.f32 0.5, %v4367_v39 }
 0x894   :  { %v4371_v45 = vpop.eup %4370 }
 0x895   :  { %v4373_v62 = vpop.eup %4372  ;;  %v3044_v2 = vmul.f32 0.5, %v4371_v45  ;;  %v3049_v42 = vadd.f32 0.5, %v3043_v5 }
 0x8c0   :  { %v2973_v10 = vpop.f32.mrf.mxu1  ;;  %v3014_v35 = vpop.f32.mrf.mxu0 }
 0x8c1   :  { %v3027_v7 = vadd.f32 %v3014_v35, %v7701_v9  ;;  %v3025_v32 = vadd.f32 %v2973_v10, %v7703_v58  ;;  %v3041_v35 = vmul.f32 0.5, %v4369_v12 }
 0x8c2   :  { %v2975_v13 = vpop.f32.mrf.mxu1  ;;  %v3016_v25 = vpop.f32.mrf.mxu0 }
 0x8c3   :  { %4374 = vtanh.f32 %v3027_v7  ;;  %v3028_v55 = vadd.f32 %v3016_v25, %v7702_v21  ;;  %v3026_v23 = vadd.f32 %v2975_v13, %v7704_v15  ;;  %v3033_v9 = vmul.f32 0.5, %v3025_v32 }
 0x8c4   :  { %v2977_v37 = vpop.f32.mrf.mxu1  ;;  %v3018_v40 = vpop.f32.mrf.mxu0  ;;  %v3042_v25 = vmul.f32 0.5, %v4373_v62  ;;  %v3047_v21 = vadd.f32 0.5, %v3041_v35 }
 0x8c5   :  { %4376 = vtanh.f32 %v3028_v55  ;;  %v3034_v7 = vmul.f32 0.5, %v3026_v23  ;;  %v3050_v55 = vadd.f32 0.5, %v3044_v2  ;;  %v3055_v40 = vmul.f32 %v3049_v42, %v6167_v49 }
 0x8c6   :  { %v2978_v34 = vpop.f32.mrf.mxu1  ;;  %v3019_v59 = vpop.f32.mrf.mxu0  ;;  %4378 = vtanh.f32 %v3033_v9 }
 0x8c7   :  { %4380 = vtanh.f32 %v3034_v7  ;;  %v3048_v34 = vadd.f32 0.5, %v3042_v25  ;;  %v3056_v39 = vmul.f32 %v3050_v55, %v6171_v30  ;;  %v7705_v30 = vld [vmem:[#allocation125_spill] sm:$0xff]  ;;  %v7706_v25 = vld [vmem:[#allocation106_spill] sm:$0xff]  ;;  %v7709_v55 = vld [vmem:[#allocation127_spill] sm:$0xff] }
 0x8d0   :  { %v4375_v37 = vpop.eup %4374 }
 0x8d1   :  { %v3057_v10 = vmul.f32 %v4375_v37, %v3047_v21  ;;  %v7707_v21 = vld [vmem:[#allocation126_spill] sm:$0xff]  ;;  %v7708_v37 = vld [vmem:[#allocation108_spill] sm:$0xff] }
 0x8d2   :  { %v4377_v59 = vpop.eup %4376 }
 0x8d3   :  { %v6317_v13 = vadd.f32 %v3057_v10, %v3055_v40  ;;  %v3058_v58 = vmul.f32 %v4377_v59, %v3048_v34  ;;  %v4379_v12 = vpop.eup %4378  ;;  %v7710_v40 = vld [vmem:[#allocation110_spill] sm:$0xff]  ;;  %v7711_v10 = vld [vmem:[#allocation128_spill] sm:$0xff]  ;;  %v7713_v59 = vld [vmem:[#allocation129_spill] sm:$0xff] }
 0x8d4   :  { %v4381_v15 = vpop.eup %4380  ;;  %v3045_v2 = vmul.f32 0.5, %v4379_v12  ;;  %v7712_v34 = vld [vmem:[#allocation112_spill] sm:$0xff]  ;;  %v7716_v12 = vld [vmem:[#allocation115_spill] sm:$0xff] }
 0x8d5   :  { %4382 = vtanh.f32 %v6317_v13  ;;  %v6321_v32 = vadd.f32 %v3058_v58, %v3056_v39  ;;  %v3046_v23 = vmul.f32 0.5, %v4381_v15  ;;  %v7714_v39 = vld [vmem:[#allocation114_spill] sm:$0xff]  ;;  %v7717_v15 = vld [vmem:[#allocation131_spill] sm:$0xff] }
 0x8d6   :  { %v3051_v49 = vadd.f32 0.5, %v3045_v2  ;;  %v7715_v58 = vld [vmem:[#allocation130_spill] sm:$0xff]  ;;  %v7718_v2 = vld [vmem:[#allocation116_spill] sm:$0xff] }
 0x8d7   :  { %4384 = vtanh.f32 %v6321_v32  ;;  %v3052_v42 = vadd.f32 0.5, %v3046_v23  ;;  %v7719_v23 = vld [vmem:[#allocation133_spill] sm:$0xff] }
 0x8e2   :  { %v4383_v45 = vpop.eup %4382 }
 0x8e3   :  { %v3063_v62 = vmul.f32 %v4383_v45, %v3051_v49  ;;  %v7720_v45 = vld [vmem:[#allocation117_spill] sm:$0xff]  ;;  %v7721_v49 = vld [vmem:[#allocation134_spill] sm:$0xff] }
 0x8e4   :  { %v4385_v5 = vpop.eup %4384 }
 0x8e5   :  { %v3064_v35 = vmul.f32 %v4385_v5, %v3052_v42  ;;  %v6324_v7 = vpack.c.bf16 %v3063_v62, %v3063_v62  ;;  %v7722_v42 = vld [vmem:[#allocation118_spill] sm:$0xff]  ;;  %v7723_v5 = vld [vmem:[#allocation135_spill] sm:$0xff] }
 0x8e6   :  { %v7724_v62 = vld [vmem:[#allocation119_spill] sm:$0xff] }
 0x8e7   :  { %v3077_v9 = vpack.c.bf16 %v3064_v35, %v3064_v35  ;;  %v7725_v35 = vld [vmem:[#allocation136_spill] sm:$0xff] }
 0x8e9   :  { %3110 = vmatprep.mubr.bf16.mxu1 %v3077_v9  ;;  %3151 = vmatprep.mubr.bf16.mxu0 %v3077_v9 }
 0x8ea   :  { %3111 = vmatmul.mubr.bf16.vlgmr.msra.gmra.mxu1 %v6324_v7  ;;  %3152 = vmatmul.mubr.bf16.vlgmr.msra.gmra.mxu0 %v6324_v7 }
 0x8eb   :  { %3161 = vmatpush1.bf16.msra.mxu1 %v7115_v31  ;;  %3202 = vmatpush1.bf16.msra.mxu0 %v7116_v6 }
 0x8ec   :  { %3192 = vmatprep.mubr.bf16.mxu1 %v3077_v9  ;;  %3233 = vmatprep.mubr.bf16.mxu0 %v3077_v9  ;;  %v7726_v9 = vld [vmem:[#allocation120_spill] sm:$0xff] }
 0x8ed   :  { %3162 = vmatprep.subr.bf16.mxu1 %v7117_v11  ;;  %3203 = vmatprep.subr.bf16.mxu0 %v7118_v48 }
 0x8ef   :  { %3163 = vmatpush1.bf16.msra.mxu1 %v7119_v18  ;;  %3204 = vmatpush1.bf16.msra.mxu0 %v7120_v4 }
 0x8f0   :  { %3164 = vmatprep.subr.bf16.mxu1 %v7121_v56  ;;  %3205 = vmatprep.subr.bf16.mxu0 %v7122_v3 }
 0x8f3   :  { %3165 = vmatpush1.bf16.msra.mxu1 %v7123_v46  ;;  %3206 = vmatpush1.bf16.msra.mxu0 %v7124_v22 }
 0x8f4   :  { %3166 = vmatprep.subr.bf16.mxu1 %v7125_v53  ;;  %3207 = vmatprep.subr.bf16.mxu0 %v7126_v57 }
 0x8f7   :  { %3167 = vmatpush1.bf16.msra.mxu1 %v7127_v8  ;;  %3208 = vmatpush1.bf16.msra.mxu0 %v7128_v24 }
 0x8f8   :  { %3168 = vmatprep.subr.bf16.mxu1 %v7129_v16  ;;  %3209 = vmatprep.subr.bf16.mxu0 %v7130_v60 }
 0x8fb   :  { %3169 = vmatpush1.bf16.msra.mxu1 %v7131_v63  ;;  %3210 = vmatpush1.bf16.msra.mxu0 %v5012_v61 }
 0x8fc   :  { %3170 = vmatprep.subr.bf16.mxu1 %v7132_v36  ;;  %3211 = vmatprep.subr.bf16.mxu0 %v5018_v1 }
 0x8ff   :  { %3171 = vmatpush1.bf16.msra.mxu1 %v7133_v38  ;;  %3212 = vmatpush1.bf16.msra.mxu0 %v5024_v0 }
 0x900   :  { %3172 = vmatprep.subr.bf16.mxu1 %v7134_v44  ;;  %3213 = vmatprep.subr.bf16.mxu0 %v5030_v26 }
 0x903   :  { %3173 = vmatpush1.bf16.msra.mxu1 %v7135_v43  ;;  %3214 = vmatpush1.bf16.msra.mxu0 %v5036_v47 }
 0x904   :  { %3174 = vmatprep.subr.bf16.mxu1 %v7136_v50  ;;  %3215 = vmatprep.subr.bf16.mxu0 %v5042_v51 }
 0x907   :  { %3175 = vmatpush1.bf16.msra.mxu1 %v7137_v27  ;;  %3216 = vmatpush1.bf16.msra.mxu0 %v5048_v14 }
 0x908   :  { %3176 = vmatprep.subr.bf16.mxu1 %v7138_v54  ;;  %3217 = vmatprep.subr.bf16.mxu0 %v7220_v33 }
 0x90b   :  { %3177 = vmatpush2.bf16.msra.mxu1 %v7139_v20  ;;  %3218 = vmatpush2.bf16.msra.mxu0 %v7221_v52 }
 0x90c   :  { %3178 = vmatprep.subr.bf16.mxu1 %v7140_v29  ;;  %3219 = vmatprep.subr.bf16.mxu0 %v7222_v28 }
 0x90f   :  { %3179 = vmatpush2.bf16.msra.mxu1 %v7141_v41  ;;  %3220 = vmatpush2.bf16.msra.mxu0 %v7223_v17 }
 0x910   :  { %3180 = vmatprep.subr.bf16.mxu1 %v7224_v19  ;;  %3221 = vmatprep.subr.bf16.mxu0 %v7705_v30 }
 0x913   :  { %3181 = vmatpush2.bf16.msra.mxu1 %v7706_v25  ;;  %3222 = vmatpush2.bf16.msra.mxu0 %v7707_v21 }
 0x914   :  { %3182 = vmatprep.subr.bf16.mxu1 %v7708_v37  ;;  %3223 = vmatprep.subr.bf16.mxu0 %v7709_v55 }
 0x917   :  { %3183 = vmatpush2.bf16.msra.mxu1 %v7710_v40  ;;  %3224 = vmatpush2.bf16.msra.mxu0 %v7711_v10  ;;  %v7796_v10 = vld [vmem:[#allocation138_spill] sm:$0xff] }
 0x918   :  { %3184 = vmatprep.subr.bf16.mxu1 %v7712_v34  ;;  %3225 = vmatprep.subr.bf16.mxu0 %v7713_v59  ;;  %v7794_v59 = vld [vmem:[#allocation170_spill] sm:$0xff] }
 0x919   :  { %v7795_v34 = vld [vmem:[#allocation142_spill] sm:$0xff] }
 0x91b   :  { %3185 = vmatpush2.bf16.msra.mxu1 %v7714_v39  ;;  %3226 = vmatpush2.bf16.msra.mxu0 %v7715_v58 }
 0x91c   :  { %3186 = vmatprep.subr.bf16.mxu1 %v7716_v12  ;;  %3227 = vmatprep.subr.bf16.mxu0 %v7717_v15  ;;  %v7727_v12 = vld [vmem:[#allocation137_spill] sm:$0xff]  ;;  %v7728_v15 = vld [vmem:[#allocation16_spill] sm:$0xff] }
 0x91f   :  { %3187 = vmatpush2.bf16.msra.mxu1 %v7718_v2  ;;  %3228 = vmatpush2.bf16.msra.mxu0 %v7719_v23  ;;  %v7729_v2 = vld [vmem:[#allocation31_spill] sm:$0xff] }
 0x920   :  { %3188 = vmatprep.subr.bf16.mxu1 %v7720_v45  ;;  %3229 = vmatprep.subr.bf16.mxu0 %v7721_v49  ;;  %v7730_v49 = vld [vmem:[#allocation17_spill] sm:$0xff]  ;;  %v7739_v45 = vld [vmem:[#allocation43_spill] sm:$0xff] }
 0x923   :  { %3189 = vmatpush2.bf16.msra.mxu1 %v7722_v42  ;;  %3230 = vmatpush2.bf16.msra.mxu0 %v7723_v5  ;;  %v7731_v42 = vld [vmem:[#allocation35_spill] sm:$0xff]  ;;  %v7732_v5 = vld [vmem:[#allocation18_spill] sm:$0xff] }
 0x924   :  { %3190 = vmatprep.subr.bf16.mxu1 %v7724_v62  ;;  %3231 = vmatprep.subr.bf16.mxu0 %v7725_v35  ;;  %v7733_v62 = vld [vmem:[#allocation37_spill] sm:$0xff]  ;;  %v7734_v35 = vld [vmem:[#allocation19_spill] sm:$0xff] }
 0x927   :  { %3191 = vmatpush2.bf16.msra.mxu1 %v7726_v9  ;;  %3232 = vmatpush2.bf16.msra.mxu0 %v7727_v12  ;;  %v7735_v9 = vld [vmem:[#allocation39_spill] sm:$0xff]  ;;  %v7736_v12 = vld [vmem:[#allocation20_spill] sm:$0xff] }
 0x928   :  { %3289 = vmatprep.subr.bf16.mxu1 %v7728_v15  ;;  %3329 = vmatprep.subr.bf16.mxu0 %v7729_v2  ;;  %v7737_v15 = vld [vmem:[#allocation41_spill] sm:$0xff] }
 0x929   :  { %v7738_v2 = vld [vmem:[#allocation21_spill] sm:$0xff] }
 0x92a   :  { %3193 = vmatmul.mubr.bf16.vlgmr.msra.gmra.mxu1 %v6324_v7  ;;  %3234 = vmatmul.mubr.bf16.vlgmr.msra.gmra.mxu0 %v6324_v7  ;;  %v7740_v7 = vld [vmem:[#allocation22_spill] sm:$0xff] }
 0x92b   :  { %3290 = vmatpush1.bf16.msra.mxu1 %v7730_v49  ;;  %3330 = vmatpush1.bf16.msra.mxu0 %v7731_v42  ;;  %v7741_v49 = vld [vmem:[#allocation45_spill] sm:$0xff]  ;;  %v7742_v42 = vld [vmem:[#allocation23_spill] sm:$0xff] }
 0x92c   :  { %3291 = vmatprep.subr.bf16.mxu1 %v7732_v5  ;;  %3331 = vmatprep.subr.bf16.mxu0 %v7733_v62  ;;  %v7743_v5 = vld [vmem:[#allocation47_spill] sm:$0xff]  ;;  %v7744_v62 = vld [vmem:[#allocation24_spill] sm:$0xff] }
 0x92f   :  { %3292 = vmatpush1.bf16.msra.mxu1 %v7734_v35  ;;  %3332 = vmatpush1.bf16.msra.mxu0 %v7735_v9  ;;  %v7745_v35 = vld [vmem:[#allocation49_spill] sm:$0xff] }
 0x930   :  { %3293 = vmatprep.subr.bf16.mxu1 %v7736_v12  ;;  %3333 = vmatprep.subr.bf16.mxu0 %v7737_v15  ;;  %v7746_v9 = vld [vmem:[#allocation25_spill] sm:$0xff]  ;;  %v7747_v12 = vld [vmem:[#allocation51_spill] sm:$0xff]  ;;  %v7748_v15 = vld [vmem:[#allocation26_spill] sm:$0xff] }
 0x933   :  { %3294 = vmatpush1.bf16.msra.mxu1 %v7738_v2  ;;  %3334 = vmatpush1.bf16.msra.mxu0 %v7739_v45  ;;  %v7749_v2 = vld [vmem:[#allocation53_spill] sm:$0xff]  ;;  %v7750_v45 = vld [vmem:[#allocation27_spill] sm:$0xff] }
 0x934   :  { %3295 = vmatprep.subr.bf16.mxu1 %v7740_v7  ;;  %3335 = vmatprep.subr.bf16.mxu0 %v7741_v49  ;;  %v7751_v7 = vld [vmem:[#allocation55_spill] sm:$0xff]  ;;  %v7752_v49 = vld [vmem:[#allocation28_spill] sm:$0xff] }
 0x937   :  { %3296 = vmatpush1.bf16.msra.mxu1 %v7742_v42  ;;  %3336 = vmatpush1.bf16.msra.mxu0 %v7743_v5  ;;  %v7753_v42 = vld [vmem:[#allocation57_spill] sm:$0xff] }
 0x938   :  { %3297 = vmatprep.subr.bf16.mxu1 %v7744_v62  ;;  %3337 = vmatprep.subr.bf16.mxu0 %v7745_v35  ;;  %v7754_v5 = vld [vmem:[#allocation29_spill] sm:$0xff]  ;;  %v7755_v62 = vld [vmem:[#allocation59_spill] sm:$0xff]  ;;  %v7756_v35 = vld [vmem:[#allocation30_spill] sm:$0xff] }
 0x93b   :  { %3298 = vmatpush1.bf16.msra.mxu1 %v7746_v9  ;;  %3338 = vmatpush1.bf16.msra.mxu0 %v7747_v12  ;;  %v7757_v9 = vld [vmem:[#allocation61_spill] sm:$0xff]  ;;  %v7758_v12 = vld [vmem:[#allocation32_spill] sm:$0xff] }
 0x93c   :  { %3299 = vmatprep.subr.bf16.mxu1 %v7748_v15  ;;  %3339 = vmatprep.subr.bf16.mxu0 %v7749_v2  ;;  %v7759_v15 = vld [vmem:[#allocation63_spill] sm:$0xff]  ;;  %v7760_v2 = vld [vmem:[#allocation33_spill] sm:$0xff] }
 0x93f   :  { %3300 = vmatpush1.bf16.msra.mxu1 %v7750_v45  ;;  %3340 = vmatpush1.bf16.msra.mxu0 %v7751_v7  ;;  %v7761_v45 = vld [vmem:[#allocation64_spill] sm:$0xff]  ;;  %v7762_v7 = vld [vmem:[#allocation34_spill] sm:$0xff] }
 0x940   :  { %3301 = vmatprep.subr.bf16.mxu1 %v7752_v49  ;;  %3341 = vmatprep.subr.bf16.mxu0 %v7753_v42  ;;  %v7763_v49 = vld [vmem:[#allocation66_spill] sm:$0xff]  ;;  %v7764_v42 = vld [vmem:[#allocation36_spill] sm:$0xff] }
 0x943   :  { %3302 = vmatpush1.bf16.msra.mxu1 %v7754_v5  ;;  %3342 = vmatpush1.bf16.msra.mxu0 %v7755_v62  ;;  %v7765_v5 = vld [vmem:[#allocation68_spill] sm:$0xff]  ;;  %v7766_v62 = vld [vmem:[#allocation38_spill] sm:$0xff] }
 0x944   :  { %3303 = vmatprep.subr.bf16.mxu1 %v7756_v35  ;;  %3343 = vmatprep.subr.bf16.mxu0 %v7757_v9  ;;  %v7767_v35 = vld [vmem:[#allocation70_spill] sm:$0xff]  ;;  %v7768_v9 = vld [vmem:[#allocation40_spill] sm:$0xff] }
 0x947   :  { %3304 = vmatpush1.bf16.msra.mxu1 %v7758_v12  ;;  %3344 = vmatpush1.bf16.msra.mxu0 %v7759_v15  ;;  %v7769_v12 = vld [vmem:[#allocation72_spill] sm:$0xff]  ;;  %v7770_v15 = vld [vmem:[#allocation42_spill] sm:$0xff] }
 0x948   :  { %3305 = vmatprep.subr.bf16.mxu1 %v7760_v2  ;;  %3345 = vmatprep.subr.bf16.mxu0 %v7761_v45  ;;  %v7771_v2 = vld [vmem:[#allocation74_spill] sm:$0xff]  ;;  %v7772_v45 = vld [vmem:[#allocation44_spill] sm:$0xff] }
 0x94b   :  { %3306 = vmatpush2.bf16.msra.mxu1 %v7762_v7  ;;  %3346 = vmatpush2.bf16.msra.mxu0 %v7763_v49  ;;  %v7773_v7 = vld [vmem:[#allocation76_spill] sm:$0xff]  ;;  %v7774_v49 = vld [vmem:[#allocation46_spill] sm:$0xff] }
 0x94c   :  { %3307 = vmatprep.subr.bf16.mxu1 %v7764_v42  ;;  %3347 = vmatprep.subr.bf16.mxu0 %v7765_v5  ;;  %v7775_v42 = vld [vmem:[#allocation78_spill] sm:$0xff]  ;;  %v7776_v5 = vld [vmem:[#allocation48_spill] sm:$0xff] }
 0x94f   :  { %3308 = vmatpush2.bf16.msra.mxu1 %v7766_v62  ;;  %3348 = vmatpush2.bf16.msra.mxu0 %v7767_v35  ;;  %v7777_v62 = vld [vmem:[#allocation80_spill] sm:$0xff]  ;;  %v7778_v35 = vld [vmem:[#allocation50_spill] sm:$0xff] }
 0x950   :  { %3309 = vmatprep.subr.bf16.mxu1 %v7768_v9  ;;  %3349 = vmatprep.subr.bf16.mxu0 %v7769_v12  ;;  %v7779_v9 = vld [vmem:[#allocation82_spill] sm:$0xff]  ;;  %v7780_v12 = vld [vmem:[#allocation52_spill] sm:$0xff] }
 0x953   :  { %3310 = vmatpush2.bf16.msra.mxu1 %v7770_v15  ;;  %3350 = vmatpush2.bf16.msra.mxu0 %v7771_v2  ;;  %v7781_v15 = vld [vmem:[#allocation84_spill] sm:$0xff]  ;;  %v7782_v2 = vld [vmem:[#allocation54_spill] sm:$0xff] }
 0x954   :  { %3311 = vmatprep.subr.bf16.mxu1 %v7772_v45  ;;  %3351 = vmatprep.subr.bf16.mxu0 %v7773_v7  ;;  %v7783_v45 = vld [vmem:[#allocation86_spill] sm:$0xff]  ;;  %v7784_v7 = vld [vmem:[#allocation56_spill] sm:$0xff] }
 0x957   :  { %3312 = vmatpush2.bf16.msra.mxu1 %v7774_v49  ;;  %3352 = vmatpush2.bf16.msra.mxu0 %v7775_v42  ;;  %v7785_v49 = vld [vmem:[#allocation88_spill] sm:$0xff]  ;;  %v7786_v42 = vld [vmem:[#allocation58_spill] sm:$0xff] }
 0x958   :  { %3313 = vmatprep.subr.bf16.mxu1 %v7776_v5  ;;  %3353 = vmatprep.subr.bf16.mxu0 %v7777_v62  ;;  %v7787_v5 = vld [vmem:[#allocation90_spill] sm:$0xff]  ;;  %v7788_v62 = vld [vmem:[#allocation60_spill] sm:$0xff] }
 0x95b   :  { %3314 = vmatpush2.bf16.msra.mxu1 %v7778_v35  ;;  %3354 = vmatpush2.bf16.msra.mxu0 %v7779_v9  ;;  %v7789_v35 = vld [vmem:[#allocation92_spill] sm:$0xff]  ;;  %v7790_v9 = vld [vmem:[#allocation62_spill] sm:$0xff] }
 0x95c   :  { %3315 = vmatprep.subr.bf16.mxu1 %v7780_v12  ;;  %3355 = vmatprep.subr.bf16.mxu0 %v7781_v15  ;;  %v7791_v12 = vld [vmem:[#allocation94_spill] sm:$0xff]  ;;  %v7792_v15 = vld [vmem:[#allocation65_spill] sm:$0xff] }
 0x95f   :  { %3316 = vmatpush2.bf16.msra.mxu1 %v7782_v2  ;;  %3356 = vmatpush2.bf16.msra.mxu0 %v7783_v45  ;;  %v7793_v2 = vld [vmem:[#allocation97_spill] sm:$0xff] }
 0x960   :  { %3317 = vmatprep.subr.bf16.mxu1 %v7784_v7  ;;  %3357 = vmatprep.subr.bf16.mxu0 %v7785_v49 }
 0x963   :  { %3318 = vmatpush2.bf16.msra.mxu1 %v7786_v42  ;;  %3358 = vmatpush2.bf16.msra.mxu0 %v7787_v5 }
 0x964   :  { %3319 = vmatprep.subr.bf16.mxu1 %v7788_v62  ;;  %3359 = vmatprep.subr.bf16.mxu0 %v7789_v35 }
 0x967   :  { %3320 = vmatpush2.bf16.msra.mxu1 %v7790_v9  ;;  %3360 = vmatpush2.bf16.msra.mxu0 %v7791_v12  ;;  %v7797_v9 = vld [vmem:[#allocation144_spill] sm:$0xff] }
 0x968   :  { %3369 = vmatprep.subr.bf16.mxu1 %v7792_v15  ;;  %3409 = vmatprep.subr.bf16.mxu0 %v7793_v2  ;;  %v306_v40 = vadd.f32 %v7797_v9, %v7796_v10  ;;  %v7798_v12 = vld [vmem:[#allocation172_spill] sm:$0xff] }
 0x9aa   :  { %v3112_v45 = vpop.f32.mrf.mxu1  ;;  %v3153_v7 = vpop.f32.mrf.mxu0 }
 0x9ab   :  { %v3244_v62 = vadd.f32 %v3153_v7, %v7794_v59  ;;  %v3242_v35 = vadd.f32 %v3112_v45, %v7795_v34  ;;  %v7800_v45 = vld [vmem:[#allocation196_spill] sm:$0xff] }
 0x9ac   :  { %v3114_v23 = vpop.f32.mrf.mxu1  ;;  %v3155_v49 = vpop.f32.mrf.mxu0 }
 0x9ad   :  { %v3245_v55 = vadd.f32 %v3155_v49, %v7798_v12  ;;  %v3252_v15 = vmul.f32 0.5, %v3244_v62  ;;  %v3243_v37 = vadd.f32 %v3114_v23, %v306_v40  ;;  %v3250_v2 = vmul.f32 0.5, %v3242_v35  ;;  %v7801_v62 = vld [vmem:[#allocation183_spill] sm:$0xff] }
 0x9ae   :  { %v3116_v58 = vpop.f32.mrf.mxu1  ;;  %v3157_v42 = vpop.f32.mrf.mxu0 }
 0x9af   :  { %v3253_v21 = vmul.f32 0.5, %v3245_v55  ;;  %4386 = vtanh.f32 %v3252_v15  ;;  %v3251_v25 = vmul.f32 0.5, %v3243_v37  ;;  %v7799_v42 = vld [vmem:[#allocation195_spill] sm:$0xff] }
 0x9b0   :  { %v3117_v39 = vpop.f32.mrf.mxu1  ;;  %v3158_v5 = vpop.f32.mrf.mxu0  ;;  %4388 = vtanh.f32 %v3250_v2 }
 0x9b1   :  { %4390 = vtanh.f32 %v3253_v21  ;;  %v7802_v21 = vld [vmem:[#allocation185_spill] sm:$0xff] }
 0x9b2   :  { %4392 = vtanh.f32 %v3251_v25 }
 0x9bc   :  { %v4387_v23 = vpop.eup %4386 }
 0x9bd   :  { %v4389_v35 = vpop.eup %4388  ;;  %v3264_v12 = vmul.f32 0.5, %v4387_v23 }
 0x9be   :  { %v4391_v9 = vpop.eup %4390 }
 0x9bf   :  { %v4393_v2 = vpop.eup %4392  ;;  %v3270_v30 = vadd.f32 0.5, %v3264_v12 }
 0x9ea   :  { %v3194_v39 = vpop.f32.mrf.mxu1  ;;  %v3235_v58 = vpop.f32.mrf.mxu0 }
 0x9eb   :  { %v3248_v59 = vadd.f32 %v3235_v58, %v7799_v42  ;;  %v3246_v40 = vadd.f32 %v3194_v39, %v7801_v62  ;;  %v3262_v58 = vmul.f32 0.5, %v4389_v35  ;;  %v3265_v42 = vmul.f32 0.5, %v4391_v9 }
 0x9ec   :  { %v3196_v7 = vpop.f32.mrf.mxu1  ;;  %v3237_v34 = vpop.f32.mrf.mxu0 }
 0x9ed   :  { %4394 = vtanh.f32 %v3248_v59  ;;  %v3249_v10 = vadd.f32 %v3237_v34, %v7800_v45  ;;  %v3247_v25 = vadd.f32 %v3196_v7, %v7802_v21  ;;  %v3254_v15 = vmul.f32 0.5, %v3246_v40 }
 0x9ee   :  { %v3198_v5 = vpop.f32.mrf.mxu1  ;;  %v3239_v49 = vpop.f32.mrf.mxu0  ;;  %v3263_v34 = vmul.f32 0.5, %v4393_v2  ;;  %v3268_v45 = vadd.f32 0.5, %v3262_v58  ;;  %v3271_v39 = vadd.f32 0.5, %v3265_v42 }
 0x9ef   :  { %4396 = vtanh.f32 %v3249_v10  ;;  %v3255_v59 = vmul.f32 0.5, %v3247_v25  ;;  %v3276_v10 = vmul.f32 %v3270_v30, %v6317_v13 }
 0x9f0   :  { %v3199_v55 = vpop.f32.mrf.mxu1  ;;  %v3240_v37 = vpop.f32.mrf.mxu0  ;;  %4398 = vtanh.f32 %v3254_v15  ;;  %v3269_v62 = vadd.f32 0.5, %v3263_v34  ;;  %v3277_v23 = vmul.f32 %v3271_v39, %v6321_v32  ;;  %v4229_v32 = vld [vmem:[%s6641_s5] sm:$0xff]   ;;  %v4230_v34 = vld [vmem:[#allocation8 + $0x38] sm:$0xff]  }
 0x9f1   :  { %4400 = vtanh.f32 %v3255_v59  ;;  %v4233_v39 = vld [vmem:[#allocation8 + $0x20] sm:$0xff]  }
 0x9fa   :  { %v4395_v5 = vpop.eup %4394 }
 0x9fb   :  { %v3278_v49 = vmul.f32 %v4395_v5, %v3268_v45  ;;  %v4231_v45 = vld [vmem:[#allocation8 + $0x30] sm:$0xff]   ;;  %v4232_v5 = vld [vmem:[#allocation8 + $0x28] sm:$0xff]  }
 0x9fc   :  { %v4397_v55 = vpop.eup %4396 }
 0x9fd   :  { %v3280_v7 = vadd.f32 %v3278_v49, %v3276_v10  ;;  %v3279_v40 = vmul.f32 %v4397_v55, %v3269_v62  ;;  %v4399_v35 = vpop.eup %4398  ;;  %v4234_v10 = vld [vmem:[#allocation8 + $0x18] sm:$0xff]  }
 0x9fe   :  { %v4401_v21 = vpop.eup %4400  ;;  %v3266_v25 = vmul.f32 0.5, %v4399_v35 }
 0x9ff   :  { %4402 = vtanh.f32 %v3280_v7  ;;  %v6469_v37 = vadd.f32 %v3279_v40, %v3277_v23  ;;  %v3267_v9 = vmul.f32 0.5, %v4401_v21 }
 0xa00   :  { %v3272_v12 = vadd.f32 0.5, %v3266_v25  ;;  %v3286_v25 = vld [vmem:[%s6639_s3] sm:$0xff] }
 0xa01   :  { %4404 = vtanh.f32 %v6469_v37  ;;  %v3273_v13 = vadd.f32 0.5, %v3267_v9  ;;  %v7827_v9 = vld [vmem:[#allocation132_spill] sm:$0xff] }
 0xa0c   :  { %v4403_v15 = vpop.eup %4402 }
 0xa0d   :  { %v3284_v2 = vmul.f32 %v4403_v15, %v3272_v12  ;;  %v7828_v12 = vsub.s32 3, %v7827_v9 }
 0xa0e   :  { %v4405_v30 = vpop.eup %4404 }
 0xa0f   :  { %v3285_v58 = vmul.f32 %v4405_v30, %v3273_v13  ;;  %v6472_v59 = vpack.c.bf16 %v3284_v2, %v3284_v2  ;;  %v3457_v15 = vrot.slane %v3286_v25, %v7828_v12  ;;  %v7829_v2 = vsub.s32 1, %v7827_v9 }
 0xa11   :  { %v3288_v42 = vpack.c.bf16 %v3285_v58, %v3285_v58  ;;  %v3453_v13 = vrot.slane %v3286_v25, %v7829_v2 }
 0xa13   :  { %3321 = vmatprep.mubr.bf16.mxu1 %v3288_v42  ;;  %3361 = vmatprep.mubr.bf16.mxu0 %v3288_v42 }
 0xa14   :  { %3322 = vmatmul.mubr.bf16.vlgmr.msra.gmra.mxu1 %v6472_v59  ;;  %3362 = vmatmul.mubr.bf16.vlgmr.msra.gmra.mxu0 %v6472_v59 }
 0xa15   :  { %3370 = vmatpush1.bf16.msra.mxu1 %v7115_v31  ;;  %3410 = vmatpush1.bf16.msra.mxu0 %v7116_v6  ;;  %v7810_v31 = vld [vmem:[#allocation112_spill] sm:$0xff]  ;;  %v7811_v6 = vld [vmem:[#allocation129_spill] sm:$0xff] }
 0xa16   :  { %3401 = vmatprep.mubr.bf16.mxu1 %v3288_v42  ;;  %3441 = vmatprep.mubr.bf16.mxu0 %v3288_v42 }
 0xa17   :  { %3371 = vmatprep.subr.bf16.mxu1 %v7117_v11  ;;  %3411 = vmatprep.subr.bf16.mxu0 %v7118_v48  ;;  %v7812_v11 = vld [vmem:[#allocation114_spill] sm:$0xff] }
 0xa18   :  { %v7813_v48 = vld [vmem:[#allocation130_spill] sm:$0xff] }
 0xa19   :  { %3372 = vmatpush1.bf16.msra.mxu1 %v7119_v18  ;;  %3412 = vmatpush1.bf16.msra.mxu0 %v7120_v4  ;;  %v7814_v18 = vld [vmem:[#allocation115_spill] sm:$0xff] }
 0xa1a   :  { %3373 = vmatprep.subr.bf16.mxu1 %v7121_v56  ;;  %3413 = vmatprep.subr.bf16.mxu0 %v7122_v3  ;;  %v7815_v4 = vld [vmem:[#allocation131_spill] sm:$0xff]  ;;  %v7816_v56 = vld [vmem:[#allocation116_spill] sm:$0xff]  ;;  %v7817_v3 = vld [vmem:[#allocation133_spill] sm:$0xff] }
 0xa1d   :  { %3374 = vmatpush1.bf16.msra.mxu1 %v7123_v46  ;;  %3414 = vmatpush1.bf16.msra.mxu0 %v7124_v22  ;;  %v7818_v46 = vld [vmem:[#allocation117_spill] sm:$0xff]  ;;  %v7819_v22 = vld [vmem:[#allocation134_spill] sm:$0xff] }
 0xa1e   :  { %3375 = vmatprep.subr.bf16.mxu1 %v7125_v53  ;;  %3415 = vmatprep.subr.bf16.mxu0 %v7126_v57  ;;  %v7820_v53 = vld [vmem:[#allocation118_spill] sm:$0xff]  ;;  %v7821_v57 = vld [vmem:[#allocation135_spill] sm:$0xff] }
 0xa21   :  { %3376 = vmatpush1.bf16.msra.mxu1 %v7127_v8  ;;  %3416 = vmatpush1.bf16.msra.mxu0 %v7128_v24  ;;  %v7822_v8 = vld [vmem:[#allocation119_spill] sm:$0xff]  ;;  %v7823_v24 = vld [vmem:[#allocation136_spill] sm:$0xff] }
 0xa22   :  { %3377 = vmatprep.subr.bf16.mxu1 %v7129_v16  ;;  %3417 = vmatprep.subr.bf16.mxu0 %v7130_v60  ;;  %v7824_v16 = vld [vmem:[#allocation120_spill] sm:$0xff]  ;;  %v7825_v60 = vld [vmem:[#allocation137_spill] sm:$0xff] }
 0xa25   :  { %3378 = vmatpush1.bf16.msra.mxu1 %v7131_v63  ;;  %3418 = vmatpush1.bf16.msra.mxu0 %v5012_v61  ;;  %v7803_v61 = vld [vmem:[#allocation125_spill] sm:$0xff]  ;;  %v7826_v63 = vmov 0.0  }
 0xa26   :  { %3379 = vmatprep.subr.bf16.mxu1 %v7132_v36  ;;  %3419 = vmatprep.subr.bf16.mxu0 %v5018_v1  ;;  %v7804_v1 = vld [vmem:[#allocation106_spill] sm:$0xff] }
 0xa27   :  { %v4214_v36 = vld [vmem:[%s6641_s5 + $0x78] sm:$0xff]  }
 0xa29   :  { %3380 = vmatpush1.bf16.msra.mxu1 %v7133_v38  ;;  %3420 = vmatpush1.bf16.msra.mxu0 %v5024_v0  ;;  %v7805_v0 = vld [vmem:[#allocation126_spill] sm:$0xff] }
 0xa2a   :  { %3381 = vmatprep.subr.bf16.mxu1 %v7134_v44  ;;  %3421 = vmatprep.subr.bf16.mxu0 %v5030_v26  ;;  %v7806_v26 = vld [vmem:[#allocation108_spill] sm:$0xff]  ;;  %v4215_v38 = vld [vmem:[%s6641_s5 + $0x38] sm:$0xff]   ;;  %v4216_v44 = vld [vmem:[%s6641_s5 + $0x70] sm:$0xff]  }
 0xa2d   :  { %3382 = vmatpush1.bf16.msra.mxu1 %v7135_v43  ;;  %3422 = vmatpush1.bf16.msra.mxu0 %v5036_v47  ;;  %v7807_v47 = vld [vmem:[#allocation127_spill] sm:$0xff]  ;;  %v4217_v43 = vld [vmem:[%s6641_s5 + $0x30] sm:$0xff]  }
 0xa2e   :  { %3383 = vmatprep.subr.bf16.mxu1 %v7136_v50  ;;  %3423 = vmatprep.subr.bf16.mxu0 %v5042_v51  ;;  %v7808_v51 = vld [vmem:[#allocation110_spill] sm:$0xff]  ;;  %v4218_v50 = vld [vmem:[%s6641_s5 + $0x68] sm:$0xff]  }
 0xa31   :  { %3384 = vmatpush1.bf16.msra.mxu1 %v7137_v27  ;;  %3424 = vmatpush1.bf16.msra.mxu0 %v5048_v14  ;;  %v7809_v14 = vld [vmem:[#allocation128_spill] sm:$0xff] }
 0xa32   :  { %3385 = vmatprep.subr.bf16.mxu1 %v7138_v54  ;;  %3425 = vmatprep.subr.bf16.mxu0 %v7220_v33  ;;  %v4219_v27 = vld [vmem:[%s6641_s5 + $0x28] sm:$0xff]   ;;  %v4220_v54 = vld [vmem:[%s6641_s5 + $0x60] sm:$0xff]   ;;  %v4224_v33 = vld [vmem:[%s6641_s5 + $0x50] sm:$0xff]  }
 0xa35   :  { %3386 = vmatpush2.bf16.msra.mxu1 %v7139_v20  ;;  %3426 = vmatpush2.bf16.msra.mxu0 %v7221_v52  ;;  %v4221_v20 = vld [vmem:[%s6641_s5 + $0x20] sm:$0xff]   ;;  %v4225_v52 = vld [vmem:[%s6641_s5 + $0x10] sm:$0xff]  }
 0xa36   :  { %3387 = vmatprep.subr.bf16.mxu1 %v7140_v29  ;;  %3427 = vmatprep.subr.bf16.mxu0 %v7222_v28  ;;  %v4222_v29 = vld [vmem:[%s6641_s5 + $0x58] sm:$0xff]   ;;  %v4226_v28 = vld [vmem:[%s6641_s5 + $0x48] sm:$0xff]  }
 0xa39   :  { %3388 = vmatpush2.bf16.msra.mxu1 %v7141_v41  ;;  %3428 = vmatpush2.bf16.msra.mxu0 %v7223_v17  ;;  %v4223_v41 = vld [vmem:[%s6641_s5 + $0x18] sm:$0xff]   ;;  %v4227_v17 = vld [vmem:[%s6641_s5 + $0x8] sm:$0xff]  }
 0xa3a   :  { %3389 = vmatprep.subr.bf16.mxu1 %v7224_v19  ;;  %3429 = vmatprep.subr.bf16.mxu0 %v7803_v61  ;;  %v4228_v19 = vld [vmem:[%s6641_s5 + $0x40] sm:$0xff]  }
 0xa3d   :  { %3390 = vmatpush2.bf16.msra.mxu1 %v7804_v1  ;;  %3430 = vmatpush2.bf16.msra.mxu0 %v7805_v0  ;;  %v7830_v1 = vsub.s32 7, %v7827_v9 }
 0xa3e   :  { %3391 = vmatprep.subr.bf16.mxu1 %v7806_v26  ;;  %3431 = vmatprep.subr.bf16.mxu0 %v7807_v47 }
 0xa3f   :  { %v3465_v0 = vrot.slane %v3286_v25, %v7830_v1  ;;  %v7834_v1 = vld [vmem:[#allocation197_spill] sm:$0xff] }
 0xa41   :  { %3392 = vmatpush2.bf16.msra.mxu1 %v7808_v51  ;;  %3432 = vmatpush2.bf16.msra.mxu0 %v7809_v14 }
 0xa42   :  { %3393 = vmatprep.subr.bf16.mxu1 %v7810_v31  ;;  %3433 = vmatprep.subr.bf16.mxu0 %v7811_v6  ;;  %v7831_v31 = vsub.s32 5, %v7827_v9  ;;  %v7833_v9 = vld [vmem:[#allocation192_spill] sm:$0xff] }
 0xa44   :  { %v3461_v6 = vrot.slane %v3286_v25, %v7831_v31  ;;  %v3928_v25 = vld [vmem:[%s6646_s10] ss:$0 sm:$0xff]  ;;  %s4496_s10 = scalar_lea.vmem %s3881_s23, 128 }
 0xa45   :  { %3394 = vmatpush2.bf16.msra.mxu1 %v7812_v11  ;;  %3434 = vmatpush2.bf16.msra.mxu0 %v7813_v48  ;;  %v696_v12 = vadd.f32 %v3928_v25, %v7833_v9  ;;  %p4497_p6 = scmp.ne.s32.totalorder %s3881_s23, %s4496_s10  ;;  %p4502_p8 = scmp.lt.s32.totalorder %s4496_s10, %s4496_s10 }
 0xa46   :  { %3395 = vmatprep.subr.bf16.mxu1 %v7814_v18  ;;  %3435 = vmatprep.subr.bf16.mxu0 %v7815_v4 }
 0xa47   :  { %p4503_p9 = por %p4502_p8, %p4501_p7 }
 0xa49   :  { %3396 = vmatpush2.bf16.msra.mxu1 %v7816_v56  ;;  %3436 = vmatpush2.bf16.msra.mxu0 %v7817_v3  ;;  %p4504_p10 = pnand %p4503_p9, %p4497_p6 }
 0xa4a   :  { %3397 = vmatprep.subr.bf16.mxu1 %v7818_v46  ;;  %3437 = vmatprep.subr.bf16.mxu0 %v7819_v22 }
 0xa4d   :  { %3398 = vmatpush2.bf16.msra.mxu1 %v7820_v53  ;;  %3438 = vmatpush2.bf16.msra.mxu0 %v7821_v57 }
 0xa4e   :  { %3399 = vmatprep.subr.bf16.mxu1 %v7822_v8  ;;  %3439 = vmatprep.subr.bf16.mxu0 %v7823_v24 }
 0xa51   :  { %3400 = vmatpush2.bf16.msra.mxu1 %v7824_v16  ;;  %3440 = vmatpush2.bf16.msra.mxu0 %v7825_v60 }
 0xa52   :  { %4156 = vmatprep.subr.bf16.mxu0 %v7826_v63  ;;  %4098 = vmatprep.subr.bf16.mxu1 %v4214_v36 }
 0xa54   :  { %3402 = vmatmul.mubr.bf16.vlgmr.msra.gmra.mxu1 %v6472_v59  ;;  %3442 = vmatmul.mubr.bf16.vlgmr.msra.gmra.mxu0 %v6472_v59 }
 0xa55   :  { %4172 = vmatprep.mubr.msk.bf16.mxu0 %vm4534_vm2, %v7826_v63  ;;  %4099 = vmatpush3.bf16.msra.mxu1 %v4215_v38 }
 0xa56   :  { %4100 = vmatprep.subr.bf16.mxu1 %v4216_v44  ;;  %4157 = vmatpush3.bf16.msra.mxu0 %v4230_v34  ;;  %v3926_v34 = vld [vmem:[%s6643_s7] ss:$0 sm:$0xff] }
 0xa57   :  { %4158 = vmatprep.subr.bf16.mxu0 %v7826_v63 }
 0xa59   :  { %4101 = vmatpush3.bf16.msra.mxu1 %v4217_v43 }
 0xa5a   :  { %4102 = vmatprep.subr.bf16.mxu1 %v4218_v50  ;;  %4159 = vmatpush3.bf16.msra.mxu0 %v4231_v45 }
 0xa5b   :  { %4160 = vmatprep.subr.bf16.mxu0 %v7826_v63 }
 0xa5d   :  { %4103 = vmatpush3.bf16.msra.mxu1 %v4219_v27 }
 0xa5e   :  { %4104 = vmatprep.subr.bf16.mxu1 %v4220_v54  ;;  %4161 = vmatpush3.bf16.msra.mxu0 %v4232_v5 }
 0xa5f   :  { %4162 = vmatprep.subr.bf16.mxu0 %v7826_v63 }
 0xa61   :  { %4105 = vmatpush3.bf16.msra.mxu1 %v4221_v20 }
 0xa62   :  { %4106 = vmatprep.subr.bf16.mxu1 %v4222_v29  ;;  %4163 = vmatpush3.bf16.msra.mxu0 %v4233_v39  ;;  %v7832_v39 = vld [vmem:[#allocation187_spill] sm:$0xff] }
 0xa63   :  { %4164 = vmatprep.subr.bf16.mxu0 %v7826_v63 }
 0xa65   :  { %4107 = vmatpush3.bf16.msra.mxu1 %v4223_v41  ;;  %v4235_v41 = vld [vmem:[#allocation8 + $0x10] sm:$0xff]  }
 0xa66   :  { %4108 = vmatprep.subr.bf16.mxu1 %v4224_v33  ;;  %4165 = vmatpush3.bf16.msra.mxu0 %v4234_v10  ;;  %v4237_v33 = vld [vmem:[#allocation8] sm:$0xff]   ;;  %v645_v10 = vadd.f32 %v3926_v34, %v7832_v39 }
 0xa67   :  { %4166 = vmatprep.subr.bf16.mxu0 %v7826_v63 }
 0xa69   :  { %4109 = vmatpush3.bf16.msra.mxu1 %v4225_v52  ;;  %v4238_v52 = vld [vmem:[#allocation9 + $0x38] sm:$0xff]  }
 0xa6a   :  { %4110 = vmatprep.subr.bf16.mxu1 %v4226_v28  ;;  %4167 = vmatpush3.bf16.msra.mxu0 %v4235_v41  ;;  %v4239_v28 = vld [vmem:[#allocation9 + $0x30] sm:$0xff]  }
 0xa6b   :  { %4168 = vmatprep.subr.bf16.mxu0 %v7826_v63 }
 0xa6d   :  { %4111 = vmatpush3.bf16.msra.mxu1 %v4227_v17  ;;  %v4241_v17 = vld [vmem:[#allocation9 + $0x20] sm:$0xff]  }
 0xa6e   :  { %4112 = vmatprep.subr.bf16.mxu1 %v4228_v19  ;;  %v4242_v19 = vld [vmem:[#allocation9 + $0x18] sm:$0xff]  }
 0xa71   :  { %4113 = vmatpush3.bf16.msra.mxu1 %v4229_v32  ;;  %v4243_v32 = vld [vmem:[#allocation9 + $0x10] sm:$0xff]  }
 0xa72   :  { %4176 = vmatprep.subr.bf16.mxu1 %v7826_v63 }
 0xad4   :  { %v3323_v49 = vpop.f32.mrf.mxu1  ;;  %v3363_v62 = vpop.f32.mrf.mxu0 }
 0xad6   :  { %v3324_v55 = vpop.f32.mrf.mxu1  ;;  %v3364_v7 = vpop.f32.mrf.mxu0 }
 0xad7   :  { %v3471_v30 = vadd.f32 %v3457_v15, %v3364_v7  ;;  %v3470_v58 = vadd.f32 %v3453_v13, %v3324_v55 }
 0xad8   :  { %v3326_v23 = vpop.f32.mrf.mxu1  ;;  %v3366_v40 = vpop.f32.mrf.mxu0 }
 0xad9   :  { %v3475_v42 = vmul.f32 0.5, %v3471_v30  ;;  %v3474_v61 = vmul.f32 0.5, %v3470_v58 }
 0xada   :  { %v3327_v35 = vpop.f32.mrf.mxu1  ;;  %v3367_v21 = vpop.f32.mrf.mxu0 }
 0xadb   :  { %4406 = vtanh.f32 %v3475_v42  ;;  %v4244_v35 = vld [vmem:[#allocation9 + $0x8] sm:$0xff]   ;;  %v4245_v21 = vld [vmem:[#allocation9] sm:$0xff]  }
 0xadc   :  { %4408 = vtanh.f32 %v3474_v61 }
 0xae8   :  { %v4407_v46 = vpop.eup %4406 }
 0xae9   :  { %v4409_v22 = vpop.eup %4408  ;;  %v3481_v53 = vmul.f32 0.5, %v4407_v46 }
 0xaea   :  { %v3480_v8 = vmul.f32 0.5, %v4409_v22 }
 0xaeb   :  { %v3484_v24 = vadd.f32 0.5, %v3481_v53 }
 0xaec   :  { %v3483_v16 = vadd.f32 0.5, %v3480_v8 }
 0xaed   :  { %v3487_v36 = vmul.f32 %v3484_v24, %v6469_v37  ;;  %v4236_v37 = vld [vmem:[#allocation8 + $0x8] sm:$0xff]  }
 0xaee   :  { %4169 = vmatpush3.bf16.msra.mxu0 %v4236_v37 }
 0xaef   :  { %4170 = vmatprep.subr.bf16.mxu0 %v7826_v63 }
 0xaf2   :  { %4171 = vmatpush3.bf16.msra.mxu0 %v4237_v33 }
 0xb14   :  { %v3403_v26 = vpop.f32.mrf.mxu1  ;;  %v3443_v47 = vpop.f32.mrf.mxu0 }
 0xb16   :  { %v3404_v51 = vpop.f32.mrf.mxu1  ;;  %v3444_v14 = vpop.f32.mrf.mxu0 }
 0xb17   :  { %v3473_v11 = vadd.f32 %v3465_v0, %v3444_v14  ;;  %v3472_v3 = vadd.f32 %v3461_v6, %v3404_v51 }
 0xb18   :  { %v3406_v48 = vpop.f32.mrf.mxu1  ;;  %v3446_v18 = vpop.f32.mrf.mxu0 }
 0xb19   :  { %4410 = vtanh.f32 %v3473_v11  ;;  %v3476_v57 = vmul.f32 0.5, %v3472_v3 }
 0xb1a   :  { %v3407_v4 = vpop.f32.mrf.mxu1  ;;  %v3447_v56 = vpop.f32.mrf.mxu0 }
 0xb1b   :  { %4412 = vtanh.f32 %v3476_v57 }
 0xb26   :  { %v4411_v60 = vpop.eup %4410 }
 0xb27   :  { %v3488_v38 = vmul.f32 %v4411_v60, %v3483_v16 }
 0xb28   :  { %v4413_v43 = vpop.eup %4412 }
 0xb29   :  { %v3489_v44 = vadd.f32 %v3488_v38, %v3487_v36  ;;  %v3482_v50 = vmul.f32 0.5, %v4413_v43 }
 0xb2b   :  { %4414 = vtanh.f32 %v3489_v44  ;;  %v3485_v27 = vadd.f32 0.5, %v3482_v50 }
 0xb38   :  { %v4415_v54 = vpop.eup %4414 }
 0xb39   :  { %v3491_v20 = vmul.f32 %v4415_v54, %v3485_v27 }
 0xb3b   :  { %v3492_v29 = vpack.c.bf16 %v3491_v20, %v3491_v20 }
 0xb3d   :  { %3653 = vmatprep.mubr.bf16.mxu1 %v3492_v29 }
 0xb3e   :  { %3654 = vmatmul.mubr.bf16.vlgmr.msra.gmra.mxu1 %v6472_v59  ;;  %v4240_v59 = vld [vmem:[#allocation9 + $0x28] sm:$0xff]  }
 0xb3f   :  { %4192 = vmatprep.mubr.msk.bf16.mxu1 %vm4534_vm2, %v7826_v63  ;;  %4177 = vmatpush3.bf16.msra.mxu1 %v4238_v52 }
 0xb40   :  { %4178 = vmatprep.subr.bf16.mxu1 %v7826_v63 }
 0xb43   :  { %4179 = vmatpush3.bf16.msra.mxu1 %v4239_v28 }
 0xb44   :  { %4180 = vmatprep.subr.bf16.mxu1 %v7826_v63 }
 0xb47   :  { %4181 = vmatpush3.bf16.msra.mxu1 %v4240_v59 }
 0xb48   :  { %4182 = vmatprep.subr.bf16.mxu1 %v7826_v63 }
 0xb4b   :  { %4183 = vmatpush3.bf16.msra.mxu1 %v4241_v17 }
 0xb4c   :  { %4184 = vmatprep.subr.bf16.mxu1 %v7826_v63 }
 0xb4f   :  { %4185 = vmatpush3.bf16.msra.mxu1 %v4242_v19 }
 0xb50   :  { %4186 = vmatprep.subr.bf16.mxu1 %v7826_v63 }
 0xb53   :  { %4187 = vmatpush3.bf16.msra.mxu1 %v4243_v32 }
 0xb54   :  { %4188 = vmatprep.subr.bf16.mxu1 %v7826_v63 }
 0xb57   :  { %4189 = vmatpush3.bf16.msra.mxu1 %v4244_v35 }
 0xb58   :  { %4190 = vmatprep.subr.bf16.mxu1 %v7826_v63  ;;  %v3930_v63 = vld [vmem:[%s6649_s13] ss:$0 sm:$0xff] }
 0xb59   :  { %v747_v0 = vadd.f32 %v3930_v63, %v7834_v1 }
 0xb5b   :  { %4191 = vmatpush3.bf16.msra.mxu1 %v4245_v21 }
 0xbfe   :  { %v4114_v45 = vpop.f32.mrf.mxu1 }
 0xc00   :  { %v4115_v5 = vpop.f32.mrf.mxu1 }
 0xc01   :  { %v4116_v49 = vadd.f32 %v4115_v5, %v4114_v45 }
 0xc02   :  { %v4117_v62 = vpop.f32.mrf.mxu1 }
 0xc03   :  { %v3656_v55 = vadd.f32 %v4116_v49, %v645_v10 }
 0xc04   :  { %v4118_v7 = vpop.f32.mrf.mxu1 }
 0xc05   :  { %v3661_v23 = vmax.f32 %v3656_v55, 0.0 }
 0xc07   :  { %v3662_v40 = vpack.c.bf16 %v3661_v23, %v3661_v23 }
 0xc09   :  { %4173 = vmatmul.mubr.bf16.vlgmr.msra.gmra.mxu0 %v3662_v40 }
 0xcc9   :  { %v3761_v15 = vpop.f32.mrf.mxu0 }
 0xcca   :  { %v3762_v2 = vadd.f32 %v3761_v15, %v696_v12 }
 0xccb   :  { %v4174_v13 = vpop.f32.mrf.mxu0 }
 0xccc   :  { %v3767_v30 = vmax.f32 %v3762_v2, 0.0 }
 0xccd   :  { %v3764_v58 = vpop.f32.mrf.mxu0 }
 0xcce   :  { %v3768_v42 = vpack.c.bf16 %v3767_v30, %v3767_v30 }
 0xccf   :  { %v4175_v61 = vpop.f32.mrf.mxu0 }
 0xcd0   :  { %4193 = vmatmul.mubr.bf16.vlgmr.msra.gmra.mxu1 %v3768_v42 }
 0xd90   :  { %v3867_v26 = vpop.f32.mrf.mxu1 }
 0xd91   :  { %v3868_v47 = vadd.f32 %v3867_v26, %v747_v0 }
 0xd92   :  { %v4194_v51 = vpop.f32.mrf.mxu1 }
 0xd93   :  { %3873 = vst [vmem:[#allocation11] sm:$0xff] %v3868_v47 }
 0xd94   :  { %v3870_v14 = vpop.f32.mrf.mxu1 }
 0xd95   :  { %4507 = shalt.err (!%p4504_p10)
}
 0xd96   :  { %3883 = dma.vmem_to_hbm [thread:$0]  %s3881_s23, 128, %s6650_s14, [#allocation5]   ;;  %v4195_v31 = vpop.f32.mrf.mxu1 }
 0xd97   :  { %4522 = dma.done.wait [#allocation5], 128  }
 0xd98   :  { %4523 = vsyncadd [#allocation5], 4294967168 }
 0xd99   :  { %3887 = vsyncpa [#allocation4], 1 }
 0xd9a   :  { %3888 = vsyncpa [#allocation7], 1 }
 0xd9b   :  { %3889 = vsyncpa [#allocation10], 1 }
 0xd9c   :  { %3890 = vsyncpa [#allocation5], 1 }

</bundles_post_ra>
